<compile_context>
chip_gen: v5e
topology: v5e:2x2
jax: 0.10.0
libtpu: 0.0.40
codegen_flags: <defaults>
</compile_context>

<pallas_src>
import jax
import jax.numpy as jnp
from jax.experimental import pallas as pl
from jax.experimental.pallas import tpu as pltpu

BN_EPS = 1e-5   # nn.BatchNorm1d default eps
LN_EPS = 1e-5   # nn.LayerNorm default eps (inside TransformerEncoderLayer)
LANE = 128      # TPU lane width


# ---------------------------------------------------------------------------
# Fused Pallas kernel
# ---------------------------------------------------------------------------

def _layernorm(h, g, b):
    mu = jnp.mean(h, axis=-1, keepdims=True)
    var = jnp.mean((h - mu) * (h - mu), axis=-1, keepdims=True)
    return (h - mu) * jax.lax.rsqrt(var + LN_EPS) * g + b


def _fused_forward_kernel(x_ref, fc1_w_ref, fc1_b_ref, fc2_w_ref, fc2_b_ref,
                          wvo_ref, bvo_ref, ln1_g_ref, ln1_b_ref,
                          w1_ref, b1_ref, w2_ref, b2_ref,
                          ln2_g_ref, ln2_b_ref, pw_ref, pb_ref, o_ref):
    """Whole eval-mode forward: fc stack -> N encoder layers -> predictor."""

    def mm(a, w):
        # bf16 MXU inputs, f32 accumulation.
        return jnp.dot(a.astype(jnp.bfloat16), w, preferred_element_type=jnp.float32)

    x = x_ref[...]

    # fc1 / fc2: Linear + (folded) BatchNorm + ReLU
    h = jnp.maximum(mm(x, fc1_w_ref[...]) + fc1_b_ref[...], 0.0)
    h = jnp.maximum(mm(h, fc2_w_ref[...]) + fc2_b_ref[...], 0.0)

    num_layers = wvo_ref.shape[0]
    for l in range(num_layers):      # tiny (2), fully unrolled at trace time
        # self-attention with seq_len == 1: softmax == 1 exactly, and
        # (x @ Wv + bv) @ Wo + bo  was pre-folded into (wvo, bvo).
        sa = mm(h, wvo_ref[l]) + bvo_ref[l]
        h1 = _layernorm(h + sa, ln1_g_ref[l], ln1_b_ref[l])

        # feed-forward: Linear -> ReLU -> Linear
        ff = jnp.maximum(mm(h1, w1_ref[l]) + b1_ref[l], 0.0)
        ff = mm(ff, w2_ref[l]) + b2_ref[l]
        h = _layernorm(h1 + ff, ln2_g_ref[l], ln2_b_ref[l])

    # predictor: Dropout(eval)=id -> Linear (lane-padded) -> sigmoid -> clamp
    logits = mm(h, pw_ref[...]) + pb_ref[...]
    p = jax.nn.sigmoid(logits)
    # stop_token = 1.0, threshold = stop_token - 0.01
    o_ref[...] = jnp.where(p > jnp.float32(0.99), jnp.float32(1.0), p)


def _vmem():
    return pl.BlockSpec(memory_space=pltpu.MemorySpace.VMEM)


def forward_pallas(x, kp):
    B = x.shape[0]
    out_pad = pl.pallas_call(
        _fused_forward_kernel,
        out_shape=jax.ShapeDtypeStruct((B, kp["pred_w"].shape[1]), jnp.float32),
        in_specs=[_vmem()] * 17,
        out_specs=_vmem(),
        compiler_params=pltpu.CompilerParams(vmem_limit_bytes=32 * 1024 * 1024),
    )(x,
      kp["fc1_w"], kp["fc1_b"], kp["fc2_w"], kp["fc2_b"],
      kp["wvo"], kp["bvo"], kp["ln1_g"], kp["ln1_b"],
      kp["w1"], kp["b1"], kp["w2"], kp["b2"],
      kp["ln2_g"], kp["ln2_b"], kp["pred_w"], kp["pred_b"])
    return out_pad[:, :kp["max_seq_len"]]


# ---------------------------------------------------------------------------
# Parameter construction (deterministic, synthetic, PyTorch-shaped) + folding
# ---------------------------------------------------------------------------

def init_raw_params(key, input_dim, d_model, num_layers, ff_dim, max_seq_len):
    ks = iter(jax.random.split(key, 256))

    def lin(fan_in, fan_out, scale=0.05):
        w = jax.random.normal(next(ks), (fan_out, fan_in), jnp.float32) * scale
        b = jax.random.normal(next(ks), (fan_out,), jnp.float32) * scale
        return w, b

    def bn(dim):
        return dict(
            gamma=1.0 + 0.1 * jax.random.normal(next(ks), (dim,), jnp.float32),
            beta=0.1 * jax.random.normal(next(ks), (dim,), jnp.float32),
            mean=0.1 * jax.random.normal(next(ks), (dim,), jnp.float32),
            var=1.0 + 0.1 * jax.random.uniform(next(ks), (dim,), jnp.float32),
        )

    raw = {}
    w, b = lin(input_dim, d_model)
    raw["fc1"] = dict(w=w, b=b, bn=bn(d_model))
    w, b = lin(d_model, d_model)
    raw["fc2"] = dict(w=w, b=b, bn=bn(d_model))

    layers = []
    for _ in range(num_layers):
        in_proj_w = jax.random.normal(next(ks), (3 * d_model, d_model), jnp.float32) * 0.05
        in_proj_b = jax.random.normal(next(ks), (3 * d_model,), jnp.float32) * 0.05
        wo, bo = lin(d_model, d_model)
        w1, b1 = lin(d_model, ff_dim)
        w2, b2 = lin(ff_dim, d_model)
        layers.append(dict(
            in_proj_w=in_proj_w, in_proj_b=in_proj_b, wo=wo, bo=bo,
            ln1_g=1.0 + 0.05 * jax.random.normal(next(ks), (d_model,), jnp.float32),
            ln1_b=0.05 * jax.random.normal(next(ks), (d_model,), jnp.float32),
            w1=w1, b1=b1, w2=w2, b2=b2,
            ln2_g=1.0 + 0.05 * jax.random.normal(next(ks), (d_model,), jnp.float32),
            ln2_b=0.05 * jax.random.normal(next(ks), (d_model,), jnp.float32),
        ))
    raw["layers"] = layers

    wp, bp = lin(d_model, max_seq_len)
    raw["pred"] = dict(w=wp, b=bp)
    return raw


def build_kernel_params(raw, d_model, max_seq_len):
    """Exact f32 folding (BN affine into fc, Wv@Wo into one matrix), then cast
    matmul weights to bf16.  Bias / LN vectors stay f32, reshaped to (1, N)."""

    def row(v):
        return v.reshape(1, -1)

    def fold_fc(p):
        s = p["bn"]["gamma"] * jax.lax.rsqrt(p["bn"]["var"] + BN_EPS)
        w_t = (p["w"] * s[:, None]).T                       # (in, out), cols scaled
        b = p["b"] * s + p["bn"]["beta"] - p["bn"]["mean"] * s
        return w_t.astype(jnp.bfloat16), row(b)

    fc1_w, fc1_b = fold_fc(raw["fc1"])
    fc2_w, fc2_b = fold_fc(raw["fc2"])

    wvo, bvo = [], []
    ln1_g, ln1_b, w1s, b1s, w2s, b2s, ln2_g, ln2_b = [], [], [], [], [], [], [], []
    for lp in raw["layers"]:
        # only the V slice of in_proj matters (seq_len == 1)
        wv = lp["in_proj_w"][2 * d_model:3 * d_model]
        bv = lp["in_proj_b"][2 * d_model:3 * d_model]
        wvo.append((wv.T @ lp["wo"].T).astype(jnp.bfloat16))      # (d, d)
        bvo.append(row(bv @ lp["wo"].T + lp["bo"]))
        ln1_g.append(row(lp["ln1_g"])); ln1_b.append(row(lp["ln1_b"]))
        w1s.append(lp["w1"].T.astype(jnp.bfloat16)); b1s.append(row(lp["b1"]))
        w2s.append(lp["w2"].T.astype(jnp.bfloat16)); b2s.append(row(lp["b2"]))
        ln2_g.append(row(lp["ln2_g"])); ln2_b.append(row(lp["ln2_b"]))

    # predictor, padded to a full 128-lane output tile (sliced back outside)
    pad = (-max_seq_len) % LANE
    pred_w = jnp.pad(raw["pred"]["w"].T, ((0, 0), (0, pad))).astype(jnp.bfloat16)
    pred_b = row(jnp.pad(raw["pred"]["b"], (0, pad)))

    return dict(
        fc1_w=fc1_w, fc1_b=fc1_b, fc2_w=fc2_w, fc2_b=fc2_b,
        wvo=jnp.stack(wvo), bvo=jnp.stack(bvo),
        ln1_g=jnp.stack(ln1_g), ln1_b=jnp.stack(ln1_b),
        w1=jnp.stack(w1s), b1=jnp.stack(b1s),
        w2=jnp.stack(w2s), b2=jnp.stack(b2s),
        ln2_g=jnp.stack(ln2_g), ln2_b=jnp.stack(ln2_b),
        pred_w=pred_w, pred_b=pred_b,
        max_seq_len=max_seq_len,
    )


# ---------------------------------------------------------------------------
# Pure-JAX reference (identical folded params / precision) for correctness
# ---------------------------------------------------------------------------

def forward_ref(x, kp):
    def mm(a, w):
        return jnp.dot(a.astype(jnp.bfloat16), w, preferred_element_type=jnp.float32)

    def ln(h, g, b):
        mu = jnp.mean(h, -1, keepdims=True)
        var = jnp.mean((h - mu) ** 2, -1, keepdims=True)
        return (h - mu) * jax.lax.rsqrt(var + LN_EPS) * g + b

    h = jnp.maximum(mm(x, kp["fc1_w"]) + kp["fc1_b"], 0.0)
    h = jnp.maximum(mm(h, kp["fc2_w"]) + kp["fc2_b"], 0.0)
    for l in range(kp["wvo"].shape[0]):
        sa = mm(h, kp["wvo"][l]) + kp["bvo"][l]
        h1 = ln(h + sa, kp["ln1_g"][l], kp["ln1_b"][l])
        ff = jnp.maximum(mm(h1, kp["w1"][l]) + kp["b1"][l], 0.0)
        ff = mm(ff, kp["w2"][l]) + kp["b2"][l]
        h = ln(h1 + ff, kp["ln2_g"][l], kp["ln2_b"][l])
    p = jax.nn.sigmoid(mm(h, kp["pred_w"]) + kp["pred_b"])
    out = jnp.where(p > 0.99, 1.0, p)
    return out[:, :kp["max_seq_len"]]


if __name__ == "__main__":
    B, INPUT_DIM = 8, 32
    D_MODEL, NUM_HEADS, NUM_LAYERS = 128, 4, 2
    FF_DIM = 2048            # nn.TransformerEncoderLayer default dim_feedforward
    MAX_SEQ_LEN = 10

    key = jax.random.PRNGKey(0)
    kx, kparam = jax.random.split(key)
    x = jax.random.normal(kx, (B, INPUT_DIM), jnp.float32)

    raw = init_raw_params(kparam, INPUT_DIM, D_MODEL, NUM_LAYERS, FF_DIM, MAX_SEQ_LEN)
    kp = build_kernel_params(raw, D_MODEL, MAX_SEQ_LEN)

    out = forward_pallas(x, kp)
    out = jax.block_until_ready(out)

    ref = forward_ref(x, kp)
    assert out.shape == (B, MAX_SEQ_LEN), out.shape
    assert bool(jnp.allclose(out, ref, atol=5e-3, rtol=5e-3)), "mismatch vs JAX reference"
    print("KERNEL_OK")
</pallas_src>

<mosaic_0001>
module attributes {stable_mosaic.version = 11 : i64} {
  func.func @_fused_forward_kernel(%arg0: memref<8x32xf32, #tpu.memory_space<vmem>>, %arg1: memref<32x128xbf16, #tpu.memory_space<vmem>>, %arg2: memref<1x128xf32, #tpu.memory_space<vmem>>, %arg3: memref<128x128xbf16, #tpu.memory_space<vmem>>, %arg4: memref<1x128xf32, #tpu.memory_space<vmem>>, %arg5: memref<2x128x128xbf16, #tpu.memory_space<vmem>>, %arg6: memref<2x1x128xf32, #tpu.memory_space<vmem>>, %arg7: memref<2x1x128xf32, #tpu.memory_space<vmem>>, %arg8: memref<2x1x128xf32, #tpu.memory_space<vmem>>, %arg9: memref<2x128x2048xbf16, #tpu.memory_space<vmem>>, %arg10: memref<2x1x2048xf32, #tpu.memory_space<vmem>>, %arg11: memref<2x2048x128xbf16, #tpu.memory_space<vmem>>, %arg12: memref<2x1x128xf32, #tpu.memory_space<vmem>>, %arg13: memref<2x1x128xf32, #tpu.memory_space<vmem>>, %arg14: memref<2x1x128xf32, #tpu.memory_space<vmem>>, %arg15: memref<128x128xbf16, #tpu.memory_space<vmem>>, %arg16: memref<1x128xf32, #tpu.memory_space<vmem>>, %arg17: memref<8x128xf32, #tpu.memory_space<vmem>>) attributes {dimension_semantics = [], scalar_prefetch = 0 : i64, scratch_operands = 0 : i64, tpu.core_type = #tpu.core_type<tc>} {
    %c0 = arith.constant 0 : index
    %c0_0 = arith.constant 0 : index
    %0 = vector.load %arg0[%c0, %c0_0] : memref<8x32xf32, #tpu.memory_space<vmem>>, vector<8x32xf32>
    %c0_1 = arith.constant 0 : index
    %c0_2 = arith.constant 0 : index
    %1 = vector.load %arg1[%c0_1, %c0_2] : memref<32x128xbf16, #tpu.memory_space<vmem>>, vector<32x128xbf16>
    %2 = arith.truncf %0 : vector<8x32xf32> to vector<8x32xbf16>
    %cst = arith.constant dense<0.000000e+00> : vector<8x128xf32>
    %3 = tpu.matmul %2, %1, %cst {dimension_numbers = #tpu.dot_dimension_numbers<[1], [0], [0], [1], [0, 0, 1, 1], [], []>} : vector<8x32xbf16>, vector<32x128xbf16>, vector<8x128xf32> -> vector<8x128xf32>
    %c0_3 = arith.constant 0 : index
    %c0_4 = arith.constant 0 : index
    %4 = vector.load %arg2[%c0_3, %c0_4] : memref<1x128xf32, #tpu.memory_space<vmem>>, vector<1x128xf32>
    %5 = vector.broadcast %4 : vector<1x128xf32> to vector<8x128xf32>
    %6 = arith.addf %3, %5 : vector<8x128xf32>
    %cst_5 = arith.constant 0.000000e+00 : f32
    %7 = vector.broadcast %cst_5 : f32 to vector<8x128xf32>
    %8 = arith.maximumf %6, %7 : vector<8x128xf32>
    %c0_6 = arith.constant 0 : index
    %c0_7 = arith.constant 0 : index
    %9 = vector.load %arg3[%c0_6, %c0_7] : memref<128x128xbf16, #tpu.memory_space<vmem>>, vector<128x128xbf16>
    %10 = arith.truncf %8 : vector<8x128xf32> to vector<8x128xbf16>
    %cst_8 = arith.constant dense<0.000000e+00> : vector<8x128xf32>
    %11 = tpu.matmul %10, %9, %cst_8 {dimension_numbers = #tpu.dot_dimension_numbers<[1], [0], [0], [1], [0, 0, 1, 1], [], []>} : vector<8x128xbf16>, vector<128x128xbf16>, vector<8x128xf32> -> vector<8x128xf32>
    %c0_9 = arith.constant 0 : index
    %c0_10 = arith.constant 0 : index
    %12 = vector.load %arg4[%c0_9, %c0_10] : memref<1x128xf32, #tpu.memory_space<vmem>>, vector<1x128xf32>
    %13 = vector.broadcast %12 : vector<1x128xf32> to vector<8x128xf32>
    %14 = arith.addf %11, %13 : vector<8x128xf32>
    %cst_11 = arith.constant 0.000000e+00 : f32
    %15 = vector.broadcast %cst_11 : f32 to vector<8x128xf32>
    %16 = arith.maximumf %14, %15 : vector<8x128xf32>
    %c0_12 = arith.constant 0 : index
    %c0_13 = arith.constant 0 : index
    %c0_14 = arith.constant 0 : index
    %17 = vector.load %arg5[%c0_12, %c0_13, %c0_14] : memref<2x128x128xbf16, #tpu.memory_space<vmem>>, vector<1x128x128xbf16>
    %18 = vector.shape_cast %17 : vector<1x128x128xbf16> to vector<128x128xbf16>
    %19 = arith.truncf %16 : vector<8x128xf32> to vector<8x128xbf16>
    %cst_15 = arith.constant dense<0.000000e+00> : vector<8x128xf32>
    %20 = tpu.matmul %19, %18, %cst_15 {dimension_numbers = #tpu.dot_dimension_numbers<[1], [0], [0], [1], [0, 0, 1, 1], [], []>} : vector<8x128xbf16>, vector<128x128xbf16>, vector<8x128xf32> -> vector<8x128xf32>
    %c0_16 = arith.constant 0 : index
    %c0_17 = arith.constant 0 : index
    %c0_18 = arith.constant 0 : index
    %21 = vector.load %arg6[%c0_16, %c0_17, %c0_18] : memref<2x1x128xf32, #tpu.memory_space<vmem>>, vector<1x1x128xf32>
    %22 = vector.shape_cast %21 : vector<1x1x128xf32> to vector<1x128xf32>
    %23 = vector.broadcast %22 : vector<1x128xf32> to vector<8x128xf32>
    %24 = arith.addf %20, %23 : vector<8x128xf32>
    %25 = arith.addf %16, %24 : vector<8x128xf32>
    %c0_19 = arith.constant 0 : index
    %c0_20 = arith.constant 0 : index
    %c0_21 = arith.constant 0 : index
    %26 = vector.load %arg7[%c0_19, %c0_20, %c0_21] : memref<2x1x128xf32, #tpu.memory_space<vmem>>, vector<1x1x128xf32>
    %27 = vector.shape_cast %26 : vector<1x1x128xf32> to vector<1x128xf32>
    %c0_22 = arith.constant 0 : index
    %c0_23 = arith.constant 0 : index
    %c0_24 = arith.constant 0 : index
    %28 = vector.load %arg8[%c0_22, %c0_23, %c0_24] : memref<2x1x128xf32, #tpu.memory_space<vmem>>, vector<1x1x128xf32>
    %29 = vector.shape_cast %28 : vector<1x1x128xf32> to vector<1x128xf32>
    %cst_25 = arith.constant dense<0.000000e+00> : vector<8xf32>
    %30 = vector.multi_reduction <add>, %25, %cst_25 [1] : vector<8x128xf32> to vector<8xf32>
    %31 = vector.shape_cast %30 : vector<8xf32> to vector<8x1xf32>
    %cst_26 = arith.constant 1.280000e+02 : f32
    %32 = vector.broadcast %cst_26 : f32 to vector<8x1xf32>
    %33 = arith.divf %31, %32 : vector<8x1xf32>
    %34 = vector.broadcast %33 : vector<8x1xf32> to vector<8x128xf32>
    %35 = arith.subf %25, %34 : vector<8x128xf32>
    %36 = vector.broadcast %33 : vector<8x1xf32> to vector<8x128xf32>
    %37 = arith.subf %25, %36 : vector<8x128xf32>
    %38 = arith.mulf %35, %37 : vector<8x128xf32>
    %cst_27 = arith.constant dense<0.000000e+00> : vector<8xf32>
    %39 = vector.multi_reduction <add>, %38, %cst_27 [1] : vector<8x128xf32> to vector<8xf32>
    %40 = vector.shape_cast %39 : vector<8xf32> to vector<8x1xf32>
    %cst_28 = arith.constant 1.280000e+02 : f32
    %41 = vector.broadcast %cst_28 : f32 to vector<8x1xf32>
    %42 = arith.divf %40, %41 : vector<8x1xf32>
    %43 = vector.broadcast %33 : vector<8x1xf32> to vector<8x128xf32>
    %44 = arith.subf %25, %43 : vector<8x128xf32>
    %cst_29 = arith.constant 9.99999974E-6 : f32
    %45 = vector.broadcast %cst_29 : f32 to vector<8x1xf32>
    %46 = arith.addf %42, %45 : vector<8x1xf32>
    %47 = math.rsqrt %46 : vector<8x1xf32>
    %48 = vector.broadcast %47 : vector<8x1xf32> to vector<8x128xf32>
    %49 = arith.mulf %44, %48 : vector<8x128xf32>
    %50 = vector.broadcast %27 : vector<1x128xf32> to vector<8x128xf32>
    %51 = arith.mulf %49, %50 : vector<8x128xf32>
    %52 = vector.broadcast %29 : vector<1x128xf32> to vector<8x128xf32>
    %53 = arith.addf %51, %52 : vector<8x128xf32>
    %c0_30 = arith.constant 0 : index
    %c0_31 = arith.constant 0 : index
    %c0_32 = arith.constant 0 : index
    %54 = vector.load %arg9[%c0_30, %c0_31, %c0_32] : memref<2x128x2048xbf16, #tpu.memory_space<vmem>>, vector<1x128x2048xbf16>
    %55 = vector.shape_cast %54 : vector<1x128x2048xbf16> to vector<128x2048xbf16>
    %56 = arith.truncf %53 : vector<8x128xf32> to vector<8x128xbf16>
    %cst_33 = arith.constant dense<0.000000e+00> : vector<8x2048xf32>
    %57 = tpu.matmul %56, %55, %cst_33 {dimension_numbers = #tpu.dot_dimension_numbers<[1], [0], [0], [1], [0, 0, 1, 1], [], []>} : vector<8x128xbf16>, vector<128x2048xbf16>, vector<8x2048xf32> -> vector<8x2048xf32>
    %c0_34 = arith.constant 0 : index
    %c0_35 = arith.constant 0 : index
    %c0_36 = arith.constant 0 : index
    %58 = vector.load %arg10[%c0_34, %c0_35, %c0_36] : memref<2x1x2048xf32, #tpu.memory_space<vmem>>, vector<1x1x2048xf32>
    %59 = vector.shape_cast %58 : vector<1x1x2048xf32> to vector<1x2048xf32>
    %60 = vector.broadcast %59 : vector<1x2048xf32> to vector<8x2048xf32>
    %61 = arith.addf %57, %60 : vector<8x2048xf32>
    %cst_37 = arith.constant 0.000000e+00 : f32
    %62 = vector.broadcast %cst_37 : f32 to vector<8x2048xf32>
    %63 = arith.maximumf %61, %62 : vector<8x2048xf32>
    %c0_38 = arith.constant 0 : index
    %c0_39 = arith.constant 0 : index
    %c0_40 = arith.constant 0 : index
    %64 = vector.load %arg11[%c0_38, %c0_39, %c0_40] : memref<2x2048x128xbf16, #tpu.memory_space<vmem>>, vector<1x2048x128xbf16>
    %65 = vector.shape_cast %64 : vector<1x2048x128xbf16> to vector<2048x128xbf16>
    %66 = arith.truncf %63 : vector<8x2048xf32> to vector<8x2048xbf16>
    %cst_41 = arith.constant dense<0.000000e+00> : vector<8x128xf32>
    %67 = tpu.matmul %66, %65, %cst_41 {dimension_numbers = #tpu.dot_dimension_numbers<[1], [0], [0], [1], [0, 0, 1, 1], [], []>} : vector<8x2048xbf16>, vector<2048x128xbf16>, vector<8x128xf32> -> vector<8x128xf32>
    %c0_42 = arith.constant 0 : index
    %c0_43 = arith.constant 0 : index
    %c0_44 = arith.constant 0 : index
    %68 = vector.load %arg12[%c0_42, %c0_43, %c0_44] : memref<2x1x128xf32, #tpu.memory_space<vmem>>, vector<1x1x128xf32>
    %69 = vector.shape_cast %68 : vector<1x1x128xf32> to vector<1x128xf32>
    %70 = vector.broadcast %69 : vector<1x128xf32> to vector<8x128xf32>
    %71 = arith.addf %67, %70 : vector<8x128xf32>
    %72 = arith.addf %53, %71 : vector<8x128xf32>
    %c0_45 = arith.constant 0 : index
    %c0_46 = arith.constant 0 : index
    %c0_47 = arith.constant 0 : index
    %73 = vector.load %arg13[%c0_45, %c0_46, %c0_47] : memref<2x1x128xf32, #tpu.memory_space<vmem>>, vector<1x1x128xf32>
    %74 = vector.shape_cast %73 : vector<1x1x128xf32> to vector<1x128xf32>
    %c0_48 = arith.constant 0 : index
    %c0_49 = arith.constant 0 : index
    %c0_50 = arith.constant 0 : index
    %75 = vector.load %arg14[%c0_48, %c0_49, %c0_50] : memref<2x1x128xf32, #tpu.memory_space<vmem>>, vector<1x1x128xf32>
    %76 = vector.shape_cast %75 : vector<1x1x128xf32> to vector<1x128xf32>
    %cst_51 = arith.constant dense<0.000000e+00> : vector<8xf32>
    %77 = vector.multi_reduction <add>, %72, %cst_51 [1] : vector<8x128xf32> to vector<8xf32>
    %78 = vector.shape_cast %77 : vector<8xf32> to vector<8x1xf32>
    %cst_52 = arith.constant 1.280000e+02 : f32
    %79 = vector.broadcast %cst_52 : f32 to vector<8x1xf32>
    %80 = arith.divf %78, %79 : vector<8x1xf32>
    %81 = vector.broadcast %80 : vector<8x1xf32> to vector<8x128xf32>
    %82 = arith.subf %72, %81 : vector<8x128xf32>
    %83 = vector.broadcast %80 : vector<8x1xf32> to vector<8x128xf32>
    %84 = arith.subf %72, %83 : vector<8x128xf32>
    %85 = arith.mulf %82, %84 : vector<8x128xf32>
    %cst_53 = arith.constant dense<0.000000e+00> : vector<8xf32>
    %86 = vector.multi_reduction <add>, %85, %cst_53 [1] : vector<8x128xf32> to vector<8xf32>
    %87 = vector.shape_cast %86 : vector<8xf32> to vector<8x1xf32>
    %cst_54 = arith.constant 1.280000e+02 : f32
    %88 = vector.broadcast %cst_54 : f32 to vector<8x1xf32>
    %89 = arith.divf %87, %88 : vector<8x1xf32>
    %90 = vector.broadcast %80 : vector<8x1xf32> to vector<8x128xf32>
    %91 = arith.subf %72, %90 : vector<8x128xf32>
    %cst_55 = arith.constant 9.99999974E-6 : f32
    %92 = vector.broadcast %cst_55 : f32 to vector<8x1xf32>
    %93 = arith.addf %89, %92 : vector<8x1xf32>
    %94 = math.rsqrt %93 : vector<8x1xf32>
    %95 = vector.broadcast %94 : vector<8x1xf32> to vector<8x128xf32>
    %96 = arith.mulf %91, %95 : vector<8x128xf32>
    %97 = vector.broadcast %74 : vector<1x128xf32> to vector<8x128xf32>
    %98 = arith.mulf %96, %97 : vector<8x128xf32>
    %99 = vector.broadcast %76 : vector<1x128xf32> to vector<8x128xf32>
    %100 = arith.addf %98, %99 : vector<8x128xf32>
    %c1 = arith.constant 1 : index
    %c0_56 = arith.constant 0 : index
    %c0_57 = arith.constant 0 : index
    %101 = vector.load %arg5[%c1, %c0_56, %c0_57] : memref<2x128x128xbf16, #tpu.memory_space<vmem>>, vector<1x128x128xbf16>
    %102 = vector.shape_cast %101 : vector<1x128x128xbf16> to vector<128x128xbf16>
    %103 = arith.truncf %100 : vector<8x128xf32> to vector<8x128xbf16>
    %cst_58 = arith.constant dense<0.000000e+00> : vector<8x128xf32>
    %104 = tpu.matmul %103, %102, %cst_58 {dimension_numbers = #tpu.dot_dimension_numbers<[1], [0], [0], [1], [0, 0, 1, 1], [], []>} : vector<8x128xbf16>, vector<128x128xbf16>, vector<8x128xf32> -> vector<8x128xf32>
    %c1_59 = arith.constant 1 : index
    %c0_60 = arith.constant 0 : index
    %c0_61 = arith.constant 0 : index
    %105 = vector.load %arg6[%c1_59, %c0_60, %c0_61] : memref<2x1x128xf32, #tpu.memory_space<vmem>>, vector<1x1x128xf32>
    %106 = vector.shape_cast %105 : vector<1x1x128xf32> to vector<1x128xf32>
    %107 = vector.broadcast %106 : vector<1x128xf32> to vector<8x128xf32>
    %108 = arith.addf %104, %107 : vector<8x128xf32>
    %109 = arith.addf %100, %108 : vector<8x128xf32>
    %c1_62 = arith.constant 1 : index
    %c0_63 = arith.constant 0 : index
    %c0_64 = arith.constant 0 : index
    %110 = vector.load %arg7[%c1_62, %c0_63, %c0_64] : memref<2x1x128xf32, #tpu.memory_space<vmem>>, vector<1x1x128xf32>
    %111 = vector.shape_cast %110 : vector<1x1x128xf32> to vector<1x128xf32>
    %c1_65 = arith.constant 1 : index
    %c0_66 = arith.constant 0 : index
    %c0_67 = arith.constant 0 : index
    %112 = vector.load %arg8[%c1_65, %c0_66, %c0_67] : memref<2x1x128xf32, #tpu.memory_space<vmem>>, vector<1x1x128xf32>
    %113 = vector.shape_cast %112 : vector<1x1x128xf32> to vector<1x128xf32>
    %cst_68 = arith.constant dense<0.000000e+00> : vector<8xf32>
    %114 = vector.multi_reduction <add>, %109, %cst_68 [1] : vector<8x128xf32> to vector<8xf32>
    %115 = vector.shape_cast %114 : vector<8xf32> to vector<8x1xf32>
    %cst_69 = arith.constant 1.280000e+02 : f32
    %116 = vector.broadcast %cst_69 : f32 to vector<8x1xf32>
    %117 = arith.divf %115, %116 : vector<8x1xf32>
    %118 = vector.broadcast %117 : vector<8x1xf32> to vector<8x128xf32>
    %119 = arith.subf %109, %118 : vector<8x128xf32>
    %120 = vector.broadcast %117 : vector<8x1xf32> to vector<8x128xf32>
    %121 = arith.subf %109, %120 : vector<8x128xf32>
    %122 = arith.mulf %119, %121 : vector<8x128xf32>
    %cst_70 = arith.constant dense<0.000000e+00> : vector<8xf32>
    %123 = vector.multi_reduction <add>, %122, %cst_70 [1] : vector<8x128xf32> to vector<8xf32>
    %124 = vector.shape_cast %123 : vector<8xf32> to vector<8x1xf32>
    %cst_71 = arith.constant 1.280000e+02 : f32
    %125 = vector.broadcast %cst_71 : f32 to vector<8x1xf32>
    %126 = arith.divf %124, %125 : vector<8x1xf32>
    %127 = vector.broadcast %117 : vector<8x1xf32> to vector<8x128xf32>
    %128 = arith.subf %109, %127 : vector<8x128xf32>
    %cst_72 = arith.constant 9.99999974E-6 : f32
    %129 = vector.broadcast %cst_72 : f32 to vector<8x1xf32>
    %130 = arith.addf %126, %129 : vector<8x1xf32>
    %131 = math.rsqrt %130 : vector<8x1xf32>
    %132 = vector.broadcast %131 : vector<8x1xf32> to vector<8x128xf32>
    %133 = arith.mulf %128, %132 : vector<8x128xf32>
    %134 = vector.broadcast %111 : vector<1x128xf32> to vector<8x128xf32>
    %135 = arith.mulf %133, %134 : vector<8x128xf32>
    %136 = vector.broadcast %113 : vector<1x128xf32> to vector<8x128xf32>
    %137 = arith.addf %135, %136 : vector<8x128xf32>
    %c1_73 = arith.constant 1 : index
    %c0_74 = arith.constant 0 : index
    %c0_75 = arith.constant 0 : index
    %138 = vector.load %arg9[%c1_73, %c0_74, %c0_75] : memref<2x128x2048xbf16, #tpu.memory_space<vmem>>, vector<1x128x2048xbf16>
    %139 = vector.shape_cast %138 : vector<1x128x2048xbf16> to vector<128x2048xbf16>
    %140 = arith.truncf %137 : vector<8x128xf32> to vector<8x128xbf16>
    %cst_76 = arith.constant dense<0.000000e+00> : vector<8x2048xf32>
    %141 = tpu.matmul %140, %139, %cst_76 {dimension_numbers = #tpu.dot_dimension_numbers<[1], [0], [0], [1], [0, 0, 1, 1], [], []>} : vector<8x128xbf16>, vector<128x2048xbf16>, vector<8x2048xf32> -> vector<8x2048xf32>
    %c1_77 = arith.constant 1 : index
    %c0_78 = arith.constant 0 : index
    %c0_79 = arith.constant 0 : index
    %142 = vector.load %arg10[%c1_77, %c0_78, %c0_79] : memref<2x1x2048xf32, #tpu.memory_space<vmem>>, vector<1x1x2048xf32>
    %143 = vector.shape_cast %142 : vector<1x1x2048xf32> to vector<1x2048xf32>
    %144 = vector.broadcast %143 : vector<1x2048xf32> to vector<8x2048xf32>
    %145 = arith.addf %141, %144 : vector<8x2048xf32>
    %cst_80 = arith.constant 0.000000e+00 : f32
    %146 = vector.broadcast %cst_80 : f32 to vector<8x2048xf32>
    %147 = arith.maximumf %145, %146 : vector<8x2048xf32>
    %c1_81 = arith.constant 1 : index
    %c0_82 = arith.constant 0 : index
    %c0_83 = arith.constant 0 : index
    %148 = vector.load %arg11[%c1_81, %c0_82, %c0_83] : memref<2x2048x128xbf16, #tpu.memory_space<vmem>>, vector<1x2048x128xbf16>
    %149 = vector.shape_cast %148 : vector<1x2048x128xbf16> to vector<2048x128xbf16>
    %150 = arith.truncf %147 : vector<8x2048xf32> to vector<8x2048xbf16>
    %cst_84 = arith.constant dense<0.000000e+00> : vector<8x128xf32>
    %151 = tpu.matmul %150, %149, %cst_84 {dimension_numbers = #tpu.dot_dimension_numbers<[1], [0], [0], [1], [0, 0, 1, 1], [], []>} : vector<8x2048xbf16>, vector<2048x128xbf16>, vector<8x128xf32> -> vector<8x128xf32>
    %c1_85 = arith.constant 1 : index
    %c0_86 = arith.constant 0 : index
    %c0_87 = arith.constant 0 : index
    %152 = vector.load %arg12[%c1_85, %c0_86, %c0_87] : memref<2x1x128xf32, #tpu.memory_space<vmem>>, vector<1x1x128xf32>
    %153 = vector.shape_cast %152 : vector<1x1x128xf32> to vector<1x128xf32>
    %154 = vector.broadcast %153 : vector<1x128xf32> to vector<8x128xf32>
    %155 = arith.addf %151, %154 : vector<8x128xf32>
    %156 = arith.addf %137, %155 : vector<8x128xf32>
    %c1_88 = arith.constant 1 : index
    %c0_89 = arith.constant 0 : index
    %c0_90 = arith.constant 0 : index
    %157 = vector.load %arg13[%c1_88, %c0_89, %c0_90] : memref<2x1x128xf32, #tpu.memory_space<vmem>>, vector<1x1x128xf32>
    %158 = vector.shape_cast %157 : vector<1x1x128xf32> to vector<1x128xf32>
    %c1_91 = arith.constant 1 : index
    %c0_92 = arith.constant 0 : index
    %c0_93 = arith.constant 0 : index
    %159 = vector.load %arg14[%c1_91, %c0_92, %c0_93] : memref<2x1x128xf32, #tpu.memory_space<vmem>>, vector<1x1x128xf32>
    %160 = vector.shape_cast %159 : vector<1x1x128xf32> to vector<1x128xf32>
    %cst_94 = arith.constant dense<0.000000e+00> : vector<8xf32>
    %161 = vector.multi_reduction <add>, %156, %cst_94 [1] : vector<8x128xf32> to vector<8xf32>
    %162 = vector.shape_cast %161 : vector<8xf32> to vector<8x1xf32>
    %cst_95 = arith.constant 1.280000e+02 : f32
    %163 = vector.broadcast %cst_95 : f32 to vector<8x1xf32>
    %164 = arith.divf %162, %163 : vector<8x1xf32>
    %165 = vector.broadcast %164 : vector<8x1xf32> to vector<8x128xf32>
    %166 = arith.subf %156, %165 : vector<8x128xf32>
    %167 = vector.broadcast %164 : vector<8x1xf32> to vector<8x128xf32>
    %168 = arith.subf %156, %167 : vector<8x128xf32>
    %169 = arith.mulf %166, %168 : vector<8x128xf32>
    %cst_96 = arith.constant dense<0.000000e+00> : vector<8xf32>
    %170 = vector.multi_reduction <add>, %169, %cst_96 [1] : vector<8x128xf32> to vector<8xf32>
    %171 = vector.shape_cast %170 : vector<8xf32> to vector<8x1xf32>
    %cst_97 = arith.constant 1.280000e+02 : f32
    %172 = vector.broadcast %cst_97 : f32 to vector<8x1xf32>
    %173 = arith.divf %171, %172 : vector<8x1xf32>
    %174 = vector.broadcast %164 : vector<8x1xf32> to vector<8x128xf32>
    %175 = arith.subf %156, %174 : vector<8x128xf32>
    %cst_98 = arith.constant 9.99999974E-6 : f32
    %176 = vector.broadcast %cst_98 : f32 to vector<8x1xf32>
    %177 = arith.addf %173, %176 : vector<8x1xf32>
    %178 = math.rsqrt %177 : vector<8x1xf32>
    %179 = vector.broadcast %178 : vector<8x1xf32> to vector<8x128xf32>
    %180 = arith.mulf %175, %179 : vector<8x128xf32>
    %181 = vector.broadcast %158 : vector<1x128xf32> to vector<8x128xf32>
    %182 = arith.mulf %180, %181 : vector<8x128xf32>
    %183 = vector.broadcast %160 : vector<1x128xf32> to vector<8x128xf32>
    %184 = arith.addf %182, %183 : vector<8x128xf32>
    %c0_99 = arith.constant 0 : index
    %c0_100 = arith.constant 0 : index
    %185 = vector.load %arg15[%c0_99, %c0_100] : memref<128x128xbf16, #tpu.memory_space<vmem>>, vector<128x128xbf16>
    %186 = arith.truncf %184 : vector<8x128xf32> to vector<8x128xbf16>
    %cst_101 = arith.constant dense<0.000000e+00> : vector<8x128xf32>
    %187 = tpu.matmul %186, %185, %cst_101 {dimension_numbers = #tpu.dot_dimension_numbers<[1], [0], [0], [1], [0, 0, 1, 1], [], []>} : vector<8x128xbf16>, vector<128x128xbf16>, vector<8x128xf32> -> vector<8x128xf32>
    %c0_102 = arith.constant 0 : index
    %c0_103 = arith.constant 0 : index
    %188 = vector.load %arg16[%c0_102, %c0_103] : memref<1x128xf32, #tpu.memory_space<vmem>>, vector<1x128xf32>
    %189 = vector.broadcast %188 : vector<1x128xf32> to vector<8x128xf32>
    %190 = arith.addf %187, %189 : vector<8x128xf32>
    %191 = arith.negf %190 : vector<8x128xf32>
    %192 = math.exp %191 : vector<8x128xf32>
    %cst_104 = arith.constant 1.000000e+00 : f32
    %193 = vector.broadcast %cst_104 : f32 to vector<8x128xf32>
    %194 = arith.addf %193, %192 : vector<8x128xf32>
    %195 = arith.divf %193, %194 : vector<8x128xf32>
    %cst_105 = arith.constant 9.900000e-01 : f32
    %196 = vector.broadcast %cst_105 : f32 to vector<8x128xf32>
    %197 = arith.cmpf ogt, %195, %196 : vector<8x128xf32>
    %cst_106 = arith.constant 1.000000e+00 : f32
    %198 = vector.broadcast %cst_106 : f32 to vector<8x128xf32>
    %199 = arith.select %197, %198, %195 : vector<8x128xi1>, vector<8x128xf32>
    %c0_107 = arith.constant 0 : index
    %c0_108 = arith.constant 0 : index
    %200 = vector.load %arg17[%c0_107, %c0_108] : memref<8x128xf32, #tpu.memory_space<vmem>>, vector<8x128xf32>
    tpu.vector_store %arg17[%c0_107, %c0_108], %199 {strides = array<i32>} : memref<8x128xf32, #tpu.memory_space<vmem>>, vector<8x128xf32>,
    return
  }
}

</mosaic_0001>

<bundles_post_ra>
// kernel: tpu_custom_call.1
= control target key start
LH: loop header
LB: loop body
LE: loop exit
PB: predicated region body
PF: predicated region fallthrough
CT: control target
= control target key end

     0   :  { %s8705_s0 = inlined_call_operand.hbm [shape: f32[8,32], index: 0, kind: input, shape index: {}]   ;;  %s8706_s1 = inlined_call_operand.hbm [shape: bf16[32,128], index: 1, kind: input, shape index: {}]   ;;  %s8707_s2 = inlined_call_operand.hbm [shape: f32[1,128], index: 2, kind: input, shape index: {}]   ;;  %s8708_s3 = inlined_call_operand.hbm [shape: bf16[128,128], index: 3, kind: input, shape index: {}]   ;;  %s8709_s4 = inlined_call_operand.hbm [shape: f32[1,128], index: 4, kind: input, shape index: {}]   ;;  %s8710_s5 = inlined_call_operand.hbm [shape: bf16[2,128,128], index: 5, kind: input, shape index: {}]   ;;  %s8711_s6 = inlined_call_operand.vmem [shape: f32[2,1,128], index: 6, kind: input, shape index: {}]   ;;  %s8712_s7 = inlined_call_operand.vmem [shape: f32[2,1,128], index: 7, kind: input, shape index: {}]   ;;  %s8713_s8 = inlined_call_operand.vmem [shape: f32[2,1,128], index: 8, kind: input, shape index: {}]   ;;  %s8714_s9 = inlined_call_operand.hbm [shape: bf16[2,128,2048], index: 9, kind: input, shape index: {}]   ;;  %s8715_s10 = inlined_call_operand.hbm [shape: f32[2,1,2048], index: 10, kind: input, shape index: {}]   ;;  %s8716_s11 = inlined_call_operand.hbm [shape: bf16[2,2048,128], index: 11, kind: input, shape index: {}]   ;;  %s8717_s12 = inlined_call_operand.vmem [shape: f32[2,1,128], index: 12, kind: input, shape index: {}]   ;;  %s8718_s13 = inlined_call_operand.vmem [shape: f32[2,1,128], index: 13, kind: input, shape index: {}]   ;;  %s8719_s14 = inlined_call_operand.vmem [shape: f32[2,1,128], index: 14, kind: input, shape index: {}]   ;;  %s8720_s15 = inlined_call_operand.hbm [shape: bf16[128,128], index: 15, kind: input, shape index: {}]   ;;  %s8721_s16 = inlined_call_operand.vmem [shape: f32[1,128], index: 16, kind: input, shape index: {}]   ;;  %s8722_s17 = inlined_call_operand.hbm [shape: f32[8,128], index: 17, kind: output, shape index: {}]  }
   0x1   :  { %8725 = sst [smem:[#allocation27_spill]] %s8705_s0 }
   0x2   :  { %8726 = sst [smem:[#allocation28_spill]] %s8706_s1 }
   0x3   :  { %22 = vsyncpa [#allocation3], 0 }
   0x4   :  { %23 = vsyncpa [#allocation6], 0 }
   0x5   :  { %24 = vsyncpa [#allocation9], 0 }
   0x6   :  { %25 = vsyncpa [#allocation12], 0 }
   0x7   :  { %26 = vsyncpa [#allocation15], 0 }
   0x8   :  { %27 = vsyncpa [#allocation18], 0  ;;  %s8727_s26 = sld [smem:[#allocation28_spill]] }
   0xe   :  { %s44_s27 = sshll.u32 %s8727_s26, 4  ;;  %s45_s27 = int_to_ptr.hbm [resolvable:$true] %s44_s27 }
   0xf   :  { %28 = vsyncpa [#allocation4], 0  ;;  %s8386_s28 = smov [#allocation5]   ;;  %s68_s18 = sshll.u32 %s8708_s3, 4  ;;  %s69_s18 = int_to_ptr.hbm [resolvable:$true] %s68_s18 }
  0x10   :  { %s46_s29 = sshll.u32 %s8386_s28, 4  ;;  %s8387_s19 = smov 64   ;;  %s47_s29 = int_to_ptr.vmem [resolvable:$true] %s46_s29 }
  0x11   :  { %s8723_s1 = smov 4   ;;  %s8389_s20 = smov [#allocation8]  }
  0x12   :  { %52 = dma.hbm_to_vmem [thread:$0]  %s45_s27, 256, %s47_s29, [#allocation6], %s8387_s19, %s8387_s19, %s8723_s1  }
  0x13   :  { %s70_s21 = sshll.u32 %s8389_s20, 4  ;;  %s92_s24 = sshll.u32 %s8710_s5, 4  ;;  %s71_s21 = int_to_ptr.vmem [resolvable:$true] %s70_s21  ;;  %s93_s24 = int_to_ptr.hbm [resolvable:$true] %s92_s24 }
  0x14   :  { %76 = dma.hbm_to_vmem [thread:$0]  %s69_s18, 1024, %s71_s21, [#allocation9], %s8387_s19, %s8387_s19, %s8723_s1  }
  0x15   :  { %s124_s26 = sshll.u32 %s8715_s10, 4  ;;  %s8390_s28 = smov [#allocation11]   ;;  %s125_s26 = int_to_ptr.hbm [resolvable:$true] %s124_s26 }
  0x16   :  { %s94_s0 = sshll.u32 %s8390_s28, 4  ;;  %s8391_s27 = smov [#allocation14]   ;;  %s95_s0 = int_to_ptr.vmem [resolvable:$true] %s94_s0 }
  0x17   :  { %100 = dma.hbm_to_vmem [thread:$0]  %s93_s24, 2048, %s95_s0, [#allocation12], %s8387_s19, %s8387_s19, %s8723_s1  }
  0x18   :  { %s126_s5 = sshll.u32 %s8391_s27, 4  ;;  %s8392_s29 = smov 256   ;;  %s127_s5 = int_to_ptr.vmem [resolvable:$true] %s126_s5 }
  0x19   :  { %s8393_s30 = smov 16   ;;  %s8728_s21 = sld [smem:[#allocation27_spill]] }
  0x1a   :  { %132 = dma.hbm_to_vmem [thread:$0]  %s125_s26, 512, %s127_s5, [#allocation15], %s8392_s29, %s8392_s29, %s8393_s30  }
  0x1b   :  { %s8394_s10 = smov [#allocation2]   ;;  %s58_s28 = sshll.u32 %s8707_s2, 4  ;;  %s59_s28 = int_to_ptr.hbm [resolvable:$true] %s58_s28 }
  0x1c   :  { %s36_s23 = sshll.u32 %s8394_s10, 4  ;;  %s8395_s24 = smov [#allocation7]   ;;  %s37_s23 = int_to_ptr.vmem [resolvable:$true] %s36_s23 }
  0x1d   :  { %s60_s0 = sshll.u32 %s8395_s24, 4  ;;  %s82_s26 = sshll.u32 %s8709_s4, 4  ;;  %s61_s0 = int_to_ptr.vmem [resolvable:$true] %s60_s0  ;;  %s83_s26 = int_to_ptr.hbm [resolvable:$true] %s82_s26 }
  0x1e   :  { %63 = dma.hbm_to_vmem [thread:$0]  %s59_s28, 16, %s61_s0, [#allocation6]  }
  0x1f   :  { %s34_s22 = sshll.u32 %s8728_s21, 4  ;;  %s111_s30 = sshll.u32 %s8714_s9, 4  ;;  %s35_s22 = int_to_ptr.hbm [resolvable:$true] %s34_s22  ;;  %s112_s30 = int_to_ptr.hbm [resolvable:$true] %s111_s30 }
  0x20   :  { %39 = dma.hbm_to_vmem [thread:$0]  %s35_s22, 128, %s37_s23, [#allocation3]  }
  0x21   :  { %s8396_s20 = smov [#allocation10]   ;;  %s8397_s2 = smov [#allocation13]  }
  0x22   :  { %s84_s18 = sshll.u32 %s8396_s20, 4  ;;  %s113_s21 = sshll.u32 %s8397_s2, 4  ;;  %s85_s18 = int_to_ptr.vmem [resolvable:$true] %s84_s18  ;;  %s114_s21 = int_to_ptr.vmem [resolvable:$true] %s113_s21 }
  0x23   :  { %87 = dma.hbm_to_vmem [thread:$0]  %s83_s26, 16, %s85_s18, [#allocation9]  }
  0x24   :  { %s137_s1 = sshll.u32 %s8716_s11, 4  ;;  %s8398_s4 = smov 1024   ;;  %s138_s1 = int_to_ptr.hbm [resolvable:$true] %s137_s1 }
  0x25   :  { %119 = dma.hbm_to_vmem [thread:$0]  %s112_s30, 32768, %s114_s21, [#allocation12], %s8398_s4, %s8398_s4, %s8387_s19  }
  0x26   :  { %s8399_s23 = smov [#allocation16]   ;;  %s156_s28 = sshll.u32 %s8720_s15, 4  ;;  %s157_s28 = int_to_ptr.hbm [resolvable:$true] %s156_s28 }
  0x27   :  { %s139_s3 = sshll.u32 %s8399_s23, 4  ;;  %s8729_s24 = smov 4   ;;  %s140_s3 = int_to_ptr.vmem [resolvable:$true] %s139_s3 }
  0x28   :  { %145 = dma.hbm_to_vmem [thread:$0]  %s138_s1, 32768, %s140_s3, [#allocation15], %s8387_s19, %s8387_s19, %s8729_s24  }
  0x29   :  { %s8400_s0 = smov [#allocation17]  }
  0x2a   :  { %s158_s27 = sshll.u32 %s8400_s0, 4  ;;  %s159_s27 = int_to_ptr.vmem [resolvable:$true] %s158_s27 }
  0x2b   :  { %164 = dma.hbm_to_vmem [thread:$0]  %s157_s28, 1024, %s159_s27, [#allocation18], %s8387_s19, %s8387_s19, %s8729_s24  }
  0x2c   :  { %8372 = dma.done.wait [#allocation3], 128  }
  0x2d   :  { %8373 = vsyncadd [#allocation3], 4294967168 }
  0x2e   :  { %8374 = dma.done.wait [#allocation6], 272  }
  0x2f   :  { %8375 = vsyncadd [#allocation6], 4294967024 }
  0x30   :  { %8376 = dma.done.wait [#allocation9], 1040  }
  0x31   :  { %8377 = vsyncadd [#allocation9], 4294966256 }
  0x32   :  { %8378 = dma.done.wait [#allocation12], 34816  }
  0x33   :  { %8379 = vsyncadd [#allocation12], 4294932480 }
  0x34   :  { %8380 = dma.done.wait [#allocation15], 33280  }
  0x35   :  { %8381 = vsyncadd [#allocation15], 4294934016 }
  0x36   :  { %8382 = dma.done.wait [#allocation18], 1024  }
  0x37   :  { %8383 = vsyncadd [#allocation18], 4294966272  ;;  %v7517_v0 = vld [vmem:[#allocation5 + $0x8] sm:$0xff]  ;;  %v7516_v2 = vld [vmem:[#allocation5] sm:$0xff]  ;;  %vm230_vm0 = vcmask 261120   ;;  %v8401_v37 = vmov 128.0  }
  0x38   :  { %v7525_v1 = vld [vmem:[#allocation8 + $0x38] sm:$0xff]  ;;  %240 = vmatpush.bf16.msra.mxu0 %v7517_v0  ;;  %v208_v3 = vld [vmem:[#allocation2] sm:$0xff]  ;;  %v7524_v4 = vld [vmem:[#allocation8 + $0x30] sm:$0xff]  ;;  %8094 = vrcp.f32 %v8401_v37  ;;  %s5309_s11 = sshll.u32 %s8722_s17, 4  ;;  %s5310_s11 = int_to_ptr.hbm [resolvable:$true] %s5309_s11 }
  0x39   :  { %317 = vmatpush.bf16.msra.mxu1 %v7525_v1  ;;  %v213_v5 = vpack.c.bf16 %v208_v3, %v208_v3  ;;  %v7523_v6 = vld [vmem:[#allocation8 + $0x28] sm:$0xff]  ;;  %v7522_v7 = vld [vmem:[#allocation8 + $0x20] sm:$0xff]  ;;  %v7521_v8 = vld [vmem:[#allocation8 + $0x18] sm:$0xff] }
  0x3a   :  { %v7520_v9 = vld [vmem:[#allocation8 + $0x10] sm:$0xff]  ;;  %v7519_v10 = vld [vmem:[#allocation8 + $0x8] sm:$0xff]  ;;  %v7518_v11 = vld [vmem:[#allocation8] sm:$0xff] }
  0x3b   :  { %v7533_v12 = vld [vmem:[#allocation11 + $0x38] sm:$0xff]  ;;  %v7532_v13 = vld [vmem:[#allocation11 + $0x30] sm:$0xff]  ;;  %v7531_v14 = vld [vmem:[#allocation11 + $0x28] sm:$0xff] }
  0x3c   :  { %241 = vmatpush.bf16.msra.mxu0 %v7516_v2  ;;  %400 = vmatpush.bf16.msra.mxu2 %v7533_v12  ;;  %v7530_v15 = vld [vmem:[#allocation11 + $0x20] sm:$0xff]  ;;  %v7529_v16 = vld [vmem:[#allocation11 + $0x18] sm:$0xff]  ;;  %v7528_v17 = vld [vmem:[#allocation11 + $0x10] sm:$0xff] }
  0x3d   :  { %318 = vmatpush.bf16.msra.mxu1 %v7524_v4  ;;  %v8079_v18 = vld [vmem:[#allocation7] ss:$0 sm:$0xff]  ;;  %v7527_v24 = vld [vmem:[#allocation11 + $0x8] sm:$0xff]  ;;  %v7526_v25 = vld [vmem:[#allocation11] sm:$0xff] }
  0x3e   :  { %v8080_v26 = vld [vmem:[#allocation10] ss:$0 sm:$0xff]  ;;  %v8081_v32 = vld [vmem:[%s8711_s6] ss:$0 sm:$0xff]  ;;  %v8545_v38 = vpop.eup %8094  ;;  %v5847_v40 = vld [vmem:[#allocation13 + $0x380] sm:$0xf] }
  0x3f   :  { %5332 = vmatmul.msk.bf16.vlgmr.msra.gmra.mxu0 %vm230_vm0, %v213_v5  ;;  %v8548_v39 = vmul.f32 128.0, %v8545_v38  ;;  %v7654_v41 = vld [vmem:[#allocation13 + $0x3bc] sm:$0xf0]  ;;  %v7646_v42 = vld [vmem:[#allocation13 + $0x384] sm:$0xf]  ;;  %vm423_vm1 = vweird.f32 %v8545_v38 }
  0x40   :  { %401 = vmatpush.bf16.msra.mxu2 %v7532_v13  ;;  %v5848_v43 = vor.u32 %v7654_v41, %v5847_v40  ;;  %v5849_v44 = vld [vmem:[#allocation13 + $0x3c0] sm:$0xf0]  ;;  %v5855_v45 = vld [vmem:[#allocation13 + $0x388] sm:$0xf]  ;;  %v7647_v49 = vld [vmem:[#allocation13 + $0x38c] sm:$0xf] }
  0x41   :  { %319 = vmatpush.bf16.msra.mxu1 %v7523_v6  ;;  %v7655_v46 = vld [vmem:[#allocation13 + $0x3c4] sm:$0xf0]  ;;  %v5852_v47 = vor.u32 %v7646_v42, %v5849_v44  ;;  %v5857_v50 = vld [vmem:[#allocation13 + $0x3c8] sm:$0xf0]  ;;  %v5783_v51 = vld [vmem:[#allocation13 + $0x300] sm:$0xf] }
  0x42   :  { %v5856_v48 = vor.u32 %v7655_v46, %v5855_v45  ;;  %1256 = vmatpush.bf16.msra.mxu3 %v5848_v43  ;;  %v5860_v52 = vor.u32 %v7647_v49, %v5857_v50  ;;  %v7638_v53 = vld [vmem:[#allocation13 + $0x33c] sm:$0xf0]  ;;  %v7630_v54 = vld [vmem:[#allocation13 + $0x304] sm:$0xf]  ;;  %v5791_v58 = vld [vmem:[#allocation13 + $0x308] sm:$0xf] }
  0x43   :  { %v5785_v55 = vld [vmem:[#allocation13 + $0x340] sm:$0xf0]  ;;  %1269 = vmatpush.bf16.msrb.mxu0 %v5852_v47  ;;  %v5784_v56 = vor.u32 %v7638_v53, %v5783_v51  ;;  %v7639_v59 = vld [vmem:[#allocation13 + $0x344] sm:$0xf0]  ;;  %v7631_v60 = vld [vmem:[#allocation13 + $0x30c] sm:$0xf] }
  0x44   :  { %402 = vmatpush.bf16.msra.mxu2 %v7531_v14  ;;  %v5788_v57 = vor.u32 %v7630_v54, %v5785_v55  ;;  %v5792_v61 = vor.u32 %v7639_v59, %v5791_v58  ;;  %v5793_v62 = vld [vmem:[#allocation13 + $0x348] sm:$0xf0]  ;;  %v5719_v63 = vld [vmem:[#allocation13 + $0x280] sm:$0xf]  ;;  %v7614_v2 = vld [vmem:[#allocation13 + $0x284] sm:$0xf] }
  0x45   :  { %320 = vmatpush.bf16.msra.mxu1 %v7522_v7  ;;  %v7622_v0 = vld [vmem:[#allocation13 + $0x2bc] sm:$0xf0]  ;;  %v5796_v1 = vor.u32 %v7631_v60, %v5793_v62  ;;  %v5721_v3 = vld [vmem:[#allocation13 + $0x2c0] sm:$0xf0]  ;;  %v5727_v4 = vld [vmem:[#allocation13 + $0x288] sm:$0xf] }
  0x46   :  { %1257 = vmatpush.bf16.msra.mxu3 %v5784_v56  ;;  %v5720_v5 = vor.u32 %v7622_v0, %v5719_v63  ;;  %v7623_v6 = vld [vmem:[#allocation13 + $0x2c4] sm:$0xf0]  ;;  %v7615_v7 = vld [vmem:[#allocation13 + $0x28c] sm:$0xf]  ;;  %v7606_v12 = vld [vmem:[#allocation13 + $0x23c] sm:$0xf0] }
  0x47   :  { %1270 = vmatpush.bf16.msrb.mxu0 %v5788_v57  ;;  %v7598_v13 = vld [vmem:[#allocation13 + $0x204] sm:$0xf]  ;;  %v7574_v40 = vld [vmem:[#allocation13 + $0x13c] sm:$0xf0]  ;;  %v5535_v44 = vld [vmem:[#allocation13 + $0x108] sm:$0xf] }
  0x48   :  { %403 = vmatpush.bf16.msra.mxu2 %v7530_v15  ;;  %v5657_v15 = vld [vmem:[#allocation13 + $0x240] sm:$0xf0]  ;;  %v7575_v45 = vld [vmem:[#allocation13 + $0x144] sm:$0xf0]  ;;  %v7567_v46 = vld [vmem:[#allocation13 + $0x10c] sm:$0xf] }
  0x49   :  { %321 = vmatpush.bf16.msra.mxu1 %v7521_v8  ;;  %v5729_v8 = vld [vmem:[#allocation13 + $0x2c8] sm:$0xf0]  ;;  %v7566_v41 = vld [vmem:[#allocation13 + $0x104] sm:$0xf]  ;;  %v5536_v51 = vor.u32 %v7575_v45, %v5535_v44  ;;  %v7558_v53 = vld [vmem:[#allocation13 + $0xbc] sm:$0xf0] }
  0x4a   :  { %v5732_v14 = vor.u32 %v7615_v7, %v5729_v8  ;;  %1258 = vmatpush.bf16.msra.mxu3 %v5720_v5  ;;  %v5529_v43 = vld [vmem:[#allocation13 + $0x140] sm:$0xf0]  ;;  %v5537_v47 = vld [vmem:[#allocation13 + $0x148] sm:$0xf0]  ;;  %v5471_v57 = vld [vmem:[#allocation13 + $0x88] sm:$0xf] }
  0x4b   :  { %v5532_v50 = vor.u32 %v7566_v41, %v5529_v43  ;;  %v7550_v54 = vld [vmem:[#allocation13 + $0x84] sm:$0xf]  ;;  %v5540_v55 = vor.u32 %v7567_v46, %v5537_v47  ;;  %v7559_v58 = vld [vmem:[#allocation13 + $0xc4] sm:$0xf0]  ;;  %v7551_v59 = vld [vmem:[#allocation13 + $0x8c] sm:$0xf] }
  0x4c   :  { %404 = vmatpush.bf16.msra.mxu2 %v7529_v16  ;;  %v5663_v16 = vld [vmem:[#allocation13 + $0x208] sm:$0xf]  ;;  %v5465_v56 = vld [vmem:[#allocation13 + $0xc0] sm:$0xf0]  ;;  %v5473_v60 = vld [vmem:[#allocation13 + $0xc8] sm:$0xf0]  ;;  %v5472_v0 = vor.u32 %v7559_v58, %v5471_v57 }
  0x4d   :  { %322 = vmatpush.bf16.msra.mxu1 %v7520_v9  ;;  %v5724_v9 = vor.u32 %v7614_v2, %v5721_v3  ;;  %v5468_v63 = vor.u32 %v7550_v54, %v5465_v56  ;;  %v5476_v2 = vor.u32 %v7551_v59, %v5473_v60  ;;  %v5399_v5 = vld [vmem:[#allocation13] sm:$0xf]  ;;  %v7534_v7 = vld [vmem:[#allocation13 + $0x4] sm:$0xf]  ;;  %v7624_v43 = vld [vmem:[#allocation13 + $0x2cc] sm:$0xf0] }
  0x4e   :  { %v7616_v44 = vld [vmem:[#allocation13 + $0x294] sm:$0xf]  ;;  %v5743_v47 = vld [vmem:[#allocation13 + $0x298] sm:$0xf]  ;;  %v5671_v54 = vld [vmem:[#allocation13 + $0x210] sm:$0xf] }
  0x4f   :  { %1271 = vmatpush.bf16.msrb.mxu0 %v5724_v9  ;;  %v5401_v9 = vld [vmem:[#allocation13 + $0x40] sm:$0xf0]  ;;  %v5737_v46 = vld [vmem:[#allocation13 + $0x2d0] sm:$0xf0]  ;;  %v5679_v59 = vld [vmem:[#allocation13 + $0x218] sm:$0xf] }
  0x50   :  { %405 = vmatpush.bf16.msra.mxu2 %v7528_v17  ;;  %v7607_v17 = vld [vmem:[#allocation13 + $0x244] sm:$0xf0]  ;;  %v7600_v56 = vld [vmem:[#allocation13 + $0x214] sm:$0xf]  ;;  %v7609_v60 = vld [vmem:[#allocation13 + $0x254] sm:$0xf0] }
  0x51   :  { %323 = vmatpush.bf16.msra.mxu1 %v7519_v10  ;;  %v5728_v10 = vor.u32 %v7623_v6, %v5727_v4  ;;  %v7542_v6 = vld [vmem:[#allocation13 + $0x3c] sm:$0xf0]  ;;  %v5673_v58 = vld [vmem:[#allocation13 + $0x250] sm:$0xf0] }
  0x52   :  { %v5400_v8 = vor.u32 %v7542_v6, %v5399_v5  ;;  %v7584_v5 = vld [vmem:[#allocation13 + $0x194] sm:$0xf] }
  0x54   :  { %406 = vmatpush.bf16.msra.mxu2 %v7527_v24  ;;  %v5591_v24 = vld [vmem:[#allocation13 + $0x180] sm:$0xf] }
  0x55   :  { %324 = vmatpush.bf16.msra.mxu1 %v7518_v11  ;;  %v5655_v11 = vld [vmem:[#allocation13 + $0x200] sm:$0xf] }
  0x58   :  { %407 = vmatpush.bf16.msra.mxu2 %v7526_v25  ;;  %v7590_v25 = vld [vmem:[#allocation13 + $0x1bc] sm:$0xf0] }
  0x59   :  { %1282 = vmatpush.bf16.msrb.mxu1 %v5856_v48 }
  0x5c   :  { %1295 = vmatpush.bf16.msrb.mxu2 %v5860_v52  ;;  %v5463_v52 = vld [vmem:[#allocation13 + $0x80] sm:$0xf] }
  0x5d   :  { %1283 = vmatpush.bf16.msrb.mxu1 %v5792_v61  ;;  %v5464_v62 = vor.u32 %v7558_v53, %v5463_v52  ;;  %v5745_v52 = vld [vmem:[#allocation13 + $0x2d8] sm:$0xf0] }
  0x60   :  { %1296 = vmatpush.bf16.msrb.mxu2 %v5796_v1 }
  0x61   :  { %1284 = vmatpush.bf16.msrb.mxu1 %v5728_v10  ;;  %v5407_v10 = vld [vmem:[#allocation13 + $0x8] sm:$0xf] }
  0x64   :  { %1297 = vmatpush.bf16.msrb.mxu2 %v5732_v14  ;;  %v7535_v14 = vld [vmem:[#allocation13 + $0xc] sm:$0xf] }
  0xbc   :  { %v243_v19 = vpop.f32.mrf.mxu0 }
  0xbd   :  { %v244_v20 = vadd.f32 %v8079_v18, %v243_v19  ;;  %v7599_v18 = vld [vmem:[#allocation13 + $0x20c] sm:$0xf] }
  0xbe   :  { %v5665_v19 = vld [vmem:[#allocation13 + $0x248] sm:$0xf0] }
  0xbf   :  { %v247_v21 = vmax.f32 %v244_v20, 0.0  ;;  %v420_v20 = vsub.f32 1.0, %v8548_v39  ;;  %v5527_v39 = vld [vmem:[#allocation13 + $0x100] sm:$0xf] }
  0xc0   :  { %v5528_v49 = vor.u32 %v7574_v40, %v5527_v39  ;;  %v5809_v39 = vld [vmem:[#allocation13 + $0x358] sm:$0xf0] }
  0xc1   :  { %v264_v22 = vpack.c.bf16 %v247_v21, %v247_v21  ;;  %v5656_v21 = vor.u32 %v7606_v12, %v5655_v11  ;;  %v7543_v11 = vld [vmem:[#allocation13 + $0x44] sm:$0xf0]  ;;  %v5404_v12 = vor.u32 %v7534_v7, %v5401_v9  ;;  %v5609_v7 = vld [vmem:[#allocation13 + $0x1d0] sm:$0xf0]  ;;  %v7593_v9 = vld [vmem:[#allocation13 + $0x1d4] sm:$0xf0] }
  0xc3   :  { %325 = vmatmul.bf16.vlgmr.msra.gmra.mxu1 %v264_v22  ;;  %v5660_v22 = vor.u32 %v7598_v13, %v5657_v15  ;;  %1259 = vmatpush.bf16.msra.mxu3 %v5656_v21  ;;  %v5408_v13 = vor.u32 %v7543_v11, %v5407_v10  ;;  %v5409_v15 = vld [vmem:[#allocation13 + $0x48] sm:$0xf0]  ;;  %v5612_v10 = vor.u32 %v7584_v5, %v5609_v7  ;;  %v7650_v5 = vld [vmem:[#allocation13 + $0x3a4] sm:$0xf]  ;;  %v5887_v7 = vld [vmem:[#allocation13 + $0x3a8] sm:$0xf] }
  0xc4   :  { %v245_v23 = vpop.f32.mrf.mxu0 }
  0xc5   :  { %v5664_v23 = vor.u32 %v7607_v17, %v5663_v16  ;;  %1272 = vmatpush.bf16.msrb.mxu0 %v5660_v22  ;;  %v5412_v16 = vor.u32 %v7535_v14, %v5409_v15  ;;  %v7656_v17 = vld [vmem:[#allocation13 + $0x3cc] sm:$0xf0]  ;;  %v5871_v22 = vld [vmem:[#allocation13 + $0x398] sm:$0xf] }
  0xc6   :  { %v5543_v15 = vld [vmem:[#allocation13 + $0x110] sm:$0xf] }
  0xc7   :  { %1285 = vmatpush.bf16.msrb.mxu1 %v5664_v23  ;;  %v7657_v23 = vld [vmem:[#allocation13 + $0x3d4] sm:$0xf0] }
 0x140   :  { %v326_v27 = vpop.f32.mrf.mxu1 }
 0x141   :  { %v327_v28 = vadd.f32 %v8080_v26, %v326_v27  ;;  %v7582_v26 = vld [vmem:[#allocation13 + $0x184] sm:$0xf]  ;;  %v5668_v27 = vor.u32 %v7599_v18, %v5665_v19  ;;  %v7648_v18 = vld [vmem:[#allocation13 + $0x394] sm:$0xf] }
 0x142   :  { %v5865_v19 = vld [vmem:[#allocation13 + $0x3d0] sm:$0xf0] }
 0x143   :  { %v330_v29 = vmax.f32 %v327_v28, 0.0  ;;  %v5593_v28 = vld [vmem:[#allocation13 + $0x1c0] sm:$0xf0]  ;;  %1298 = vmatpush.bf16.msrb.mxu2 %v5668_v27  ;;  %v5868_v21 = vor.u32 %v7648_v18, %v5865_v19  ;;  %v5799_v27 = vld [vmem:[#allocation13 + $0x310] sm:$0xf] }
 0x144   :  { %v5545_v18 = vld [vmem:[#allocation13 + $0x150] sm:$0xf0]  ;;  %v5551_v19 = vld [vmem:[#allocation13 + $0x118] sm:$0xf] }
 0x145   :  { %v347_v30 = vpack.c.bf16 %v330_v29, %v330_v29 }
 0x147   :  { %408 = vmatmul.bf16.vlgmr.msra.gmra.mxu2 %v347_v30  ;;  %v7591_v30 = vld [vmem:[#allocation13 + $0x1c4] sm:$0xf0] }
 0x148   :  { %v328_v31 = vpop.f32.mrf.mxu1 }
 0x149   :  { %v7583_v31 = vld [vmem:[#allocation13 + $0x18c] sm:$0xf] }
 0x1ca   :  { %v409_v33 = vpop.f32.mrf.mxu2 }
 0x1cb   :  { %v410_v34 = vadd.f32 %v8081_v32, %v409_v33  ;;  %v5601_v32 = vld [vmem:[#allocation13 + $0x1c8] sm:$0xf0]  ;;  %v421_v33 = vmul.f32 %v8545_v38, %v420_v20 }
 0x1cc   :  { %v5604_v42 = vor.u32 %v7583_v31, %v5601_v32  ;;  %v7632_v31 = vld [vmem:[#allocation13 + $0x314] sm:$0xf] }
 0x1cd   :  { %v8542_v35 = vadd.f32 %v410_v34, %v330_v29  ;;  %v5599_v29 = vld [vmem:[#allocation13 + $0x188] sm:$0xf]  ;;  %v5592_v34 = vor.u32 %v7590_v25, %v5591_v24  ;;  %v422_v48 = vadd.f32 %v8545_v38, %v421_v33  ;;  %v7649_v24 = vld [vmem:[#allocation13 + $0x39c] sm:$0xf]  ;;  %v5872_v25 = vor.u32 %v7657_v23, %v5871_v22  ;;  %v5801_v32 = vld [vmem:[#allocation13 + $0x350] sm:$0xf0] }
 0x1ce   :  { %v5600_v37 = vor.u32 %v7591_v30, %v5599_v29  ;;  %1299 = vmatpush.bf16.msrb.mxu2 %v5604_v42  ;;  %v5807_v33 = vld [vmem:[#allocation13 + $0x318] sm:$0xf]  ;;  %v5735_v42 = vld [vmem:[#allocation13 + $0x290] sm:$0xf]  ;;  %v7569_v23 = vld [vmem:[#allocation13 + $0x11c] sm:$0xf] }
 0x1cf   :  { %416 = vadd.xlane.f32.xlu0 %v8542_v35  ;;  %1260 = vmatpush.bf16.msra.mxu3 %v5592_v34  ;;  %v8555_v61 = vsel %vm423_vm1, %v8545_v38, %v422_v48  ;;  %v5804_v34 = vor.u32 %v7632_v31, %v5801_v32  ;;  %v5736_v45 = vor.u32 %v7624_v43, %v5735_v42  ;;  %v7625_v48 = vld [vmem:[#allocation13 + $0x2d4] sm:$0xf0]  ;;  %v7536_v42 = vld [vmem:[#allocation13 + $0x14] sm:$0xf] }
 0x1d0   :  { %1286 = vmatpush.bf16.msrb.mxu1 %v5600_v37  ;;  %v7633_v37 = vld [vmem:[#allocation13 + $0x31c] sm:$0xf]  ;;  %v5487_v31 = vld [vmem:[#allocation13 + $0x98] sm:$0xf] }
 0x1d1   :  { %v5812_v41 = vor.u32 %v7633_v37, %v5809_v39  ;;  %v7561_v32 = vld [vmem:[#allocation13 + $0xd4] sm:$0xf0]  ;;  %v5489_v37 = vld [vmem:[#allocation13 + $0xd8] sm:$0xf0] }
 0x1d2   :  { %v411_v36 = vpop.f32.mrf.mxu2  ;;  %1300 = vmatpush.bf16.msrb.mxu2 %v5540_v55  ;;  %v7608_v55 = vld [vmem:[#allocation13 + $0x24c] sm:$0xf0] }
 0x1d3   :  { %v5596_v36 = vor.u32 %v7582_v26, %v5593_v28  ;;  %1261 = vmatpush.bf16.msra.mxu3 %v5528_v49  ;;  %v5873_v26 = vld [vmem:[#allocation13 + $0x3d8] sm:$0xf0]  ;;  %v7640_v28 = vld [vmem:[#allocation13 + $0x34c] sm:$0xf0]  ;;  %v5740_v49 = vor.u32 %v7616_v44, %v5737_v46  ;;  %v5672_v57 = vor.u32 %v7608_v55, %v5671_v54  ;;  %v5417_v44 = vld [vmem:[#allocation13 + $0x50] sm:$0xf0] }
 0x1d4   :  { %1287 = vmatpush.bf16.msrb.mxu1 %v5536_v51  ;;  %v5876_v29 = vor.u32 %v7649_v24, %v5873_v26  ;;  %v5800_v30 = vor.u32 %v7640_v28, %v5799_v27  ;;  %v7617_v51 = vld [vmem:[#allocation13 + $0x29c] sm:$0xf]  ;;  %v5479_v26 = vld [vmem:[#allocation13 + $0x90] sm:$0xf]  ;;  %v7552_v28 = vld [vmem:[#allocation13 + $0x94] sm:$0xf] }
 0x1d5   :  { %1273 = vmatpush.bf16.msrb.mxu0 %v5596_v36  ;;  %v7641_v36 = vld [vmem:[#allocation13 + $0x354] sm:$0xf0]  ;;  %v5748_v53 = vor.u32 %v7617_v51, %v5745_v52  ;;  %v5553_v24 = vld [vmem:[#allocation13 + $0x158] sm:$0xf0]  ;;  %v7560_v27 = vld [vmem:[#allocation13 + $0xcc] sm:$0xf0] }
 0x1d6   :  { %1301 = vmatpush.bf16.msrb.mxu2 %v5476_v2  ;;  %v5808_v40 = vor.u32 %v7641_v36, %v5807_v33  ;;  %v7553_v36 = vld [vmem:[#allocation13 + $0x9c] sm:$0xf]  ;;  %v7545_v46 = vld [vmem:[#allocation13 + $0x54] sm:$0xf0] }
 0x1d7   :  { %1262 = vmatpush.bf16.msra.mxu3 %v5464_v62  ;;  %v5676_v62 = vor.u32 %v7600_v56, %v5673_v58  ;;  %v5492_v39 = vor.u32 %v7553_v36, %v5489_v37 }
 0x1d8   :  { %1288 = vmatpush.bf16.msrb.mxu1 %v5472_v0  ;;  %v7601_v0 = vld [vmem:[#allocation13 + $0x21c] sm:$0xf] }
 0x1d9   :  { %1274 = vmatpush.bf16.msrb.mxu0 %v5532_v50  ;;  %v5744_v50 = vor.u32 %v7625_v48, %v5743_v47  ;;  %v5420_v47 = vor.u32 %v7536_v42, %v5417_v44  ;;  %v5689_v44 = vld [vmem:[#allocation13 + $0x260] sm:$0xf0] }
 0x1da   :  { %1302 = vmatpush.bf16.msrb.mxu2 %v5412_v16  ;;  %v7568_v16 = vld [vmem:[#allocation13 + $0x114] sm:$0xf] }
 0x1db   :  { %1263 = vmatpush.bf16.msra.mxu3 %v5400_v8  ;;  %v5615_v8 = vld [vmem:[#allocation13 + $0x198] sm:$0xf] }
 0x1dc   :  { %1289 = vmatpush.bf16.msrb.mxu1 %v5408_v13  ;;  %v5616_v11 = vor.u32 %v7593_v9, %v5615_v8  ;;  %v5617_v13 = vld [vmem:[#allocation13 + $0x1d8] sm:$0xf0]  ;;  %v7659_v9 = vld [vmem:[#allocation13 + $0x3e4] sm:$0xf0] }
 0x1dd   :  { %1275 = vmatpush.bf16.msrb.mxu0 %v5468_v63  ;;  %v5680_v63 = vor.u32 %v7609_v60, %v5679_v59 }
 0x1de   :  { %1347 = vmatpush.bf16.msra.mxu2 %v5876_v29  ;;  %v5480_v29 = vor.u32 %v7560_v27, %v5479_v26  ;;  %v7626_v26 = vld [vmem:[#allocation13 + $0x2dc] sm:$0xf0] }
 0x1e0   :  { %1334 = vmatpush.bf16.msra.mxu1 %v5872_v25  ;;  %v5556_v25 = vor.u32 %v7569_v23, %v5553_v24 }
 0x1e1   :  { %1276 = vmatpush.bf16.msrb.mxu0 %v5404_v12  ;;  %v7585_v12 = vld [vmem:[#allocation13 + $0x19c] sm:$0xf] }
 0x1e2   :  { %1348 = vmatpush.bf16.msra.mxu2 %v5812_v41  ;;  %v5620_v14 = vor.u32 %v7585_v12, %v5617_v13  ;;  %v7544_v41 = vld [vmem:[#allocation13 + $0x4c] sm:$0xf0] }
 0x1e4   :  { %1335 = vmatpush.bf16.msra.mxu1 %v5808_v40  ;;  %v5415_v40 = vld [vmem:[#allocation13 + $0x10] sm:$0xf] }
 0x1e5   :  { %1321 = vmatpush.bf16.msra.mxu0 %v5868_v21  ;;  %v5548_v21 = vor.u32 %v7568_v16, %v5545_v18  ;;  %v5416_v43 = vor.u32 %v7544_v41, %v5415_v40  ;;  %v5817_v18 = vld [vmem:[#allocation13 + $0x360] sm:$0xf0]  ;;  %v7610_v40 = vld [vmem:[#allocation13 + $0x25c] sm:$0xf0] }
 0x1e6   :  { %1349 = vmatpush.bf16.msra.mxu2 %v5748_v53 }
 0x1e8   :  { %1336 = vmatpush.bf16.msra.mxu1 %v5744_v50  ;;  %v5425_v50 = vld [vmem:[#allocation13 + $0x58] sm:$0xf0] }
 0x1e9   :  { %1322 = vmatpush.bf16.msra.mxu0 %v5804_v34  ;;  %v5488_v34 = vor.u32 %v7561_v32, %v5487_v31  ;;  %v5759_v31 = vld [vmem:[#allocation13 + $0x2a8] sm:$0xf] }
 0x1ea   :  { %v7627_v32 = vld [vmem:[#allocation13 + $0x2e4] sm:$0xf0] }
 0x1eb   :  { %v5760_v41 = vor.u32 %v7627_v32, %v5759_v31  ;;  %v7547_v31 = vld [vmem:[#allocation13 + $0x64] sm:$0xf0]  ;;  %v7539_v32 = vld [vmem:[#allocation13 + $0x2c] sm:$0xf] }
 0x1ec   :  { %1337 = vmatpush.bf16.msra.mxu1 %v5680_v63 }
 0x1ed   :  { %1323 = vmatpush.bf16.msra.mxu0 %v5740_v49  ;;  %v7537_v49 = vld [vmem:[#allocation13 + $0x1c] sm:$0xf] }
 0x1ee   :  { %v5428_v51 = vor.u32 %v7537_v49, %v5425_v50 }
 0x1f0   :  { %1338 = vmatpush.bf16.msra.mxu1 %v5616_v11  ;;  %v5889_v11 = vld [vmem:[#allocation13 + $0x3e8] sm:$0xf0] }
 0x1f1   :  { %1324 = vmatpush.bf16.msra.mxu0 %v5676_v62  ;;  %v8082_v62 = vld [vmem:[%s8712_s7] ss:$0 sm:$0xff] }
 0x1f5   :  { %1325 = vmatpush.bf16.msra.mxu0 %v5612_v10  ;;  %v7651_v10 = vld [vmem:[#allocation13 + $0x3ac] sm:$0xf] }
 0x1f6   :  { %v5892_v16 = vor.u32 %v7651_v10, %v5889_v11  ;;  %v5569_v10 = vld [vmem:[#allocation13 + $0x168] sm:$0xf0] }
 0x1f9   :  { %1326 = vmatpush.bf16.msra.mxu0 %v5548_v21  ;;  %v7635_v21 = vld [vmem:[#allocation13 + $0x32c] sm:$0xf] }
 0x242   :  { %v417_v1 = vpop.xlane.xlu0 %416 }
 0x243   :  { %v425_v3 = vmul.f32 %v8555_v61, %v417_v1  ;;  %v5681_v1 = vld [vmem:[#allocation13 + $0x258] sm:$0xf0] }
 0x244   :  { %v5684_v2 = vor.u32 %v7601_v0, %v5681_v1  ;;  %v8083_v0 = vld [vmem:[%s8713_s8] ss:$0 sm:$0xff] }
 0x245   :  { %v8559_v4 = vsub.f32 %v8542_v35, %v425_v3  ;;  %v5863_v35 = vld [vmem:[#allocation13 + $0x390] sm:$0xf] }
 0x246   :  { %v5864_v20 = vor.u32 %v7656_v17, %v5863_v35  ;;  %v5607_v3 = vld [vmem:[#allocation13 + $0x190] sm:$0xf]  ;;  %1350 = vmatpush.bf16.msra.mxu2 %v5684_v2 }
 0x247   :  { %v427_v38 = vmul.f32 %v8559_v4, %v8559_v4  ;;  %v7576_v35 = vld [vmem:[#allocation13 + $0x14c] sm:$0xf0] }
 0x248   :  { %1308 = vmatpush.bf16.msrb.mxu3 %v5864_v20  ;;  %v5544_v17 = vor.u32 %v7576_v35, %v5543_v15  ;;  %v7577_v20 = vld [vmem:[#allocation13 + $0x154] sm:$0xf0]  ;;  %v5815_v15 = vld [vmem:[#allocation13 + $0x320] sm:$0xf] }
 0x249   :  { %428 = vadd.xlane.f32.xlu0 %v427_v38  ;;  %v7592_v38 = vld [vmem:[#allocation13 + $0x1cc] sm:$0xf0]  ;;  %v5552_v22 = vor.u32 %v7577_v20, %v5551_v19  ;;  %v7642_v35 = vld [vmem:[#allocation13 + $0x35c] sm:$0xf0]  ;;  %v5823_v19 = vld [vmem:[#allocation13 + $0x328] sm:$0xf] }
 0x24a   :  { %v5608_v6 = vor.u32 %v7592_v38, %v5607_v3  ;;  %1351 = vmatpush.bf16.msra.mxu2 %v5620_v14  ;;  %v5879_v3 = vld [vmem:[#allocation13 + $0x3a0] sm:$0xf]  ;;  %v7643_v20 = vld [vmem:[#allocation13 + $0x364] sm:$0xf0]  ;;  %v5816_v23 = vor.u32 %v7642_v35, %v5815_v15 }
 0x24b   :  { %1339 = vmatpush.bf16.msra.mxu1 %v5552_v22  ;;  %v7658_v38 = vld [vmem:[#allocation13 + $0x3dc] sm:$0xf0]  ;;  %v5825_v22 = vld [vmem:[#allocation13 + $0x368] sm:$0xf0]  ;;  %v5824_v27 = vor.u32 %v7643_v20, %v5823_v19  ;;  %v7563_v19 = vld [vmem:[#allocation13 + $0xe4] sm:$0xf0] }
 0x24c   :  { %1309 = vmatpush.bf16.msrb.mxu3 %v5800_v30  ;;  %v5481_v30 = vld [vmem:[#allocation13 + $0xd0] sm:$0xf0]  ;;  %v5880_v13 = vor.u32 %v7658_v38, %v5879_v3  ;;  %v7570_v38 = vld [vmem:[#allocation13 + $0x124] sm:$0xf]  ;;  %v7562_v15 = vld [vmem:[#allocation13 + $0xdc] sm:$0xf0] }
 0x24d   :  { %v5484_v33 = vor.u32 %v7552_v28, %v5481_v30  ;;  %v5828_v28 = vor.u32 %v7635_v21, %v5825_v22  ;;  %v5753_v30 = vld [vmem:[#allocation13 + $0x2e0] sm:$0xf0]  ;;  %v7555_v20 = vld [vmem:[#allocation13 + $0xac] sm:$0xf]  ;;  %v5431_v22 = vld [vmem:[#allocation13 + $0x20] sm:$0xf] }
 0x24e   :  { %1352 = vmatpush.bf16.msra.mxu2 %v5556_v25  ;;  %v5751_v25 = vld [vmem:[#allocation13 + $0x2a0] sm:$0xf]  ;;  %v5505_v21 = vld [vmem:[#allocation13 + $0xe8] sm:$0xf0] }
 0x24f   :  { %1327 = vmatpush.bf16.msra.mxu0 %v5484_v33  ;;  %1340 = vmatpush.bf16.msra.mxu1 %v5488_v34  ;;  %v7619_v33 = vld [vmem:[#allocation13 + $0x2ac] sm:$0xf]  ;;  %v5752_v36 = vor.u32 %v7626_v26, %v5751_v25  ;;  %v7546_v25 = vld [vmem:[#allocation13 + $0x5c] sm:$0xf0]  ;;  %v7538_v26 = vld [vmem:[#allocation13 + $0x24] sm:$0xf] }
 0x250   :  { %1310 = vmatpush.bf16.msrb.mxu3 %v5736_v45  ;;  %v5423_v45 = vld [vmem:[#allocation13 + $0x18] sm:$0xf]  ;;  %v5761_v34 = vld [vmem:[#allocation13 + $0x2e8] sm:$0xf0] }
 0x251   :  { %v5424_v48 = vor.u32 %v7545_v46, %v5423_v45  ;;  %v5764_v42 = vor.u32 %v7619_v33, %v5761_v34  ;;  %v5695_v45 = vld [vmem:[#allocation13 + $0x228] sm:$0xf]  ;;  %v5441_v33 = vld [vmem:[#allocation13 + $0x68] sm:$0xf0]  ;;  %v5895_v34 = vld [vmem:[#allocation13 + $0x3b0] sm:$0xf] }
 0x252   :  { %1353 = vmatpush.bf16.msra.mxu2 %v5492_v39  ;;  %v5687_v39 = vld [vmem:[#allocation13 + $0x220] sm:$0xf]  ;;  %v7611_v46 = vld [vmem:[#allocation13 + $0x264] sm:$0xf0] }
 0x253   :  { %1328 = vmatpush.bf16.msra.mxu0 %v5420_v47  ;;  %1341 = vmatpush.bf16.msra.mxu1 %v5424_v48  ;;  %v7603_v47 = vld [vmem:[#allocation13 + $0x22c] sm:$0xf]  ;;  %v5688_v49 = vor.u32 %v7610_v40, %v5687_v39  ;;  %v5897_v39 = vld [vmem:[#allocation13 + $0x3f0] sm:$0xf0]  ;;  %v5903_v40 = vld [vmem:[#allocation13 + $0x3b8] sm:$0xf] }
 0x254   :  { %1311 = vmatpush.bf16.msrb.mxu3 %v5672_v57  ;;  %v5697_v48 = vld [vmem:[#allocation13 + $0x268] sm:$0xf0] }
 0x256   :  { %1354 = vmatpush.bf16.msra.mxu2 %v5428_v51  ;;  %v5623_v51 = vld [vmem:[#allocation13 + $0x1a0] sm:$0xf] }
 0x258   :  { %1312 = vmatpush.bf16.msrb.mxu3 %v5608_v6  ;;  %v5881_v6 = vld [vmem:[#allocation13 + $0x3e0] sm:$0xf0] }
 0x259   :  { %v5884_v14 = vor.u32 %v7650_v5, %v5881_v6  ;;  %v5561_v5 = vld [vmem:[#allocation13 + $0x160] sm:$0xf0]  ;;  %v5567_v6 = vld [vmem:[#allocation13 + $0x128] sm:$0xf] }
 0x25c   :  { %1313 = vmatpush.bf16.msrb.mxu3 %v5544_v17  ;;  %v7634_v17 = vld [vmem:[#allocation13 + $0x324] sm:$0xf] }
 0x25d   :  { %v5820_v24 = vor.u32 %v7634_v17, %v5817_v18  ;;  %v5497_v17 = vld [vmem:[#allocation13 + $0xe0] sm:$0xf0]  ;;  %v5503_v18 = vld [vmem:[#allocation13 + $0xa8] sm:$0xf] }
 0x260   :  { %1314 = vmatpush.bf16.msrb.mxu3 %v5480_v29  ;;  %v7618_v29 = vld [vmem:[#allocation13 + $0x2a4] sm:$0xf] }
 0x261   :  { %v5756_v37 = vor.u32 %v7618_v29, %v5753_v30  ;;  %v5508_v29 = vor.u32 %v7555_v20, %v5505_v21  ;;  %v5439_v30 = vld [vmem:[#allocation13 + $0x28] sm:$0xf]  ;;  %v5713_v20 = vld [vmem:[#allocation13 + $0x278] sm:$0xf0] }
 0x264   :  { %1315 = vmatpush.bf16.msrb.mxu3 %v5416_v43  ;;  %v7602_v43 = vld [vmem:[#allocation13 + $0x224] sm:$0xf] }
 0x265   :  { %v5692_v50 = vor.u32 %v7602_v43, %v5689_v44  ;;  %v7661_v43 = vld [vmem:[#allocation13 + $0x3f4] sm:$0xf0]  ;;  %v7653_v44 = vld [vmem:[#allocation13 + $0x3bc] sm:$0xf] }
 0x2bc   :  { %v429_v52 = vpop.xlane.xlu0 %428 }
 0x2bd   :  { %v430_v53 = vmul.f32 %v429_v52, %v8555_v61  ;;  %v7594_v52 = vld [vmem:[#allocation13 + $0x1dc] sm:$0xf0] }
 0x2bf   :  { %v431_v54 = vadd.f32 1e-05, %v430_v53  ;;  %v5696_v53 = vor.u32 %v7611_v46, %v5695_v45  ;;  %v5905_v45 = vld [vmem:[#allocation13 + $0x3f8] sm:$0xf0]  ;;  %v5440_v46 = vor.u32 %v7547_v31, %v5439_v30  ;;  %v7597_v30 = vld [vmem:[#allocation13 + $0x1f4] sm:$0xf0] }
 0x2c0   :  { %v7589_v31 = vld [vmem:[#allocation13 + $0x1bc] sm:$0xf] }
 0x2c1   :  { %8096 = vrsqrt.f32 %v431_v54  ;;  %vm438_vm3 = vweird.f32 %v431_v54 }
 0x2c7   :  { %v8097_v55 = vpop.eup %8096 }
 0x2c8   :  { %v433_v56 = vmul.f32 %v8097_v55, %v431_v54  ;;  %vm439_vm2 = vweird.f32 %v8097_v55  ;;  %v5700_v54 = vor.u32 %v7603_v47, %v5697_v48  ;;  %v5444_v47 = vor.u32 %v7539_v32, %v5441_v33  ;;  %v5649_v32 = vld [vmem:[#allocation13 + $0x1f8] sm:$0xf0] }
 0x2c9   :  { %vm440_vm4 = vmor %vm438_vm3, %vm439_vm2 }
 0x2ca   :  { %v434_v57 = vmul.f32 %v8097_v55, %v433_v56  ;;  %v5625_v56 = vld [vmem:[#allocation13 + $0x1e0] sm:$0xf0] }
 0x2cc   :  { %v435_v58 = vmul.f32 0.5, %v434_v57  ;;  %v5631_v57 = vld [vmem:[#allocation13 + $0x1a8] sm:$0xf] }
 0x2ce   :  { %v436_v59 = vsub.f32 1.5, %v435_v58  ;;  %v7595_v58 = vld [vmem:[#allocation13 + $0x1e4] sm:$0xf0] }
 0x2d0   :  { %v437_v60 = vmul.f32 %v8097_v55, %v436_v59  ;;  %v7587_v59 = vld [vmem:[#allocation13 + $0x1ac] sm:$0xf] }
 0x2d2   :  { %v441_v63 = vsel %vm440_vm4, %v8097_v55, %v437_v60  ;;  %v7586_v55 = vld [vmem:[#allocation13 + $0x1a4] sm:$0xf]  ;;  %v5633_v60 = vld [vmem:[#allocation13 + $0x1e8] sm:$0xf0] }
 0x2d3   :  { %v442_v1 = vmul.f32 %v441_v63, %v8559_v4  ;;  %v5888_v4 = vor.u32 %v7659_v9, %v5887_v7  ;;  %v5628_v63 = vor.u32 %v7586_v55, %v5625_v56  ;;  %v5636_v3 = vor.u32 %v7587_v59, %v5633_v60  ;;  %v7579_v7 = vld [vmem:[#allocation13 + $0x164] sm:$0xf0]  ;;  %v7571_v9 = vld [vmem:[#allocation13 + $0x12c] sm:$0xf]  ;;  %v5833_v55 = vld [vmem:[#allocation13 + $0x370] sm:$0xf0] }
 0x2d4   :  { %v5568_v35 = vor.u32 %v7579_v7, %v5567_v6  ;;  %v5839_v56 = vld [vmem:[#allocation13 + $0x338] sm:$0xf]  ;;  %v5841_v59 = vld [vmem:[#allocation13 + $0x378] sm:$0xf0] }
 0x2d5   :  { %v446_v2 = vmul.f32 %v8082_v62, %v442_v1  ;;  %v5624_v62 = vor.u32 %v7594_v52, %v5623_v51  ;;  %v7578_v1 = vld [vmem:[#allocation13 + $0x15c] sm:$0xf0]  ;;  %v7644_v51 = vld [vmem:[#allocation13 + $0x36c] sm:$0xf0]  ;;  %v5904_v52 = vor.u32 %v7661_v43, %v5903_v40  ;;  %v7629_v6 = vld [vmem:[#allocation13 + $0x2f4] sm:$0xf0]  ;;  %v5652_v40 = vor.u32 %v7589_v31, %v5649_v32 }
 0x2d6   :  { %v7621_v7 = vld [vmem:[#allocation13 + $0x2bc] sm:$0xf]  ;;  %v5583_v43 = vld [vmem:[#allocation13 + $0x138] sm:$0xf]  ;;  %v7672_v31 = vld [vmem:[#allocation16 + $0x50] sm:$0xff] }
 0x2d7   :  { %v8571_v8 = vadd.f32 %v8083_v0, %v446_v2  ;;  %v5559_v0 = vld [vmem:[#allocation13 + $0x120] sm:$0xf]  ;;  %v5632_v2 = vor.u32 %v7595_v58, %v5631_v57  ;;  %v7645_v57 = vld [vmem:[#allocation13 + $0x374] sm:$0xf0]  ;;  %v7637_v58 = vld [vmem:[#allocation13 + $0x33c] sm:$0xf] }
 0x2d8   :  { %v5560_v11 = vor.u32 %v7578_v1, %v5559_v0  ;;  %v7628_v0 = vld [vmem:[#allocation13 + $0x2ec] sm:$0xf0]  ;;  %v5840_v1 = vor.u32 %v7645_v57, %v5839_v56  ;;  %v7565_v56 = vld [vmem:[#allocation13 + $0xf4] sm:$0xf0]  ;;  %v7557_v57 = vld [vmem:[#allocation13 + $0xbc] sm:$0xf] }
 0x2d9   :  { %v8575_v12 = vpack.c.bf16 %v8571_v8, %v8571_v8  ;;  %v7680_v32 = vld [vmem:[#allocation16 + $0x90] sm:$0xff] }
 0x2db   :  { %1264 = vmatmul.bf16.vlgmr.msra.gmra.mxu3 %v8575_v12  ;;  %1277 = vmatmul.bf16.vlgmr.msrb.gmra.mxu0 %v8575_v12 }
 0x2dc   :  { %1290 = vmatmul.bf16.vlgmr.msrb.gmra.mxu1 %v8575_v12  ;;  %1303 = vmatmul.bf16.vlgmr.msrb.gmra.mxu2 %v8575_v12 }
 0x2dd   :  { %1360 = vmatpush.bf16.msra.mxu3 %v5880_v13  ;;  %1373 = vmatpush.bf16.msrb.mxu0 %v5884_v14  ;;  %v5564_v13 = vor.u32 %v7570_v38, %v5561_v5  ;;  %v5495_v14 = vld [vmem:[#allocation13 + $0xa0] sm:$0xf]  ;;  %v5769_v38 = vld [vmem:[#allocation13 + $0x2f0] sm:$0xf0]  ;;  %v5775_v5 = vld [vmem:[#allocation13 + $0x2b8] sm:$0xf] }
 0x2de   :  { %1386 = vmatpush.bf16.msrb.mxu1 %v5888_v4  ;;  %1399 = vmatpush.bf16.msrb.mxu2 %v5892_v16  ;;  %v5572_v4 = vor.u32 %v7571_v9, %v5569_v10  ;;  %v7554_v16 = vld [vmem:[#allocation13 + $0xa4] sm:$0xf]  ;;  %v5777_v9 = vld [vmem:[#allocation13 + $0x2f8] sm:$0xf0] }
 0x2e1   :  { %1361 = vmatpush.bf16.msra.mxu3 %v5816_v23  ;;  %1374 = vmatpush.bf16.msrb.mxu0 %v5820_v24  ;;  %v5496_v23 = vor.u32 %v7562_v15, %v5495_v14  ;;  %v5500_v24 = vor.u32 %v7554_v16, %v5497_v17  ;;  %v7612_v14 = vld [vmem:[#allocation13 + $0x26c] sm:$0xf0]  ;;  %v5776_v15 = vor.u32 %v7629_v6, %v5775_v5  ;;  %v5705_v16 = vld [vmem:[#allocation13 + $0x270] sm:$0xf0]  ;;  %v5711_v17 = vld [vmem:[#allocation13 + $0x238] sm:$0xf] }
 0x2e2   :  { %1387 = vmatpush.bf16.msrb.mxu1 %v5824_v27  ;;  %1400 = vmatpush.bf16.msrb.mxu2 %v5828_v28  ;;  %v5433_v27 = vld [vmem:[#allocation13 + $0x60] sm:$0xf0]  ;;  %v5504_v28 = vor.u32 %v7563_v19, %v5503_v18  ;;  %v7613_v18 = vld [vmem:[#allocation13 + $0x274] sm:$0xf0]  ;;  %v7605_v19 = vld [vmem:[#allocation13 + $0x23c] sm:$0xf] }
 0x2e3   :  { %v7549_v5 = vld [vmem:[#allocation13 + $0x74] sm:$0xf0]  ;;  %v7541_v6 = vld [vmem:[#allocation13 + $0x3c] sm:$0xf] }
 0x2e5   :  { %1362 = vmatpush.bf16.msra.mxu3 %v5752_v36  ;;  %1375 = vmatpush.bf16.msrb.mxu0 %v5756_v37  ;;  %v7660_v36 = vld [vmem:[#allocation13 + $0x3ec] sm:$0xf0]  ;;  %v7652_v37 = vld [vmem:[#allocation13 + $0x3b4] sm:$0xf] }
 0x2e6   :  { %1388 = vmatpush.bf16.msrb.mxu1 %v5760_v41  ;;  %1401 = vmatpush.bf16.msrb.mxu2 %v5764_v42  ;;  %v5432_v41 = vor.u32 %v7546_v25, %v5431_v22  ;;  %v5436_v42 = vor.u32 %v7538_v26, %v5433_v27  ;;  %v5896_v48 = vor.u32 %v7660_v36, %v5895_v34  ;;  %v7588_v27 = vld [vmem:[#allocation13 + $0x1b4] sm:$0xf]  ;;  %v5575_v36 = vld [vmem:[#allocation13 + $0x130] sm:$0xf] }
 0x2e7   :  { %v5712_v25 = vor.u32 %v7613_v18, %v5711_v17  ;;  %v5716_v26 = vor.u32 %v7605_v19, %v5713_v20  ;;  %v7684_v17 = vld [vmem:[#allocation16 + $0xb0] sm:$0xff]  ;;  %v7675_v20 = vld [vmem:[#allocation16 + $0x68] sm:$0xff] }
 0x2e8   :  { %v7668_v18 = vld [vmem:[#allocation16 + $0x30] sm:$0xff] }
 0x2e9   :  { %1363 = vmatpush.bf16.msra.mxu3 %v5688_v49  ;;  %1376 = vmatpush.bf16.msrb.mxu0 %v5692_v50  ;;  %v5900_v49 = vor.u32 %v7652_v37, %v5897_v39  ;;  %v5831_v50 = vld [vmem:[#allocation13 + $0x330] sm:$0xf] }
 0x2ea   :  { %1389 = vmatpush.bf16.msrb.mxu1 %v5696_v53  ;;  %1402 = vmatpush.bf16.msrb.mxu2 %v5700_v54  ;;  %v5908_v53 = vor.u32 %v7653_v44, %v5905_v45  ;;  %v7636_v54 = vld [vmem:[#allocation13 + $0x334] sm:$0xf]  ;;  %v5832_v60 = vor.u32 %v7644_v51, %v5831_v50  ;;  %v7580_v37 = vld [vmem:[#allocation13 + $0x16c] sm:$0xf0]  ;;  %v7581_v44 = vld [vmem:[#allocation13 + $0x174] sm:$0xf0] }
 0x2eb   :  { %1316 = vmatmul.bf16.vlgmr.msrb.gmra.mxu3 %v8575_v12  ;;  %1329 = vmatmul.bf16.vlgmr.msra.gmra.mxu0 %v8575_v12  ;;  %v7573_v45 = vld [vmem:[#allocation13 + $0x13c] sm:$0xf]  ;;  %v7564_v50 = vld [vmem:[#allocation13 + $0xec] sm:$0xf0]  ;;  %v5584_v51 = vor.u32 %v7581_v44, %v5583_v43 }
 0x2ec   :  { %1342 = vmatmul.bf16.vlgmr.msra.gmra.mxu1 %v8575_v12  ;;  %1355 = vmatmul.bf16.vlgmr.msra.gmra.mxu2 %v8575_v12  ;;  %v7692_v19 = vld [vmem:[#allocation16 + $0xf0] sm:$0xff]  ;;  %v7709_v43 = vld [vmem:[#allocation16 + $0x178] sm:$0xff] }
 0x2ed   :  { %1364 = vmatpush.bf16.msra.mxu3 %v5624_v62  ;;  %1377 = vmatpush.bf16.msrb.mxu0 %v5628_v63  ;;  %v5836_v62 = vor.u32 %v7636_v54, %v5833_v55  ;;  %v5767_v63 = vld [vmem:[#allocation13 + $0x2b0] sm:$0xf]  ;;  %v5513_v54 = vld [vmem:[#allocation13 + $0xf0] sm:$0xf0]  ;;  %v5519_v55 = vld [vmem:[#allocation13 + $0xb8] sm:$0xf] }
 0x2ee   :  { %1390 = vmatpush.bf16.msrb.mxu1 %v5632_v2  ;;  %1403 = vmatpush.bf16.msrb.mxu2 %v5636_v3  ;;  %v5844_v2 = vor.u32 %v7637_v58, %v5841_v59  ;;  %v7620_v3 = vld [vmem:[#allocation13 + $0x2b4] sm:$0xf]  ;;  %v5768_v10 = vor.u32 %v7628_v0, %v5767_v63  ;;  %v5521_v58 = vld [vmem:[#allocation13 + $0xf8] sm:$0xf0]  ;;  %v7548_v63 = vld [vmem:[#allocation13 + $0x6c] sm:$0xf0]  ;;  %v5520_v0 = vor.u32 %v7565_v56, %v5519_v55 }
 0x2ef   :  { %v7717_v44 = vld [vmem:[#allocation16 + $0x1b8] sm:$0xff]  ;;  %v7699_v55 = vld [vmem:[#allocation16 + $0x128] sm:$0xff] }
 0x2f0   :  { %v7723_v56 = vld [vmem:[#allocation16 + $0x1e8] sm:$0xff] }
 0x2f1   :  { %1365 = vmatpush.bf16.msra.mxu3 %v5560_v11  ;;  %1378 = vmatpush.bf16.msrb.mxu0 %v5564_v13  ;;  %v5772_v11 = vor.u32 %v7620_v3, %v5769_v38  ;;  %v5703_v13 = vld [vmem:[#allocation13 + $0x230] sm:$0xf]  ;;  %v5449_v3 = vld [vmem:[#allocation13 + $0x70] sm:$0xf0]  ;;  %v5455_v38 = vld [vmem:[#allocation13 + $0x38] sm:$0xf] }
 0x2f2   :  { %1391 = vmatpush.bf16.msrb.mxu1 %v5568_v35  ;;  %1404 = vmatpush.bf16.msrb.mxu2 %v5572_v4  ;;  %v5780_v35 = vor.u32 %v7621_v7, %v5777_v9  ;;  %v7604_v4 = vld [vmem:[#allocation13 + $0x234] sm:$0xf]  ;;  %v5704_v21 = vor.u32 %v7612_v14, %v5703_v13  ;;  %v5457_v7 = vld [vmem:[#allocation13 + $0x78] sm:$0xf0] }
 0x2f3   :  { %v5708_v22 = vor.u32 %v7604_v4, %v5705_v16  ;;  %v5460_v13 = vor.u32 %v7541_v6, %v5457_v7  ;;  %v7677_v14 = vld [vmem:[#allocation16 + $0x78] sm:$0xff]  ;;  %v7676_v16 = vld [vmem:[#allocation16 + $0x70] sm:$0xff]  ;;  %v7703_v6 = vld [vmem:[#allocation16 + $0x148] sm:$0xff] }
 0x2f4   :  { %v7693_v4 = vld [vmem:[#allocation16 + $0xf8] sm:$0xff]  ;;  %v7711_v7 = vld [vmem:[#allocation16 + $0x188] sm:$0xff] }
 0x2f5   :  { %1366 = vmatpush.bf16.msra.mxu3 %v5496_v23  ;;  %1379 = vmatpush.bf16.msrb.mxu0 %v5500_v24  ;;  %v5639_v23 = vld [vmem:[#allocation13 + $0x1b0] sm:$0xf] }
 0x2f6   :  { %1392 = vmatpush.bf16.msrb.mxu1 %v5504_v28  ;;  %1405 = vmatpush.bf16.msrb.mxu2 %v5508_v29  ;;  %v7596_v24 = vld [vmem:[#allocation13 + $0x1ec] sm:$0xf0]  ;;  %v5641_v28 = vld [vmem:[#allocation13 + $0x1f0] sm:$0xf0]  ;;  %v5647_v29 = vld [vmem:[#allocation13 + $0x1b8] sm:$0xf] }
 0x2f7   :  { %v5640_v33 = vor.u32 %v7596_v24, %v5639_v23  ;;  %v5644_v34 = vor.u32 %v7588_v27, %v5641_v28  ;;  %v5648_v39 = vor.u32 %v7597_v30, %v5647_v29  ;;  %v7691_v23 = vld [vmem:[#allocation16 + $0xe8] sm:$0xff]  ;;  %v7674_v24 = vld [vmem:[#allocation16 + $0x60] sm:$0xff]  ;;  %v7673_v27 = vld [vmem:[#allocation16 + $0x58] sm:$0xff] }
 0x2f8   :  { %v7681_v28 = vld [vmem:[#allocation16 + $0x98] sm:$0xff] }
 0x2f9   :  { %1367 = vmatpush.bf16.msra.mxu3 %v5432_v41  ;;  %1380 = vmatpush.bf16.msrb.mxu0 %v5436_v42  ;;  %v7572_v41 = vld [vmem:[#allocation13 + $0x134] sm:$0xf]  ;;  %v7665_v29 = vld [vmem:[#allocation16 + $0x18] sm:$0xff] }
 0x2fa   :  { %1393 = vmatpush.bf16.msrb.mxu1 %v5440_v46  ;;  %1406 = vmatpush.bf16.msrb.mxu2 %v5444_v47  ;;  %v5577_v42 = vld [vmem:[#allocation13 + $0x170] sm:$0xf0]  ;;  %v5585_v46 = vld [vmem:[#allocation13 + $0x178] sm:$0xf0]  ;;  %v5576_v47 = vor.u32 %v7580_v37, %v5575_v36  ;;  %v7671_v36 = vld [vmem:[#allocation16 + $0x48] sm:$0xff] }
 0x2fb   :  { %v7689_v30 = vld [vmem:[#allocation16 + $0xd8] sm:$0xff]  ;;  %v7679_v37 = vld [vmem:[#allocation16 + $0x88] sm:$0xff] }
 0x2fc   :  { %1368 = vmatmul.bf16.vlgmr.msra.gmra.mxu3 %v8575_v12  ;;  %1381 = vmatmul.bf16.vlgmr.msrb.gmra.mxu0 %v8575_v12 }
 0x2fd   :  { %1412 = vmatpush.bf16.msrb.mxu3 %v5896_v48  ;;  %1425 = vmatpush.bf16.msra.mxu0 %v5900_v49  ;;  %v5580_v48 = vor.u32 %v7572_v41, %v5577_v42  ;;  %v5511_v49 = vld [vmem:[#allocation13 + $0xb0] sm:$0xf]  ;;  %v7670_v41 = vld [vmem:[#allocation16 + $0x40] sm:$0xff] }
 0x2fe   :  { %1438 = vmatpush.bf16.msra.mxu1 %v5904_v52  ;;  %1451 = vmatpush.bf16.msra.mxu2 %v5908_v53  ;;  %v5588_v52 = vor.u32 %v7573_v45, %v5585_v46  ;;  %v7556_v53 = vld [vmem:[#allocation13 + $0xb4] sm:$0xf]  ;;  %v5512_v59 = vor.u32 %v7564_v50, %v5511_v49  ;;  %v7678_v42 = vld [vmem:[#allocation16 + $0x80] sm:$0xff] }
 0x2ff   :  { %1394 = vmatmul.bf16.vlgmr.msrb.gmra.mxu1 %v8575_v12  ;;  %1407 = vmatmul.bf16.vlgmr.msrb.gmra.mxu2 %v8575_v12  ;;  %v7662_v45 = vld [vmem:[#allocation16] sm:$0xff]  ;;  %v7708_v49 = vld [vmem:[#allocation16 + $0x170] sm:$0xff] }
 0x300   :  { %v7686_v46 = vld [vmem:[#allocation16 + $0xc0] sm:$0xff]  ;;  %v7716_v50 = vld [vmem:[#allocation16 + $0x1b0] sm:$0xff] }
 0x301   :  { %1413 = vmatpush.bf16.msrb.mxu3 %v5832_v60  ;;  %1426 = vmatpush.bf16.msra.mxu0 %v5836_v62  ;;  %v5516_v60 = vor.u32 %v7556_v53, %v5513_v54  ;;  %v5447_v62 = vld [vmem:[#allocation13 + $0x30] sm:$0xf]  ;;  %v7707_v53 = vld [vmem:[#allocation16 + $0x168] sm:$0xff] }
 0x302   :  { %1439 = vmatpush.bf16.msra.mxu1 %v5840_v1  ;;  %1452 = vmatpush.bf16.msra.mxu2 %v5844_v2  ;;  %v5524_v1 = vor.u32 %v7557_v57, %v5521_v58  ;;  %v7540_v2 = vld [vmem:[#allocation13 + $0x34] sm:$0xf]  ;;  %v5448_v9 = vor.u32 %v7548_v63, %v5447_v62  ;;  %v7715_v54 = vld [vmem:[#allocation16 + $0x1a8] sm:$0xff]  ;;  %v7706_v57 = vld [vmem:[#allocation16 + $0x160] sm:$0xff] }
 0x303   :  { %v7714_v58 = vld [vmem:[#allocation16 + $0x1a0] sm:$0xff]  ;;  %v7705_v62 = vld [vmem:[#allocation16 + $0x158] sm:$0xff] }
 0x304   :  { %v7713_v63 = vld [vmem:[#allocation16 + $0x198] sm:$0xff] }
 0x305   :  { %1414 = vmatpush.bf16.msrb.mxu3 %v5768_v10  ;;  %1427 = vmatpush.bf16.msra.mxu0 %v5772_v11  ;;  %v5452_v10 = vor.u32 %v7540_v2, %v5449_v3  ;;  %v5456_v11 = vor.u32 %v7549_v5, %v5455_v38  ;;  %v7704_v2 = vld [vmem:[#allocation16 + $0x150] sm:$0xff] }
 0x306   :  { %1440 = vmatpush.bf16.msra.mxu1 %v5776_v15  ;;  %1453 = vmatpush.bf16.msra.mxu2 %v5780_v35  ;;  %v7685_v15 = vld [vmem:[#allocation16 + $0xb8] sm:$0xff]  ;;  %v7712_v3 = vld [vmem:[#allocation16 + $0x190] sm:$0xff] }
 0x307   :  { %v7669_v35 = vld [vmem:[#allocation16 + $0x38] sm:$0xff]  ;;  %v7696_v38 = vld [vmem:[#allocation16 + $0x110] sm:$0xff] }
 0x308   :  { %v7720_v5 = vld [vmem:[#allocation16 + $0x1d0] sm:$0xff] }
 0x309   :  { %1415 = vmatpush.bf16.msrb.mxu3 %v5704_v21  ;;  %1428 = vmatpush.bf16.msra.mxu0 %v5708_v22  ;;  %v7683_v21 = vld [vmem:[#allocation16 + $0xa8] sm:$0xff] }
 0x30a   :  { %1441 = vmatpush.bf16.msra.mxu1 %v5712_v25  ;;  %1454 = vmatpush.bf16.msra.mxu2 %v5716_v26  ;;  %v7667_v22 = vld [vmem:[#allocation16 + $0x28] sm:$0xff]  ;;  %v7682_v25 = vld [vmem:[#allocation16 + $0xa0] sm:$0xff] }
 0x30b   :  { %v7666_v26 = vld [vmem:[#allocation16 + $0x20] sm:$0xff] }
 0x30d   :  { %1416 = vmatpush.bf16.msrb.mxu3 %v5640_v33  ;;  %1429 = vmatpush.bf16.msra.mxu0 %v5644_v34  ;;  %v7664_v33 = vld [vmem:[#allocation16 + $0x10] sm:$0xff] }
 0x30e   :  { %1442 = vmatpush.bf16.msra.mxu1 %v5648_v39  ;;  %1455 = vmatpush.bf16.msra.mxu2 %v5652_v40  ;;  %v7688_v34 = vld [vmem:[#allocation16 + $0xd0] sm:$0xff]  ;;  %v7663_v39 = vld [vmem:[#allocation16 + $0x8] sm:$0xff] }
 0x30f   :  { %v7687_v40 = vld [vmem:[#allocation16 + $0xc8] sm:$0xff] }
 0x311   :  { %1417 = vmatpush.bf16.msrb.mxu3 %v5576_v47  ;;  %1430 = vmatpush.bf16.msra.mxu0 %v5580_v48  ;;  %v7701_v47 = vld [vmem:[#allocation16 + $0x138] sm:$0xff] }
 0x312   :  { %1443 = vmatpush.bf16.msra.mxu1 %v5584_v51  ;;  %1456 = vmatpush.bf16.msra.mxu2 %v5588_v52  ;;  %v7725_v48 = vld [vmem:[#allocation16 + $0x1f8] sm:$0xff]  ;;  %v7700_v51 = vld [vmem:[#allocation16 + $0x130] sm:$0xff] }
 0x313   :  { %v7724_v52 = vld [vmem:[#allocation16 + $0x1f0] sm:$0xff] }
 0x315   :  { %1418 = vmatpush.bf16.msrb.mxu3 %v5512_v59  ;;  %1431 = vmatpush.bf16.msra.mxu0 %v5516_v60  ;;  %v7698_v59 = vld [vmem:[#allocation16 + $0x120] sm:$0xff] }
 0x316   :  { %1444 = vmatpush.bf16.msra.mxu1 %v5520_v0  ;;  %1457 = vmatpush.bf16.msra.mxu2 %v5524_v1  ;;  %v7722_v60 = vld [vmem:[#allocation16 + $0x1e0] sm:$0xff]  ;;  %v7697_v0 = vld [vmem:[#allocation16 + $0x118] sm:$0xff] }
 0x317   :  { %v7721_v1 = vld [vmem:[#allocation16 + $0x1d8] sm:$0xff] }
 0x319   :  { %1419 = vmatpush.bf16.msrb.mxu3 %v5448_v9  ;;  %1432 = vmatpush.bf16.msra.mxu0 %v5452_v10  ;;  %v7695_v9 = vld [vmem:[#allocation16 + $0x108] sm:$0xff] }
 0x31a   :  { %1445 = vmatpush.bf16.msra.mxu1 %v5456_v11  ;;  %1458 = vmatpush.bf16.msra.mxu2 %v5460_v13  ;;  %v7719_v10 = vld [vmem:[#allocation16 + $0x1c8] sm:$0xff]  ;;  %v7702_v11 = vld [vmem:[#allocation16 + $0x140] sm:$0xff] }
 0x31b   :  { %v7710_v13 = vld [vmem:[#allocation16 + $0x180] sm:$0xff] }
 0x31c   :  { %1420 = vmatmul.bf16.vlgmr.msrb.gmra.mxu3 %v8575_v12  ;;  %1433 = vmatmul.bf16.vlgmr.msra.gmra.mxu0 %v8575_v12 }
 0x31d   :  { %2537 = vmatpush.bf16.msrb.mxu0 %v7677_v14  ;;  %1446 = vmatmul.bf16.vlgmr.msra.gmra.mxu1 %v8575_v12  ;;  %v7694_v14 = vld [vmem:[#allocation16 + $0x100] sm:$0xff] }
 0x31e   :  { %2550 = vmatpush.bf16.msrb.mxu1 %v7685_v15  ;;  %1459 = vmatmul.bf16.vlgmr.msra.gmra.mxu2 %v8575_v12  ;;  %v7690_v12 = vld [vmem:[#allocation16 + $0xe0] sm:$0xff] }
 0x31f   :  { %2524 = vmatpush.bf16.msra.mxu3 %v7669_v35  ;;  %2563 = vmatpush.bf16.msrb.mxu2 %v7693_v4  ;;  %v7718_v15 = vld [vmem:[#allocation16 + $0x1c0] sm:$0xff] }
 0x320   :  { %v8593_v35 = vld [vmem:[#allocation14] sm:$0xff] }
 0x321   :  { %2538 = vmatpush.bf16.msrb.mxu0 %v7676_v16  ;;  %v585_v4 = vperm.slane %v8593_v35, 1  ;;  %v586_v16 = vperm.slane %v8593_v35, 2 }
 0x322   :  { %2551 = vmatpush.bf16.msrb.mxu1 %v7684_v17 }
 0x323   :  { %2525 = vmatpush.bf16.msra.mxu3 %v7668_v18  ;;  %2564 = vmatpush.bf16.msrb.mxu2 %v7692_v19 }
 0x325   :  { %2539 = vmatpush.bf16.msrb.mxu0 %v7675_v20 }
 0x326   :  { %2552 = vmatpush.bf16.msrb.mxu1 %v7683_v21 }
 0x327   :  { %2526 = vmatpush.bf16.msra.mxu3 %v7667_v22  ;;  %2565 = vmatpush.bf16.msrb.mxu2 %v7691_v23  ;;  %v584_v22 = vperm.slane %v8593_v35, 0 }
 0x329   :  { %2540 = vmatpush.bf16.msrb.mxu0 %v7674_v24  ;;  %v587_v24 = vperm.slane %v8593_v35, 3 }
 0x32a   :  { %2553 = vmatpush.bf16.msrb.mxu1 %v7682_v25  ;;  %v7741_v25 = vld [vmem:[#allocation16 + $0x278] sm:$0xff] }
 0x32b   :  { %2527 = vmatpush.bf16.msra.mxu3 %v7666_v26  ;;  %2566 = vmatpush.bf16.msrb.mxu2 %v7690_v12  ;;  %v7749_v12 = vld [vmem:[#allocation16 + $0x2b8] sm:$0xff] }
 0x32d   :  { %2541 = vmatpush.bf16.msrb.mxu0 %v7673_v27 }
 0x32e   :  { %2554 = vmatpush.bf16.msrb.mxu1 %v7681_v28 }
 0x32f   :  { %2528 = vmatpush.bf16.msra.mxu3 %v7665_v29  ;;  %2567 = vmatpush.bf16.msrb.mxu2 %v7689_v30 }
 0x331   :  { %2542 = vmatpush.bf16.msrb.mxu0 %v7672_v31 }
 0x332   :  { %2555 = vmatpush.bf16.msrb.mxu1 %v7680_v32 }
 0x333   :  { %2529 = vmatpush.bf16.msra.mxu3 %v7664_v33  ;;  %2568 = vmatpush.bf16.msrb.mxu2 %v7688_v34  ;;  %v7740_v33 = vld [vmem:[#allocation16 + $0x270] sm:$0xff] }
 0x335   :  { %2543 = vmatpush.bf16.msrb.mxu0 %v7671_v36 }
 0x336   :  { %2556 = vmatpush.bf16.msrb.mxu1 %v7679_v37  ;;  %v7748_v37 = vld [vmem:[#allocation16 + $0x2b0] sm:$0xff] }
 0x337   :  { %2530 = vmatpush.bf16.msra.mxu3 %v7663_v39  ;;  %2569 = vmatpush.bf16.msrb.mxu2 %v7687_v40  ;;  %v7733_v40 = vld [vmem:[#allocation16 + $0x238] sm:$0xff] }
 0x339   :  { %2544 = vmatpush.bf16.msrb.mxu0 %v7670_v41 }
 0x33a   :  { %2557 = vmatpush.bf16.msrb.mxu1 %v7678_v42  ;;  %v7757_v42 = vld [vmem:[#allocation16 + $0x2f8] sm:$0xff] }
 0x33b   :  { %2531 = vmatpush.bf16.msra.mxu3 %v7662_v45  ;;  %2570 = vmatpush.bf16.msrb.mxu2 %v7686_v46  ;;  %v7747_v45 = vld [vmem:[#allocation16 + $0x2a8] sm:$0xff]  ;;  %v589_v46 = vperm.slane %v8593_v35, 5 }
 0x33d   :  { %2589 = vmatpush.bf16.msra.mxu0 %v7709_v43 }
 0x33e   :  { %2602 = vmatpush.bf16.msra.mxu1 %v7717_v44  ;;  %v7739_v44 = vld [vmem:[#allocation16 + $0x268] sm:$0xff] }
 0x33f   :  { %2576 = vmatpush.bf16.msrb.mxu3 %v7701_v47  ;;  %2615 = vmatpush.bf16.msra.mxu2 %v7725_v48  ;;  %v590_v48 = vperm.slane %v8593_v35, 6 }
 0x341   :  { %2590 = vmatpush.bf16.msra.mxu0 %v7708_v49  ;;  %v7732_v49 = vld [vmem:[#allocation16 + $0x230] sm:$0xff] }
 0x342   :  { %2603 = vmatpush.bf16.msra.mxu1 %v7716_v50 }
 0x343   :  { %2577 = vmatpush.bf16.msrb.mxu3 %v7700_v51  ;;  %2616 = vmatpush.bf16.msra.mxu2 %v7724_v52  ;;  %v7756_v51 = vld [vmem:[#allocation16 + $0x2f0] sm:$0xff] }
 0x345   :  { %2591 = vmatpush.bf16.msra.mxu0 %v7707_v53  ;;  %v7738_v53 = vld [vmem:[#allocation16 + $0x260] sm:$0xff] }
 0x346   :  { %2604 = vmatpush.bf16.msra.mxu1 %v7715_v54 }
 0x347   :  { %2578 = vmatpush.bf16.msrb.mxu3 %v7699_v55  ;;  %2617 = vmatpush.bf16.msra.mxu2 %v7723_v56  ;;  %v7746_v56 = vld [vmem:[#allocation16 + $0x2a0] sm:$0xff] }
 0x349   :  { %2592 = vmatpush.bf16.msra.mxu0 %v7706_v57 }
 0x34a   :  { %2605 = vmatpush.bf16.msra.mxu1 %v7714_v58  ;;  %v7731_v58 = vld [vmem:[#allocation16 + $0x228] sm:$0xff] }
 0x34b   :  { %2579 = vmatpush.bf16.msrb.mxu3 %v7698_v59  ;;  %2618 = vmatpush.bf16.msra.mxu2 %v7722_v60  ;;  %v7755_v60 = vld [vmem:[#allocation16 + $0x2e8] sm:$0xff] }
 0x34d   :  { %2593 = vmatpush.bf16.msra.mxu0 %v7705_v62  ;;  %v588_v62 = vperm.slane %v8593_v35, 4 }
 0x34e   :  { %2606 = vmatpush.bf16.msra.mxu1 %v7713_v63 }
 0x34f   :  { %2580 = vmatpush.bf16.msrb.mxu3 %v7697_v0  ;;  %2619 = vmatpush.bf16.msra.mxu2 %v7721_v1  ;;  %v591_v0 = vperm.slane %v8593_v35, 7  ;;  %v7737_v1 = vld [vmem:[#allocation16 + $0x258] sm:$0xff] }
 0x351   :  { %2594 = vmatpush.bf16.msra.mxu0 %v7704_v2 }
 0x352   :  { %2607 = vmatpush.bf16.msra.mxu1 %v7712_v3  ;;  %v7745_v3 = vld [vmem:[#allocation16 + $0x298] sm:$0xff] }
 0x353   :  { %2581 = vmatpush.bf16.msrb.mxu3 %v7696_v38  ;;  %2620 = vmatpush.bf16.msra.mxu2 %v7720_v5 }
 0x355   :  { %2595 = vmatpush.bf16.msra.mxu0 %v7703_v6  ;;  %v7730_v6 = vld [vmem:[#allocation16 + $0x220] sm:$0xff] }
 0x356   :  { %2608 = vmatpush.bf16.msra.mxu1 %v7711_v7 }
 0x357   :  { %2582 = vmatpush.bf16.msrb.mxu3 %v7695_v9  ;;  %2621 = vmatpush.bf16.msra.mxu2 %v7719_v10  ;;  %v7754_v10 = vld [vmem:[#allocation16 + $0x2e0] sm:$0xff] }
 0x358   :  { %v1278_v17 = vpop.f32.mrf.mxu0 }
 0x359   :  { %2596 = vmatpush.bf16.msra.mxu0 %v7702_v11  ;;  %v1279_v18 = vadd.f32 %v1278_v17, %v585_v4  ;;  %v1291_v19 = vpop.f32.mrf.mxu1  ;;  %v7744_v4 = vld [vmem:[#allocation16 + $0x290] sm:$0xff]  ;;  %v7729_v17 = vld [vmem:[#allocation16 + $0x218] sm:$0xff] }
 0x35a   :  { %2609 = vmatpush.bf16.msra.mxu1 %v7710_v13  ;;  %v1292_v20 = vadd.f32 %v1291_v19, %v586_v16  ;;  %v7753_v19 = vld [vmem:[#allocation16 + $0x2d8] sm:$0xff] }
 0x35b   :  { %2583 = vmatpush.bf16.msrb.mxu3 %v7694_v14  ;;  %2622 = vmatpush.bf16.msra.mxu2 %v7718_v15  ;;  %v1465_v21 = vmax.f32 %v1279_v18, 0.0  ;;  %v7736_v14 = vld [vmem:[#allocation16 + $0x250] sm:$0xff] }
 0x35c   :  { %v1466_v23 = vmax.f32 %v1292_v20, 0.0 }
 0x35d   :  { %v1737_v26 = vpack.c.bf16 %v1465_v21, %v1465_v21  ;;  %v7735_v21 = vld [vmem:[#allocation16 + $0x248] sm:$0xff] }
 0x35e   :  { %v1738_v27 = vpack.c.bf16 %v1466_v23, %v1466_v23  ;;  %v1265_v28 = vpop.f32.mrf.mxu3  ;;  %v7743_v23 = vld [vmem:[#allocation16 + $0x288] sm:$0xff] }
 0x35f   :  { %v1266_v29 = vadd.f32 %v1265_v28, %v584_v22  ;;  %v1304_v30 = vpop.f32.mrf.mxu2  ;;  %2545 = vmatmul.bf16.vlgmr.msrb.gmra.mxu0 %v1737_v26  ;;  %v8603_v22 = vld [vmem:[#allocation14 + $0x8] sm:$0xff] }
 0x360   :  { %v1305_v31 = vadd.f32 %v1304_v30, %v587_v24  ;;  %2558 = vmatmul.bf16.vlgmr.msrb.gmra.mxu1 %v1738_v27  ;;  %2641 = vmatpush.bf16.msrb.mxu0 %v7741_v25  ;;  %v1280_v32 = vpop.f32.mrf.mxu0  ;;  %v7728_v25 = vld [vmem:[#allocation16 + $0x210] sm:$0xff]  ;;  %v594_v28 = vperm.slane %v8603_v22, 2  ;;  %v7742_v30 = vld [vmem:[#allocation16 + $0x280] sm:$0xff] }
 0x361   :  { %v1464_v34 = vmax.f32 %v1266_v29, 0.0  ;;  %2654 = vmatpush.bf16.msrb.mxu1 %v7749_v12  ;;  %v1293_v36 = vpop.f32.mrf.mxu1  ;;  %v593_v12 = vperm.slane %v8603_v22, 1  ;;  %v7752_v27 = vld [vmem:[#allocation16 + $0x2d0] sm:$0xff]  ;;  %v7734_v29 = vld [vmem:[#allocation16 + $0x240] sm:$0xff] }
 0x362   :  { %v1467_v39 = vmax.f32 %v1305_v31, 0.0  ;;  %v7773_v31 = vld [vmem:[#allocation16 + $0x378] sm:$0xff] }
 0x363   :  { %v1736_v41 = vpack.c.bf16 %v1464_v34, %v1464_v34  ;;  %v7727_v34 = vld [vmem:[#allocation16 + $0x208] sm:$0xff] }
 0x364   :  { %v1739_v43 = vpack.c.bf16 %v1467_v39, %v1467_v39  ;;  %2642 = vmatpush.bf16.msrb.mxu0 %v7740_v33  ;;  %v7781_v33 = vld [vmem:[#allocation16 + $0x3b8] sm:$0xff]  ;;  %v7751_v39 = vld [vmem:[#allocation16 + $0x2c8] sm:$0xff] }
 0x365   :  { %2655 = vmatpush.bf16.msrb.mxu1 %v7748_v37  ;;  %2532 = vmatmul.bf16.vlgmr.msra.gmra.mxu3 %v1736_v41 }
 0x366   :  { %2571 = vmatmul.bf16.vlgmr.msrb.gmra.mxu2 %v1739_v43  ;;  %2628 = vmatpush.bf16.msra.mxu3 %v7733_v40  ;;  %v1267_v47 = vpop.f32.mrf.mxu3 }
 0x367   :  { %2667 = vmatpush.bf16.msrb.mxu2 %v7757_v42  ;;  %v1306_v50 = vpop.f32.mrf.mxu2  ;;  %v592_v42 = vperm.slane %v8603_v22, 0  ;;  %v7780_v47 = vld [vmem:[#allocation16 + $0x3b0] sm:$0xff] }
 0x368   :  { %2643 = vmatpush.bf16.msrb.mxu0 %v7739_v44  ;;  %v1330_v52 = vpop.f32.mrf.mxu0  ;;  %v595_v44 = vperm.slane %v8603_v22, 3 }
 0x369   :  { %2656 = vmatpush.bf16.msrb.mxu1 %v7747_v45  ;;  %v1331_v54 = vadd.f32 %v1330_v52, %v589_v46  ;;  %v1343_v55 = vpop.f32.mrf.mxu1  ;;  %v7772_v45 = vld [vmem:[#allocation16 + $0x370] sm:$0xff]  ;;  %v7765_v52 = vld [vmem:[#allocation16 + $0x338] sm:$0xff] }
 0x36a   :  { %v1344_v57 = vadd.f32 %v1343_v55, %v590_v48  ;;  %2629 = vmatpush.bf16.msra.mxu3 %v7732_v49  ;;  %v7726_v48 = vld [vmem:[#allocation16 + $0x200] sm:$0xff]  ;;  %v7789_v55 = vld [vmem:[#allocation16 + $0x3f8] sm:$0xff] }
 0x36b   :  { %v1469_v59 = vmax.f32 %v1331_v54, 0.0  ;;  %2668 = vmatpush.bf16.msrb.mxu2 %v7756_v51  ;;  %v7750_v51 = vld [vmem:[#allocation16 + $0x2c0] sm:$0xff] }
 0x36c   :  { %v1470_v63 = vmax.f32 %v1344_v57, 0.0  ;;  %2644 = vmatpush.bf16.msrb.mxu0 %v7738_v53 }
 0x36d   :  { %v1741_v2 = vpack.c.bf16 %v1469_v59, %v1469_v59  ;;  %2657 = vmatpush.bf16.msrb.mxu1 %v7746_v56 }
 0x36e   :  { %v1742_v38 = vpack.c.bf16 %v1470_v63, %v1470_v63  ;;  %2630 = vmatpush.bf16.msra.mxu3 %v7731_v58  ;;  %v1317_v5 = vpop.f32.mrf.mxu3  ;;  %v7771_v58 = vld [vmem:[#allocation16 + $0x368] sm:$0xff] }
 0x36f   :  { %2669 = vmatpush.bf16.msrb.mxu2 %v7755_v60  ;;  %v1318_v7 = vadd.f32 %v1317_v5, %v588_v62  ;;  %v1356_v9 = vpop.f32.mrf.mxu2  ;;  %2597 = vmatmul.bf16.vlgmr.msra.gmra.mxu0 %v1741_v2  ;;  %v7779_v62 = vld [vmem:[#allocation16 + $0x3a8] sm:$0xff]  ;;  %v7788_v2 = vld [vmem:[#allocation16 + $0x3f0] sm:$0xff]  ;;  %v7778_v5 = vld [vmem:[#allocation16 + $0x3a0] sm:$0xff] }
 0x370   :  { %v1357_v11 = vadd.f32 %v1356_v9, %v591_v0  ;;  %2610 = vmatmul.bf16.vlgmr.msra.gmra.mxu1 %v1742_v38  ;;  %2645 = vmatpush.bf16.msrb.mxu0 %v7737_v1  ;;  %v1332_v13 = vpop.f32.mrf.mxu0  ;;  %v7764_v0 = vld [vmem:[#allocation16 + $0x330] sm:$0xff]  ;;  %v7770_v38 = vld [vmem:[#allocation16 + $0x360] sm:$0xff] }
 0x371   :  { %v1468_v15 = vmax.f32 %v1318_v7, 0.0  ;;  %2658 = vmatpush.bf16.msrb.mxu1 %v7745_v3  ;;  %v1345_v35 = vpop.f32.mrf.mxu1  ;;  %v7763_v7 = vld [vmem:[#allocation16 + $0x328] sm:$0xff]  ;;  %v7777_v13 = vld [vmem:[#allocation16 + $0x398] sm:$0xff] }
 0x372   :  { %v1471_v16 = vmax.f32 %v1357_v11, 0.0  ;;  %2631 = vmatpush.bf16.msra.mxu3 %v7730_v6  ;;  %v7769_v11 = vld [vmem:[#allocation16 + $0x358] sm:$0xff]  ;;  %v7768_v35 = vld [vmem:[#allocation16 + $0x350] sm:$0xff] }
 0x373   :  { %v1740_v18 = vpack.c.bf16 %v1468_v15, %v1468_v15  ;;  %2670 = vmatpush.bf16.msrb.mxu2 %v7754_v10  ;;  %v7787_v10 = vld [vmem:[#allocation16 + $0x3e8] sm:$0xff]  ;;  %v7786_v15 = vld [vmem:[#allocation16 + $0x3e0] sm:$0xff] }
 0x374   :  { %v1743_v20 = vpack.c.bf16 %v1471_v16, %v1471_v16  ;;  %2646 = vmatpush.bf16.msrb.mxu0 %v7736_v14  ;;  %v7762_v14 = vld [vmem:[#allocation16 + $0x320] sm:$0xff]  ;;  %v7761_v16 = vld [vmem:[#allocation16 + $0x318] sm:$0xff] }
 0x375   :  { %2659 = vmatpush.bf16.msrb.mxu1 %v7744_v4  ;;  %2584 = vmatmul.bf16.vlgmr.msrb.gmra.mxu3 %v1740_v18  ;;  %v7776_v4 = vld [vmem:[#allocation16 + $0x390] sm:$0xff]  ;;  %v7767_v18 = vld [vmem:[#allocation16 + $0x348] sm:$0xff] }
 0x376   :  { %2623 = vmatmul.bf16.vlgmr.msra.gmra.mxu2 %v1743_v20  ;;  %2632 = vmatpush.bf16.msra.mxu3 %v7729_v17  ;;  %v1319_v24 = vpop.f32.mrf.mxu3  ;;  %v7785_v17 = vld [vmem:[#allocation16 + $0x3d8] sm:$0xff]  ;;  %v597_v20 = vperm.slane %v8603_v22, 5 }
 0x377   :  { %2671 = vmatpush.bf16.msrb.mxu2 %v7753_v19  ;;  %v1358_v26 = vpop.f32.mrf.mxu2  ;;  %v7775_v19 = vld [vmem:[#allocation16 + $0x388] sm:$0xff]  ;;  %v7784_v24 = vld [vmem:[#allocation16 + $0x3d0] sm:$0xff] }
 0x378   :  { %2647 = vmatpush.bf16.msrb.mxu0 %v7735_v21  ;;  %v7760_v21 = vld [vmem:[#allocation16 + $0x310] sm:$0xff] }
 0x379   :  { %2660 = vmatpush.bf16.msrb.mxu1 %v7743_v23  ;;  %v1382_v32 = vpop.f32.mrf.mxu0  ;;  %v598_v23 = vperm.slane %v8603_v22, 6 }
 0x37a   :  { %2633 = vmatpush.bf16.msra.mxu3 %v7728_v25  ;;  %v1383_v36 = vadd.f32 %v1382_v32, %v593_v12  ;;  %v7766_v25 = vld [vmem:[#allocation16 + $0x340] sm:$0xff] }
 0x37b   :  { %2672 = vmatpush.bf16.msrb.mxu2 %v7752_v27  ;;  %v7774_v12 = vld [vmem:[#allocation16 + $0x380] sm:$0xff] }
 0x37c   :  { %v1395_v37 = vpop.f32.mrf.mxu1  ;;  %2648 = vmatpush.bf16.msrb.mxu0 %v7734_v29  ;;  %v1473_v41 = vmax.f32 %v1383_v36, 0.0  ;;  %v7759_v29 = vld [vmem:[#allocation16 + $0x308] sm:$0xff]  ;;  %v599_v36 = vperm.slane %v8603_v22, 7 }
 0x37d   :  { %v1396_v40 = vadd.f32 %v1395_v37, %v594_v28  ;;  %2661 = vmatpush.bf16.msrb.mxu1 %v7742_v30 }
 0x37e   :  { %2634 = vmatpush.bf16.msra.mxu3 %v7727_v34  ;;  %v1745_v46 = vpack.c.bf16 %v1473_v41, %v1473_v41 }
 0x37f   :  { %v1474_v43 = vmax.f32 %v1396_v40, 0.0  ;;  %2673 = vmatpush.bf16.msrb.mxu2 %v7751_v39  ;;  %v1369_v50 = vpop.f32.mrf.mxu3  ;;  %v7758_v39 = vld [vmem:[#allocation16 + $0x300] sm:$0xff] }
 0x380   :  { %2693 = vmatpush.bf16.msra.mxu0 %v7773_v31  ;;  %v1370_v53 = vadd.f32 %v1369_v50, %v592_v42  ;;  %v7783_v31 = vld [vmem:[#allocation16 + $0x3c8] sm:$0xff]  ;;  %v7782_v42 = vld [vmem:[#allocation16 + $0x3c0] sm:$0xff] }
 0x381   :  { %2706 = vmatpush.bf16.msra.mxu1 %v7781_v33  ;;  %v1746_v49 = vpack.c.bf16 %v1474_v43, %v1474_v43  ;;  %2649 = vmatmul.bf16.vlgmr.msrb.gmra.mxu0 %v1745_v46  ;;  %v1384_v57 = vpop.f32.mrf.mxu0  ;;  %v596_v33 = vperm.slane %v8603_v22, 4 }
 0x382   :  { %v1408_v54 = vpop.f32.mrf.mxu2  ;;  %v1472_v59 = vmax.f32 %v1370_v53, 0.0  ;;  %2635 = vmatpush.bf16.msra.mxu3 %v7726_v48 }
 0x383   :  { %v1409_v56 = vadd.f32 %v1408_v54, %v595_v44  ;;  %2662 = vmatmul.bf16.vlgmr.msrb.gmra.mxu1 %v1746_v49  ;;  %2674 = vmatpush.bf16.msrb.mxu2 %v7750_v51 }
 0x384   :  { %2694 = vmatpush.bf16.msra.mxu0 %v7772_v45  ;;  %v1397_v60 = vpop.f32.mrf.mxu1  ;;  %v1744_v1 = vpack.c.bf16 %v1472_v59, %v1472_v59 }
 0x385   :  { %2707 = vmatpush.bf16.msra.mxu1 %v7780_v47  ;;  %v1475_v63 = vmax.f32 %v1409_v56, 0.0 }
 0x386   :  { %2680 = vmatpush.bf16.msrb.mxu3 %v7765_v52 }
 0x387   :  { %2719 = vmatpush.bf16.msra.mxu2 %v7789_v55  ;;  %v1747_v3 = vpack.c.bf16 %v1475_v63, %v1475_v63  ;;  %2636 = vmatmul.bf16.vlgmr.msra.gmra.mxu3 %v1744_v1  ;;  %v1371_v6 = vpop.f32.mrf.mxu3 }
 0x388   :  { %2695 = vmatpush.bf16.msra.mxu0 %v7771_v58 }
 0x389   :  { %2708 = vmatpush.bf16.msra.mxu1 %v7779_v62  ;;  %2675 = vmatmul.bf16.vlgmr.msrb.gmra.mxu2 %v1747_v3 }
 0x38a   :  { %2681 = vmatpush.bf16.msrb.mxu3 %v7764_v0  ;;  %v1410_v9 = vpop.f32.mrf.mxu2 }
 0x38b   :  { %2720 = vmatpush.bf16.msra.mxu2 %v7788_v2 }
 0x38c   :  { %2696 = vmatpush.bf16.msra.mxu0 %v7770_v38  ;;  %v8084_v38 = vld [vmem:[%s8717_s12] ss:$0 sm:$0xff] }
 0x38d   :  { %2709 = vmatpush.bf16.msra.mxu1 %v7778_v5 }
 0x38e   :  { %2682 = vmatpush.bf16.msrb.mxu3 %v7763_v7 }
 0x38f   :  { %2721 = vmatpush.bf16.msra.mxu2 %v7787_v10 }
 0x390   :  { %2697 = vmatpush.bf16.msra.mxu0 %v7769_v11 }
 0x391   :  { %2710 = vmatpush.bf16.msra.mxu1 %v7777_v13 }
 0x392   :  { %2683 = vmatpush.bf16.msrb.mxu3 %v7762_v14 }
 0x393   :  { %2722 = vmatpush.bf16.msra.mxu2 %v7786_v15 }
 0x394   :  { %2698 = vmatpush.bf16.msra.mxu0 %v7768_v35 }
 0x395   :  { %2711 = vmatpush.bf16.msra.mxu1 %v7776_v4 }
 0x396   :  { %2684 = vmatpush.bf16.msrb.mxu3 %v7761_v16 }
 0x397   :  { %2723 = vmatpush.bf16.msra.mxu2 %v7785_v17 }
 0x398   :  { %2699 = vmatpush.bf16.msra.mxu0 %v7767_v18 }
 0x399   :  { %v1434_v26 = vpop.f32.mrf.mxu0  ;;  %2712 = vmatpush.bf16.msra.mxu1 %v7775_v19 }
 0x39a   :  { %v1435_v27 = vadd.f32 %v1434_v26, %v597_v20  ;;  %v1447_v28 = vpop.f32.mrf.mxu1  ;;  %2685 = vmatpush.bf16.msrb.mxu3 %v7760_v21 }
 0x39b   :  { %v1448_v30 = vadd.f32 %v1447_v28, %v598_v23  ;;  %2724 = vmatpush.bf16.msra.mxu2 %v7784_v24 }
 0x39c   :  { %v1477_v32 = vmax.f32 %v1435_v27, 0.0  ;;  %2700 = vmatpush.bf16.msra.mxu0 %v7766_v25 }
 0x39d   :  { %v1478_v34 = vmax.f32 %v1448_v30, 0.0  ;;  %2713 = vmatpush.bf16.msra.mxu1 %v7774_v12 }
 0x39e   :  { %v1749_v37 = vpack.c.bf16 %v1477_v32, %v1477_v32  ;;  %2686 = vmatpush.bf16.msrb.mxu3 %v7759_v29 }
 0x39f   :  { %v1750_v40 = vpack.c.bf16 %v1478_v34, %v1478_v34  ;;  %v1421_v41 = vpop.f32.mrf.mxu3  ;;  %2725 = vmatpush.bf16.msra.mxu2 %v7783_v31 }
 0x3a0   :  { %v1422_v43 = vadd.f32 %v1421_v41, %v596_v33  ;;  %2701 = vmatmul.bf16.vlgmr.msra.gmra.mxu0 %v1749_v37 }
 0x3a1   :  { %v1460_v44 = vpop.f32.mrf.mxu2  ;;  %2714 = vmatmul.bf16.vlgmr.msra.gmra.mxu1 %v1750_v40  ;;  %v1436_v46 = vpop.f32.mrf.mxu0 }
 0x3a2   :  { %v1461_v45 = vadd.f32 %v1460_v44, %v599_v36  ;;  %v1476_v47 = vmax.f32 %v1422_v43, 0.0  ;;  %v1449_v48 = vpop.f32.mrf.mxu1  ;;  %2687 = vmatpush.bf16.msrb.mxu3 %v7758_v39 }
 0x3a3   :  { %2726 = vmatpush.bf16.msra.mxu2 %v7782_v42  ;;  %v7797_v42 = vld [vmem:[#allocation11 + $0x78] sm:$0xff]  ;;  %v7795_v48 = vld [vmem:[#allocation11 + $0x68] sm:$0xff] }
 0x3a4   :  { %v1479_v49 = vmax.f32 %v1461_v45, 0.0  ;;  %v1748_v50 = vpack.c.bf16 %v1476_v47, %v1476_v47  ;;  %v7796_v47 = vld [vmem:[#allocation11 + $0x70] sm:$0xff] }
 0x3a6   :  { %v1751_v22 = vpack.c.bf16 %v1479_v49, %v1479_v49  ;;  %2688 = vmatmul.bf16.vlgmr.msrb.gmra.mxu3 %v1748_v50  ;;  %v7794_v49 = vld [vmem:[#allocation11 + $0x60] sm:$0xff]  ;;  %v7793_v50 = vld [vmem:[#allocation11 + $0x58] sm:$0xff] }
 0x3a7   :  { %v1423_v51 = vpop.f32.mrf.mxu3  ;;  %2834 = vmatpush.bf16.msra.mxu3 %v7797_v42  ;;  %v7887_v42 = vld [vmem:[#allocation13 + $0x6c4] sm:$0xf0] }
 0x3a8   :  { %2727 = vmatmul.bf16.vlgmr.msra.gmra.mxu2 %v1751_v22  ;;  %v7792_v22 = vld [vmem:[#allocation11 + $0x50] sm:$0xff]  ;;  %v7790_v51 = vld [vmem:[#allocation11 + $0x40] sm:$0xff] }
 0x3a9   :  { %v1462_v52 = vpop.f32.mrf.mxu2 }
 0x3ab   :  { %2835 = vmatpush.bf16.msra.mxu3 %v7796_v47  ;;  %v6714_v47 = vld [vmem:[#allocation13 + $0x600] sm:$0xf] }
 0x3af   :  { %2836 = vmatpush.bf16.msra.mxu3 %v7795_v48  ;;  %v7870_v48 = vld [vmem:[#allocation13 + $0x63c] sm:$0xf0] }
 0x3b3   :  { %2837 = vmatpush.bf16.msra.mxu3 %v7794_v49  ;;  %v7862_v49 = vld [vmem:[#allocation13 + $0x604] sm:$0xf] }
 0x3b7   :  { %2838 = vmatpush.bf16.msra.mxu3 %v7793_v50 }
 0x3bb   :  { %2839 = vmatpush.bf16.msra.mxu3 %v7792_v22  ;;  %v6716_v22 = vld [vmem:[#allocation13 + $0x640] sm:$0xf0] }
 0x3dc   :  { %v2546_v53 = vpop.f32.mrf.mxu0 }
 0x3dd   :  { %v2559_v54 = vpop.f32.mrf.mxu1 }
 0x3e4   :  { %v2548_v55 = vpop.f32.mrf.mxu0 }
 0x3e5   :  { %v2561_v56 = vpop.f32.mrf.mxu1 }
 0x3e8   :  { %v2533_v57 = vpop.f32.mrf.mxu3 }
 0x3e9   :  { %v2572_v58 = vpop.f32.mrf.mxu2  ;;  %v2534_v5 = vadd.f32 %v8084_v38, %v2533_v57 }
 0x3eb   :  { %v2547_v11 = vadd.f32 %v2546_v53, %v2534_v5  ;;  %v8087_v5 = vld [vmem:[%s8711_s6 + $0x1] ss:$0 sm:$0xff] }
 0x3ec   :  { %v2598_v59 = vpop.f32.mrf.mxu0 }
 0x3ed   :  { %v2611_v60 = vpop.f32.mrf.mxu1  ;;  %v2560_v13 = vadd.f32 %v2559_v54, %v2547_v11  ;;  %v6906_v11 = vld [vmem:[#allocation13 + $0x780] sm:$0xf] }
 0x3ef   :  { %v2573_v35 = vadd.f32 %v2572_v58, %v2560_v13  ;;  %v7918_v13 = vld [vmem:[#allocation13 + $0x7bc] sm:$0xf0] }
 0x3f0   :  { %v2535_v62 = vpop.f32.mrf.mxu3 }
 0x3f1   :  { %v2574_v63 = vpop.f32.mrf.mxu2  ;;  %v8085_v62 = vld [vmem:[%s8718_s13] ss:$0 sm:$0xff] }
 0x3f4   :  { %v2600_v0 = vpop.f32.mrf.mxu0 }
 0x3f5   :  { %v2613_v1 = vpop.f32.mrf.mxu1 }
 0x3f6   :  { %v8086_v1 = vld [vmem:[%s8719_s14] ss:$0 sm:$0xff] }
 0x3f8   :  { %v2585_v2 = vpop.f32.mrf.mxu3 }
 0x3f9   :  { %v2624_v3 = vpop.f32.mrf.mxu2  ;;  %v2586_v17 = vadd.f32 %v2585_v2, %v2573_v35  ;;  %v6908_v35 = vld [vmem:[#allocation13 + $0x7c0] sm:$0xf0] }
 0x3fb   :  { %v2599_v18 = vadd.f32 %v2598_v59, %v2586_v17 }
 0x3fd   :  { %v2612_v21 = vadd.f32 %v2611_v60, %v2599_v18 }
 0x3fe   :  { %v2650_v6 = vpop.f32.mrf.mxu0 }
 0x3ff   :  { %v2625_v23 = vadd.f32 %v2624_v3, %v2612_v21  ;;  %v6842_v21 = vld [vmem:[#allocation13 + $0x700] sm:$0xf] }
 0x400   :  { %v2663_v7 = vpop.f32.mrf.mxu1  ;;  %v2587_v9 = vpop.f32.mrf.mxu3 }
 0x401   :  { %v2626_v10 = vpop.f32.mrf.mxu2 }
 0x406   :  { %v2652_v14 = vpop.f32.mrf.mxu0 }
 0x407   :  { %v7910_v14 = vld [vmem:[#allocation13 + $0x784] sm:$0xf] }
 0x408   :  { %v2665_v15 = vpop.f32.mrf.mxu1  ;;  %v6911_v17 = vor.u32 %v7910_v14, %v6908_v35  ;;  %v6594_v14 = vld [vmem:[#allocation13 + $0x508] sm:$0xf]  ;;  %v7831_v35 = vld [vmem:[#allocation13 + $0x50c] sm:$0xf] }
 0x409   :  { %v6907_v15 = vor.u32 %v7918_v13, %v6906_v11  ;;  %v6588_v13 = vld [vmem:[#allocation13 + $0x540] sm:$0xf0] }
 0x40a   :  { %v2637_v4 = vpop.f32.mrf.mxu3  ;;  %3700 = vmatpush.bf16.msrb.mxu1 %v6911_v17 }
 0x40b   :  { %v2638_v24 = vadd.f32 %v2637_v4, %v2625_v23  ;;  %v6914_v4 = vld [vmem:[#allocation13 + $0x788] sm:$0xf]  ;;  %3687 = vmatpush.bf16.msrb.mxu0 %v6907_v15 }
 0x40c   :  { %v2676_v16 = vpop.f32.mrf.mxu2  ;;  %v7839_v15 = vld [vmem:[#allocation13 + $0x544] sm:$0xf0] }
 0x40d   :  { %v2651_v12 = vadd.f32 %v2650_v6, %v2638_v24  ;;  %v7902_v24 = vld [vmem:[#allocation13 + $0x73c] sm:$0xf0] }
 0x40f   :  { %v2664_v27 = vadd.f32 %v2663_v7, %v2651_v12  ;;  %v6843_v12 = vor.u32 %v7902_v24, %v6842_v21  ;;  %v7814_v21 = vld [vmem:[#allocation13 + $0x484] sm:$0xf] }
 0x410   :  { %v6524_v24 = vld [vmem:[#allocation13 + $0x4c0] sm:$0xf0] }
 0x411   :  { %v2677_v30 = vadd.f32 %v2676_v16, %v2664_v27  ;;  %v7919_v16 = vld [vmem:[#allocation13 + $0x7c4] sm:$0xf0]  ;;  %3688 = vmatpush.bf16.msrb.mxu0 %v6843_v12  ;;  %v7815_v12 = vld [vmem:[#allocation13 + $0x48c] sm:$0xf] }
 0x412   :  { %v2639_v19 = vpop.f32.mrf.mxu3  ;;  %v6915_v18 = vor.u32 %v7919_v16, %v6914_v4  ;;  %v6596_v4 = vld [vmem:[#allocation13 + $0x548] sm:$0xf0] }
 0x413   :  { %v7911_v19 = vld [vmem:[#allocation13 + $0x78c] sm:$0xf] }
 0x414   :  { %v2678_v20 = vpop.f32.mrf.mxu2  ;;  %3713 = vmatpush.bf16.msrb.mxu2 %v6915_v18  ;;  %v6595_v18 = vor.u32 %v7839_v15, %v6594_v14  ;;  %v6796_v15 = vld [vmem:[#allocation13 + $0x6d0] sm:$0xf0] }
 0x415   :  { %v6916_v20 = vld [vmem:[#allocation13 + $0x7c8] sm:$0xf0] }
 0x416   :  { %v6919_v23 = vor.u32 %v7911_v19, %v6916_v20  ;;  %v6522_v19 = vld [vmem:[#allocation13 + $0x480] sm:$0xf] }
 0x417   :  { %v7822_v20 = vld [vmem:[#allocation13 + $0x4bc] sm:$0xf0] }
 0x41d   :  { %v2702_v25 = vpop.f32.mrf.mxu0 }
 0x41e   :  { %v2715_v26 = vpop.f32.mrf.mxu1 }
 0x425   :  { %v2704_v28 = vpop.f32.mrf.mxu0 }
 0x426   :  { %v2717_v29 = vpop.f32.mrf.mxu1  ;;  %v6850_v28 = vld [vmem:[#allocation13 + $0x708] sm:$0xf] }
 0x427   :  { %v7903_v29 = vld [vmem:[#allocation13 + $0x744] sm:$0xf0] }
 0x429   :  { %v2689_v31 = vpop.f32.mrf.mxu3 }
 0x42a   :  { %v2690_v32 = vadd.f32 %v2689_v31, %v2677_v30  ;;  %v7895_v30 = vld [vmem:[#allocation13 + $0x70c] sm:$0xf]  ;;  %v6851_v31 = vor.u32 %v7903_v29, %v6850_v28  ;;  %v6523_v28 = vor.u32 %v7822_v20, %v6522_v19  ;;  %v6527_v29 = vor.u32 %v7814_v21, %v6524_v24  ;;  %v6804_v19 = vld [vmem:[#allocation13 + $0x6d8] sm:$0xf0]  ;;  %v6730_v21 = vld [vmem:[#allocation13 + $0x610] sm:$0xf] }
 0x42b   :  { %v2728_v33 = vpop.f32.mrf.mxu2  ;;  %v7864_v24 = vld [vmem:[#allocation13 + $0x614] sm:$0xf] }
 0x42c   :  { %v2703_v34 = vadd.f32 %v2702_v25, %v2690_v32  ;;  %v7894_v25 = vld [vmem:[#allocation13 + $0x704] sm:$0xf]  ;;  %v6852_v32 = vld [vmem:[#allocation13 + $0x748] sm:$0xf0]  ;;  %3714 = vmatpush.bf16.msrb.mxu2 %v6851_v31 }
 0x42e   :  { %v2716_v36 = vadd.f32 %v2715_v26, %v2703_v34  ;;  %v6844_v26 = vld [vmem:[#allocation13 + $0x740] sm:$0xf0]  ;;  %v7886_v34 = vld [vmem:[#allocation13 + $0x6bc] sm:$0xf0] }
 0x42f   :  { %v6847_v27 = vor.u32 %v7894_v25, %v6844_v26  ;;  %v6530_v25 = vld [vmem:[#allocation13 + $0x488] sm:$0xf] }
 0x430   :  { %v2729_v37 = vadd.f32 %v2728_v33, %v2716_v36  ;;  %v6778_v33 = vld [vmem:[#allocation13 + $0x680] sm:$0xf]  ;;  %v6855_v36 = vor.u32 %v7895_v30, %v6852_v32  ;;  %v7823_v26 = vld [vmem:[#allocation13 + $0x4c4] sm:$0xf0] }
 0x431   :  { %v2691_v39 = vpop.f32.mrf.mxu3  ;;  %3701 = vmatpush.bf16.msrb.mxu1 %v6847_v27  ;;  %v6532_v27 = vld [vmem:[#allocation13 + $0x4c8] sm:$0xf0]  ;;  %v6531_v30 = vor.u32 %v7823_v26, %v6530_v25  ;;  %v6732_v26 = vld [vmem:[#allocation13 + $0x650] sm:$0xf0] }
 0x432   :  { %v2732_v41 = vadd.f32 %v2729_v37, %v8571_v8  ;;  %v7791_v8 = vld [vmem:[#allocation11 + $0x48] sm:$0xff]  ;;  %v7878_v37 = vld [vmem:[#allocation13 + $0x684] sm:$0xf]  ;;  %v6535_v32 = vor.u32 %v7815_v12, %v6532_v27  ;;  %v6738_v12 = vld [vmem:[#allocation13 + $0x618] sm:$0xf] }
 0x433   :  { %v2730_v40 = vpop.f32.mrf.mxu2  ;;  %2840 = vmatpush.bf16.msra.mxu3 %v7791_v8  ;;  %v6780_v39 = vld [vmem:[#allocation13 + $0x6c0] sm:$0xf0]  ;;  %v6722_v8 = vld [vmem:[#allocation13 + $0x608] sm:$0xf]  ;;  %v7873_v27 = vld [vmem:[#allocation13 + $0x654] sm:$0xf0] }
 0x434   :  { %2735 = vadd.xlane.f32.xlu1 %v2732_v41  ;;  %v6786_v40 = vld [vmem:[#allocation13 + $0x688] sm:$0xf] }
 0x437   :  { %2841 = vmatpush.bf16.msra.mxu3 %v7790_v51  ;;  %v7871_v51 = vld [vmem:[#allocation13 + $0x644] sm:$0xf0] }
 0x43b   :  { %3726 = vmatpush.bf16.msrb.mxu3 %v6919_v23  ;;  %v6599_v23 = vor.u32 %v7831_v35, %v6596_v4  ;;  %v6802_v35 = vld [vmem:[#allocation13 + $0x698] sm:$0xf] }
 0x43c   :  { %v7889_v4 = vld [vmem:[#allocation13 + $0x6d4] sm:$0xf0] }
 0x43f   :  { %3727 = vmatpush.bf16.msrb.mxu3 %v6855_v36 }
 0x4a7   :  { %v2736_v43 = vpop.xlane.xlu1 %2735 }
 0x4a8   :  { %v2737_v44 = vmul.f32 %v2736_v43, %v8555_v61  ;;  %v7879_v43 = vld [vmem:[#allocation13 + $0x68c] sm:$0xf] }
 0x4aa   :  { %v2738_v45 = vsub.f32 %v2732_v41, %v2737_v44  ;;  %v6779_v41 = vor.u32 %v7886_v34, %v6778_v33  ;;  %v6788_v44 = vld [vmem:[#allocation13 + $0x6c8] sm:$0xf0] }
 0x4ab   :  { %v6791_v50 = vor.u32 %v7879_v43, %v6788_v44  ;;  %v6466_v43 = vld [vmem:[#allocation13 + $0x408] sm:$0xf] }
 0x4ac   :  { %v2739_v46 = vmul.f32 %v2738_v45, %v2738_v45  ;;  %3689 = vmatpush.bf16.msrb.mxu0 %v6779_v41  ;;  %v7807_v44 = vld [vmem:[#allocation13 + $0x444] sm:$0xf0] }
 0x4ad   :  { %3728 = vmatpush.bf16.msrb.mxu3 %v6791_v50  ;;  %v7920_v50 = vld [vmem:[#allocation13 + $0x7cc] sm:$0xf0] }
 0x4ae   :  { %2740 = vadd.xlane.f32.xlu1 %v2739_v46  ;;  %v6787_v46 = vor.u32 %v7887_v42, %v6786_v40  ;;  %v7798_v40 = vld [vmem:[#allocation13 + $0x404] sm:$0xf] }
 0x4af   :  { %v6460_v42 = vld [vmem:[#allocation13 + $0x440] sm:$0xf0] }
 0x4b0   :  { %3715 = vmatpush.bf16.msrb.mxu2 %v6787_v46  ;;  %v6467_v46 = vor.u32 %v7807_v44, %v6466_v43 }
 0x521   :  { %v2741_v52 = vpop.xlane.xlu1 %2740 }
 0x522   :  { %v2742_v53 = vmul.f32 %v2741_v52, %v8555_v61  ;;  %v7863_v52 = vld [vmem:[#allocation13 + $0x60c] sm:$0xf] }
 0x524   :  { %v2743_v54 = vadd.f32 1e-05, %v2742_v53  ;;  %v6724_v53 = vld [vmem:[#allocation13 + $0x648] sm:$0xf0] }
 0x526   :  { %8098 = vrsqrt.f32 %v2743_v54  ;;  %vm2750_vm6 = vweird.f32 %v2743_v54 }
 0x52c   :  { %v8099_v55 = vpop.eup %8098 }
 0x52d   :  { %v2745_v56 = vmul.f32 %v8099_v55, %v2743_v54  ;;  %vm2751_vm5 = vweird.f32 %v8099_v55  ;;  %v6715_v54 = vor.u32 %v7870_v48, %v6714_v47  ;;  %v7799_v47 = vld [vmem:[#allocation13 + $0x40c] sm:$0xf] }
 0x52e   :  { %vm2752_vm7 = vmor %vm2750_vm6, %vm2751_vm5  ;;  %v6468_v48 = vld [vmem:[#allocation13 + $0x448] sm:$0xf0] }
 0x52f   :  { %v2746_v57 = vmul.f32 %v8099_v55, %v2745_v56  ;;  %v6723_v56 = vor.u32 %v7871_v51, %v6722_v8  ;;  %3690 = vmatpush.bf16.msrb.mxu0 %v6715_v54  ;;  %v6924_v8 = vld [vmem:[#allocation13 + $0x7d0] sm:$0xf0]  ;;  %v7921_v54 = vld [vmem:[#allocation13 + $0x7d4] sm:$0xf0] }
 0x531   :  { %v2747_v58 = vmul.f32 0.5, %v2746_v57  ;;  %v6650_v57 = vld [vmem:[#allocation13 + $0x580] sm:$0xf]  ;;  %3716 = vmatpush.bf16.msrb.mxu2 %v6723_v56 }
 0x533   :  { %v2748_v59 = vsub.f32 1.5, %v2747_v58  ;;  %v7854_v58 = vld [vmem:[#allocation13 + $0x5bc] sm:$0xf0] }
 0x535   :  { %v2749_v60 = vmul.f32 %v8099_v55, %v2748_v59  ;;  %v7846_v59 = vld [vmem:[#allocation13 + $0x584] sm:$0xf] }
 0x537   :  { %v2753_v63 = vsel %vm2752_vm7, %v8099_v55, %v2749_v60  ;;  %v6719_v55 = vor.u32 %v7862_v49, %v6716_v22  ;;  %v6727_v60 = vor.u32 %v7863_v52, %v6724_v53  ;;  %v6471_v49 = vor.u32 %v7799_v47, %v6468_v48  ;;  %v7912_v22 = vld [vmem:[#allocation13 + $0x794] sm:$0xf]  ;;  %v6930_v53 = vld [vmem:[#allocation13 + $0x798] sm:$0xf]  ;;  %v6602_v48 = vld [vmem:[#allocation13 + $0x510] sm:$0xf] }
 0x538   :  { %v2754_v0 = vmul.f32 %v2753_v63, %v2738_v45  ;;  %v6783_v45 = vor.u32 %v7878_v37, %v6780_v39  ;;  %v6658_v63 = vld [vmem:[#allocation13 + $0x588] sm:$0xf]  ;;  %v6458_v37 = vld [vmem:[#allocation13 + $0x400] sm:$0xf]  ;;  %v6927_v52 = vor.u32 %v7912_v22, %v6924_v8  ;;  %v6931_v56 = vor.u32 %v7921_v54, %v6930_v53  ;;  %v6604_v22 = vld [vmem:[#allocation13 + $0x550] sm:$0xf0] }
 0x539   :  { %3729 = vmatpush.bf16.msrb.mxu3 %v6727_v60  ;;  %v7806_v39 = vld [vmem:[#allocation13 + $0x43c] sm:$0xf0]  ;;  %v6610_v8 = vld [vmem:[#allocation13 + $0x518] sm:$0xf]  ;;  %v7833_v54 = vld [vmem:[#allocation13 + $0x51c] sm:$0xf] }
 0x53a   :  { %v2758_v2 = vmul.f32 %v8085_v62, %v2754_v0  ;;  %3702 = vmatpush.bf16.msrb.mxu1 %v6783_v45  ;;  %v6652_v62 = vld [vmem:[#allocation13 + $0x5c0] sm:$0xf0]  ;;  %v7855_v0 = vld [vmem:[#allocation13 + $0x5c4] sm:$0xf0]  ;;  %v6459_v41 = vor.u32 %v7806_v39, %v6458_v37  ;;  %v6463_v45 = vor.u32 %v7798_v40, %v6460_v42  ;;  %v7848_v37 = vld [vmem:[#allocation13 + $0x594] sm:$0xf] }
 0x53b   :  { %v6668_v40 = vld [vmem:[#allocation13 + $0x5d0] sm:$0xf0]  ;;  %v7857_v42 = vld [vmem:[#allocation13 + $0x5d4] sm:$0xf0] }
 0x53c   :  { %v2762_v3 = vadd.f32 %v8086_v1, %v2758_v2  ;;  %v7847_v1 = vld [vmem:[#allocation13 + $0x58c] sm:$0xf]  ;;  %v6671_v43 = vor.u32 %v7848_v37, %v6668_v40  ;;  %v7914_v37 = vld [vmem:[#allocation13 + $0x7a4] sm:$0xf]  ;;  %v6946_v40 = vld [vmem:[#allocation13 + $0x7a8] sm:$0xf] }
 0x53d   :  { %v6660_v2 = vld [vmem:[#allocation13 + $0x5c8] sm:$0xf0] }
 0x53e   :  { %v2780_v38 = vpack.c.bf16 %v2762_v3, %v2762_v3  ;;  %3703 = vmatpush.bf16.msrb.mxu1 %v6719_v55  ;;  %v6663_v11 = vor.u32 %v7847_v1, %v6660_v2  ;;  %v7913_v55 = vld [vmem:[#allocation13 + $0x79c] sm:$0xf]  ;;  %v6866_v1 = vld [vmem:[#allocation13 + $0x718] sm:$0xf] }
 0x540   :  { %2842 = vmatmul.bf16.vlgmr.msra.gmra.mxu3 %v2780_v38  ;;  %v6655_v38 = vor.u32 %v7846_v59, %v6652_v62  ;;  %v7904_v59 = vld [vmem:[#allocation13 + $0x74c] sm:$0xf0] }
 0x541   :  { %3730 = vmatpush.bf16.msrb.mxu3 %v6663_v11  ;;  %v7888_v11 = vld [vmem:[#allocation13 + $0x6cc] sm:$0xf0] }
 0x542   :  { %3704 = vmatpush.bf16.msrb.mxu1 %v6655_v38  ;;  %v7897_v38 = vld [vmem:[#allocation13 + $0x71c] sm:$0xf] }
 0x545   :  { %3731 = vmatpush.bf16.msrb.mxu3 %v6599_v23  ;;  %v7872_v23 = vld [vmem:[#allocation13 + $0x64c] sm:$0xf0] }
 0x546   :  { %v6731_v25 = vor.u32 %v7872_v23, %v6730_v21 }
 0x549   :  { %3732 = vmatpush.bf16.msrb.mxu3 %v6535_v32 }
 0x54d   :  { %3733 = vmatpush.bf16.msrb.mxu3 %v6471_v49  ;;  %v7832_v49 = vld [vmem:[#allocation13 + $0x514] sm:$0xf] }
 0x5c3   :  { %v2843_v6 = vpop.f32.mrf.mxu3 }
 0x5c4   :  { %v2844_v7 = vadd.f32 %v8087_v5, %v2843_v6  ;;  %v6659_v5 = vor.u32 %v7855_v0, %v6658_v63  ;;  %v6586_v6 = vld [vmem:[#allocation13 + $0x500] sm:$0xf]  ;;  %v7896_v63 = vld [vmem:[#allocation13 + $0x714] sm:$0xf] }
 0x5c5   :  { %v6860_v0 = vld [vmem:[#allocation13 + $0x750] sm:$0xf0] }
 0x5c6   :  { %v8628_v9 = vadd.f32 %v2844_v7, %v2762_v3  ;;  %v6651_v3 = vor.u32 %v7854_v58, %v6650_v57  ;;  %v7838_v7 = vld [vmem:[#allocation13 + $0x53c] sm:$0xf0]  ;;  %3717 = vmatpush.bf16.msrb.mxu2 %v6659_v5  ;;  %v6932_v57 = vld [vmem:[#allocation13 + $0x7d8] sm:$0xf0]  ;;  %v6858_v58 = vld [vmem:[#allocation13 + $0x710] sm:$0xf]  ;;  %v6863_v2 = vor.u32 %v7896_v63, %v6860_v0 }
 0x5c7   :  { %v6587_v16 = vor.u32 %v7838_v7, %v6586_v6  ;;  %v6935_v60 = vor.u32 %v7913_v55, %v6932_v57  ;;  %v6859_v62 = vor.u32 %v7904_v59, %v6858_v58  ;;  %v6868_v5 = vld [vmem:[#allocation13 + $0x758] sm:$0xf0]  ;;  %v6538_v57 = vld [vmem:[#allocation13 + $0x490] sm:$0xf]  ;;  %v7816_v59 = vld [vmem:[#allocation13 + $0x494] sm:$0xf] }
 0x5c8   :  { %2852 = vadd.xlane.f32.xlu2 %v8628_v9  ;;  %3691 = vmatpush.bf16.msrb.mxu0 %v6651_v3  ;;  %v7905_v3 = vld [vmem:[#allocation13 + $0x754] sm:$0xf0]  ;;  %v6871_v7 = vor.u32 %v7897_v38, %v6868_v5  ;;  %v6612_v55 = vld [vmem:[#allocation13 + $0x558] sm:$0xf0]  ;;  %v7824_v58 = vld [vmem:[#allocation13 + $0x4cc] sm:$0xf0] }
 0x5c9   :  { %3778 = vmatpush.bf16.msra.mxu3 %v6935_v60  ;;  %v6867_v6 = vor.u32 %v7905_v3, %v6866_v1  ;;  %v6539_v60 = vor.u32 %v7824_v58, %v6538_v57  ;;  %v6546_v63 = vld [vmem:[#allocation13 + $0x498] sm:$0xf]  ;;  %v7817_v3 = vld [vmem:[#allocation13 + $0x49c] sm:$0xf]  ;;  %v7890_v57 = vld [vmem:[#allocation13 + $0x6dc] sm:$0xf0] }
 0x5ca   :  { %3718 = vmatpush.bf16.msrb.mxu2 %v6595_v18  ;;  %v7881_v18 = vld [vmem:[#allocation13 + $0x69c] sm:$0xf]  ;;  %v7825_v0 = vld [vmem:[#allocation13 + $0x4d4] sm:$0xf0] }
 0x5cb   :  { %v2845_v10 = vpop.f32.mrf.mxu3  ;;  %v6807_v20 = vor.u32 %v7881_v18, %v6804_v19  ;;  %v6548_v38 = vld [vmem:[#allocation13 + $0x4d8] sm:$0xf0] }
 0x5cc   :  { %v7830_v10 = vld [vmem:[#allocation13 + $0x504] sm:$0xf]  ;;  %3692 = vmatpush.bf16.msrb.mxu0 %v6587_v16  ;;  %v6551_v5 = vor.u32 %v7817_v3, %v6548_v38 }
 0x5cd   :  { %v6591_v17 = vor.u32 %v7830_v10, %v6588_v13  ;;  %v6794_v10 = vld [vmem:[#allocation13 + $0x690] sm:$0xf]  ;;  %v7880_v13 = vld [vmem:[#allocation13 + $0x694] sm:$0xf]  ;;  %3779 = vmatpush.bf16.msra.mxu3 %v6871_v7 }
 0x5ce   :  { %3719 = vmatpush.bf16.msrb.mxu2 %v6531_v30  ;;  %v6795_v14 = vor.u32 %v7888_v11, %v6794_v10  ;;  %v6799_v16 = vor.u32 %v7880_v13, %v6796_v15  ;;  %v7865_v30 = vld [vmem:[#allocation13 + $0x61c] sm:$0xf]  ;;  %v7808_v7 = vld [vmem:[#allocation13 + $0x44c] sm:$0xf0]  ;;  %v7800_v10 = vld [vmem:[#allocation13 + $0x414] sm:$0xf] }
 0x5cf   :  { %3705 = vmatpush.bf16.msrb.mxu1 %v6591_v17  ;;  %v6803_v17 = vor.u32 %v7889_v4, %v6802_v35  ;;  %v6476_v13 = vld [vmem:[#allocation13 + $0x450] sm:$0xf0]  ;;  %v7809_v15 = vld [vmem:[#allocation13 + $0x454] sm:$0xf0] }
 0x5d0   :  { %3693 = vmatpush.bf16.msrb.mxu0 %v6523_v28  ;;  %v6735_v28 = vor.u32 %v7864_v24, %v6732_v26  ;;  %v6479_v35 = vor.u32 %v7800_v10, %v6476_v13  ;;  %v6748_v13 = vld [vmem:[#allocation13 + $0x660] sm:$0xf0] }
 0x5d1   :  { %3780 = vmatpush.bf16.msra.mxu3 %v6807_v20 }
 0x5d2   :  { %3720 = vmatpush.bf16.msrb.mxu2 %v6467_v46  ;;  %v6676_v46 = vld [vmem:[#allocation13 + $0x5d8] sm:$0xf0] }
 0x5d3   :  { %3706 = vmatpush.bf16.msrb.mxu1 %v6527_v29  ;;  %v6739_v29 = vor.u32 %v7873_v27, %v6738_v12 }
 0x5d4   :  { %3694 = vmatpush.bf16.msrb.mxu0 %v6459_v41  ;;  %v6674_v41 = vld [vmem:[#allocation13 + $0x598] sm:$0xf] }
 0x5d5   :  { %v6675_v44 = vor.u32 %v7857_v42, %v6674_v41  ;;  %v7923_v42 = vld [vmem:[#allocation13 + $0x7e4] sm:$0xf0] }
 0x5d6   :  { %3765 = vmatpush.bf16.msra.mxu2 %v6931_v56  ;;  %v6615_v56 = vor.u32 %v7833_v54, %v6612_v55 }
 0x5d7   :  { %3707 = vmatpush.bf16.msrb.mxu1 %v6463_v45  ;;  %v7849_v45 = vld [vmem:[#allocation13 + $0x59c] sm:$0xf] }
 0x5d8   :  { %v6679_v47 = vor.u32 %v7849_v45, %v6676_v46 }
 0x5da   :  { %3766 = vmatpush.bf16.msra.mxu2 %v6867_v6  ;;  %v6474_v6 = vld [vmem:[#allocation13 + $0x410] sm:$0xf] }
 0x5db   :  { %3752 = vmatpush.bf16.msra.mxu1 %v6927_v52  ;;  %v6607_v52 = vor.u32 %v7832_v49, %v6604_v22  ;;  %v6475_v11 = vor.u32 %v7808_v7, %v6474_v6  ;;  %v6876_v22 = vld [vmem:[#allocation13 + $0x760] sm:$0xf0]  ;;  %v7874_v6 = vld [vmem:[#allocation13 + $0x65c] sm:$0xf0] }
 0x5de   :  { %3767 = vmatpush.bf16.msra.mxu2 %v6803_v17  ;;  %v6484_v17 = vld [vmem:[#allocation13 + $0x458] sm:$0xf0] }
 0x5df   :  { %3753 = vmatpush.bf16.msra.mxu1 %v6863_v2  ;;  %v6547_v2 = vor.u32 %v7825_v0, %v6546_v63  ;;  %v6818_v63 = vld [vmem:[#allocation13 + $0x6a8] sm:$0xf] }
 0x5e0   :  { %v7891_v0 = vld [vmem:[#allocation13 + $0x6e4] sm:$0xf0] }
 0x5e1   :  { %v6819_v7 = vor.u32 %v7891_v0, %v6818_v63  ;;  %v7811_v63 = vld [vmem:[#allocation13 + $0x464] sm:$0xf0]  ;;  %v7803_v0 = vld [vmem:[#allocation13 + $0x42c] sm:$0xf] }
 0x5e2   :  { %3768 = vmatpush.bf16.msra.mxu2 %v6739_v29 }
 0x5e3   :  { %3754 = vmatpush.bf16.msra.mxu1 %v6799_v16  ;;  %v7801_v16 = vld [vmem:[#allocation13 + $0x41c] sm:$0xf] }
 0x5e4   :  { %v6487_v18 = vor.u32 %v7801_v16, %v6484_v17 }
 0x5e6   :  { %3769 = vmatpush.bf16.msra.mxu2 %v6675_v44  ;;  %v6948_v44 = vld [vmem:[#allocation13 + $0x7e8] sm:$0xf0] }
 0x5e7   :  { %3755 = vmatpush.bf16.msra.mxu1 %v6735_v28  ;;  %v8088_v28 = vld [vmem:[%s8712_s7 + $0x1] ss:$0 sm:$0xff] }
 0x5eb   :  { %3756 = vmatpush.bf16.msra.mxu1 %v6671_v43  ;;  %v7915_v43 = vld [vmem:[#allocation13 + $0x7ac] sm:$0xf] }
 0x5ec   :  { %v6951_v49 = vor.u32 %v7915_v43, %v6948_v44  ;;  %v6628_v43 = vld [vmem:[#allocation13 + $0x568] sm:$0xf0] }
 0x5ef   :  { %3757 = vmatpush.bf16.msra.mxu1 %v6607_v52  ;;  %v7899_v52 = vld [vmem:[#allocation13 + $0x72c] sm:$0xf] }
 0x63b   :  { %v2853_v31 = vpop.xlane.xlu2 %2852 }
 0x63c   :  { %v2854_v33 = vmul.f32 %v2853_v31, %v8555_v61  ;;  %v6740_v31 = vld [vmem:[#allocation13 + $0x658] sm:$0xf0] }
 0x63d   :  { %v6743_v32 = vor.u32 %v7865_v30, %v6740_v31  ;;  %v8089_v30 = vld [vmem:[%s8713_s8 + $0x1] ss:$0 sm:$0xff] }
 0x63e   :  { %v8633_v34 = vsub.f32 %v8628_v9, %v2854_v33  ;;  %v6922_v9 = vld [vmem:[#allocation13 + $0x790] sm:$0xf] }
 0x63f   :  { %v6923_v51 = vor.u32 %v7920_v50, %v6922_v9  ;;  %v6666_v33 = vld [vmem:[#allocation13 + $0x590] sm:$0xf]  ;;  %3781 = vmatpush.bf16.msra.mxu3 %v6743_v32 }
 0x640   :  { %v2856_v36 = vmul.f32 %v8633_v34, %v8633_v34  ;;  %v7840_v9 = vld [vmem:[#allocation13 + $0x54c] sm:$0xf0] }
 0x641   :  { %3739 = vmatpush.bf16.msra.mxu0 %v6923_v51  ;;  %v6603_v50 = vor.u32 %v7840_v9, %v6602_v48  ;;  %v7841_v51 = vld [vmem:[#allocation13 + $0x554] sm:$0xf0]  ;;  %v6874_v48 = vld [vmem:[#allocation13 + $0x720] sm:$0xf] }
 0x642   :  { %2857 = vadd.xlane.f32.xlu2 %v2856_v36  ;;  %v7856_v36 = vld [vmem:[#allocation13 + $0x5cc] sm:$0xf0]  ;;  %v6611_v53 = vor.u32 %v7841_v51, %v6610_v8  ;;  %v7906_v9 = vld [vmem:[#allocation13 + $0x75c] sm:$0xf0]  ;;  %v6882_v8 = vld [vmem:[#allocation13 + $0x728] sm:$0xf] }
 0x643   :  { %v6667_v39 = vor.u32 %v7856_v36, %v6666_v33  ;;  %3782 = vmatpush.bf16.msra.mxu3 %v6679_v47  ;;  %v6938_v33 = vld [vmem:[#allocation13 + $0x7a0] sm:$0xf]  ;;  %v7907_v51 = vld [vmem:[#allocation13 + $0x764] sm:$0xf0]  ;;  %v6875_v54 = vor.u32 %v7906_v9, %v6874_v48 }
 0x644   :  { %3770 = vmatpush.bf16.msra.mxu2 %v6611_v53  ;;  %v7922_v36 = vld [vmem:[#allocation13 + $0x7dc] sm:$0xf0]  ;;  %v6884_v53 = vld [vmem:[#allocation13 + $0x768] sm:$0xf0]  ;;  %v6883_v58 = vor.u32 %v7907_v51, %v6882_v8  ;;  %v7827_v8 = vld [vmem:[#allocation13 + $0x4e4] sm:$0xf0] }
 0x645   :  { %3740 = vmatpush.bf16.msra.mxu0 %v6859_v62  ;;  %v6540_v62 = vld [vmem:[#allocation13 + $0x4d0] sm:$0xf0]  ;;  %v6939_v46 = vor.u32 %v7922_v36, %v6938_v33  ;;  %v7834_v36 = vld [vmem:[#allocation13 + $0x524] sm:$0xf]  ;;  %v7826_v48 = vld [vmem:[#allocation13 + $0x4dc] sm:$0xf0] }
 0x646   :  { %v6543_v1 = vor.u32 %v7816_v59, %v6540_v62  ;;  %v6887_v59 = vor.u32 %v7899_v52, %v6884_v53  ;;  %v6812_v62 = vld [vmem:[#allocation13 + $0x6e0] sm:$0xf0]  ;;  %v7819_v51 = vld [vmem:[#allocation13 + $0x4ac] sm:$0xf]  ;;  %v6490_v53 = vld [vmem:[#allocation13 + $0x420] sm:$0xf] }
 0x647   :  { %3783 = vmatpush.bf16.msra.mxu3 %v6615_v56  ;;  %v6810_v56 = vld [vmem:[#allocation13 + $0x6a0] sm:$0xf]  ;;  %v6564_v52 = vld [vmem:[#allocation13 + $0x4e8] sm:$0xf0] }
 0x648   :  { %3758 = vmatpush.bf16.msra.mxu1 %v6543_v1  ;;  %3771 = vmatpush.bf16.msra.mxu2 %v6547_v2  ;;  %v7883_v1 = vld [vmem:[#allocation13 + $0x6ac] sm:$0xf]  ;;  %v6811_v3 = vor.u32 %v7890_v57, %v6810_v56  ;;  %v7810_v56 = vld [vmem:[#allocation13 + $0x45c] sm:$0xf0]  ;;  %v7802_v57 = vld [vmem:[#allocation13 + $0x424] sm:$0xf] }
 0x649   :  { %3741 = vmatpush.bf16.msra.mxu0 %v6795_v14  ;;  %v6482_v14 = vld [vmem:[#allocation13 + $0x418] sm:$0xf]  ;;  %v6820_v2 = vld [vmem:[#allocation13 + $0x6e8] sm:$0xf0] }
 0x64a   :  { %v6483_v4 = vor.u32 %v7809_v15, %v6482_v14  ;;  %v6823_v10 = vor.u32 %v7883_v1, %v6820_v2  ;;  %v6754_v14 = vld [vmem:[#allocation13 + $0x628] sm:$0xf]  ;;  %v6500_v1 = vld [vmem:[#allocation13 + $0x468] sm:$0xf0]  ;;  %v6954_v2 = vld [vmem:[#allocation13 + $0x7b0] sm:$0xf] }
 0x64b   :  { %3784 = vmatpush.bf16.msra.mxu3 %v6551_v5  ;;  %v6746_v5 = vld [vmem:[#allocation13 + $0x620] sm:$0xf]  ;;  %v7875_v15 = vld [vmem:[#allocation13 + $0x664] sm:$0xf0] }
 0x64c   :  { %3759 = vmatpush.bf16.msra.mxu1 %v6479_v35  ;;  %3772 = vmatpush.bf16.msra.mxu2 %v6483_v4  ;;  %v7867_v35 = vld [vmem:[#allocation13 + $0x62c] sm:$0xf]  ;;  %v6747_v16 = vor.u32 %v7874_v6, %v6746_v5  ;;  %v6956_v5 = vld [vmem:[#allocation13 + $0x7f0] sm:$0xf0]  ;;  %v6962_v6 = vld [vmem:[#allocation13 + $0x7b8] sm:$0xf] }
 0x64d   :  { %3742 = vmatpush.bf16.msra.mxu0 %v6731_v25  ;;  %v6756_v4 = vld [vmem:[#allocation13 + $0x668] sm:$0xf0] }
 0x64f   :  { %3785 = vmatpush.bf16.msra.mxu3 %v6487_v18  ;;  %v6682_v18 = vld [vmem:[#allocation13 + $0x5a0] sm:$0xf] }
 0x651   :  { %3743 = vmatpush.bf16.msra.mxu0 %v6667_v39  ;;  %v6940_v39 = vld [vmem:[#allocation13 + $0x7e0] sm:$0xf0] }
 0x652   :  { %v6943_v47 = vor.u32 %v7914_v37, %v6940_v39  ;;  %v6620_v37 = vld [vmem:[#allocation13 + $0x560] sm:$0xf0]  ;;  %v6626_v39 = vld [vmem:[#allocation13 + $0x528] sm:$0xf] }
 0x655   :  { %3744 = vmatpush.bf16.msra.mxu0 %v6603_v50  ;;  %v7898_v50 = vld [vmem:[#allocation13 + $0x724] sm:$0xf] }
 0x656   :  { %v6879_v55 = vor.u32 %v7898_v50, %v6876_v22  ;;  %v6556_v50 = vld [vmem:[#allocation13 + $0x4e0] sm:$0xf0]  ;;  %v6562_v22 = vld [vmem:[#allocation13 + $0x4a8] sm:$0xf] }
 0x659   :  { %3745 = vmatpush.bf16.msra.mxu0 %v6539_v60  ;;  %v7882_v60 = vld [vmem:[#allocation13 + $0x6a4] sm:$0xf] }
 0x65a   :  { %v6815_v38 = vor.u32 %v7882_v60, %v6812_v62  ;;  %v6567_v60 = vor.u32 %v7819_v51, %v6564_v52  ;;  %v6498_v62 = vld [vmem:[#allocation13 + $0x428] sm:$0xf]  ;;  %v6772_v51 = vld [vmem:[#allocation13 + $0x678] sm:$0xf0] }
 0x65d   :  { %3746 = vmatpush.bf16.msra.mxu0 %v6475_v11  ;;  %v7866_v11 = vld [vmem:[#allocation13 + $0x624] sm:$0xf] }
 0x65e   :  { %v6751_v17 = vor.u32 %v7866_v11, %v6748_v13  ;;  %v7925_v11 = vld [vmem:[#allocation13 + $0x7f4] sm:$0xf0]  ;;  %v7917_v13 = vld [vmem:[#allocation13 + $0x7bc] sm:$0xf] }
 0x6b5   :  { %v2858_v19 = vpop.xlane.xlu2 %2857 }
 0x6b6   :  { %v2859_v20 = vmul.f32 %v2858_v19, %v8555_v61  ;;  %v7858_v19 = vld [vmem:[#allocation13 + $0x5dc] sm:$0xf0] }
 0x6b8   :  { %v2860_v21 = vadd.f32 1e-05, %v2859_v20  ;;  %v6755_v20 = vor.u32 %v7875_v15, %v6754_v14  ;;  %v6964_v14 = vld [vmem:[#allocation13 + $0x7f8] sm:$0xf0]  ;;  %v6499_v15 = vor.u32 %v7811_v63, %v6498_v62  ;;  %v7861_v62 = vld [vmem:[#allocation13 + $0x5f4] sm:$0xf0] }
 0x6b9   :  { %v7853_v63 = vld [vmem:[#allocation13 + $0x5bc] sm:$0xf] }
 0x6ba   :  { %8100 = vrsqrt.f32 %v2860_v21  ;;  %vm2867_vm9 = vweird.f32 %v2860_v21 }
 0x6c0   :  { %v8101_v23 = vpop.eup %8100 }
 0x6c1   :  { %v2862_v24 = vmul.f32 %v8101_v23, %v2860_v21  ;;  %vm2868_vm8 = vweird.f32 %v8101_v23  ;;  %v6759_v21 = vor.u32 %v7867_v35, %v6756_v4  ;;  %v6503_v35 = vor.u32 %v7803_v0, %v6500_v1  ;;  %v6708_v0 = vld [vmem:[#allocation13 + $0x5f8] sm:$0xf0] }
 0x6c2   :  { %vm2869_vm10 = vmor %vm2867_vm9, %vm2868_vm8 }
 0x6c3   :  { %v2863_v25 = vmul.f32 %v8101_v23, %v2862_v24  ;;  %v6684_v24 = vld [vmem:[#allocation13 + $0x5e0] sm:$0xf0] }
 0x6c5   :  { %v2864_v26 = vmul.f32 0.5, %v2863_v25  ;;  %v6690_v25 = vld [vmem:[#allocation13 + $0x5a8] sm:$0xf] }
 0x6c7   :  { %v2865_v12 = vsub.f32 1.5, %v2864_v26  ;;  %v7859_v26 = vld [vmem:[#allocation13 + $0x5e4] sm:$0xf0] }
 0x6c9   :  { %v2866_v27 = vmul.f32 %v8101_v23, %v2865_v12  ;;  %v7851_v12 = vld [vmem:[#allocation13 + $0x5ac] sm:$0xf] }
 0x6cb   :  { %v2870_v29 = vsel %vm2869_vm10, %v8101_v23, %v2866_v27  ;;  %v7850_v23 = vld [vmem:[#allocation13 + $0x5a4] sm:$0xf]  ;;  %v6692_v27 = vld [vmem:[#allocation13 + $0x5e8] sm:$0xf0] }
 0x6cc   :  { %v2871_v31 = vmul.f32 %v2870_v29, %v8633_v34  ;;  %v6947_v34 = vor.u32 %v7923_v42, %v6946_v40  ;;  %v6687_v29 = vor.u32 %v7850_v23, %v6684_v24  ;;  %v6695_v33 = vor.u32 %v7851_v12, %v6692_v27  ;;  %v7843_v40 = vld [vmem:[#allocation13 + $0x564] sm:$0xf0]  ;;  %v7835_v42 = vld [vmem:[#allocation13 + $0x52c] sm:$0xf]  ;;  %v6892_v23 = vld [vmem:[#allocation13 + $0x770] sm:$0xf0] }
 0x6cd   :  { %v6627_v9 = vor.u32 %v7843_v40, %v6626_v39  ;;  %v6898_v24 = vld [vmem:[#allocation13 + $0x738] sm:$0xf]  ;;  %v6900_v12 = vld [vmem:[#allocation13 + $0x778] sm:$0xf0] }
 0x6ce   :  { %v2875_v32 = vmul.f32 %v8088_v28, %v2871_v31  ;;  %v6683_v28 = vor.u32 %v7858_v19, %v6682_v18  ;;  %v7842_v31 = vld [vmem:[#allocation13 + $0x55c] sm:$0xf0]  ;;  %v7908_v18 = vld [vmem:[#allocation13 + $0x76c] sm:$0xf0]  ;;  %v6963_v19 = vor.u32 %v7925_v11, %v6962_v6  ;;  %v7893_v39 = vld [vmem:[#allocation13 + $0x6f4] sm:$0xf0]  ;;  %v6711_v6 = vor.u32 %v7853_v63, %v6708_v0 }
 0x6cf   :  { %v7885_v40 = vld [vmem:[#allocation13 + $0x6bc] sm:$0xf]  ;;  %v6642_v11 = vld [vmem:[#allocation13 + $0x538] sm:$0xf]  ;;  %v7928_v63 = vld [vmem:[#allocation16 + $0x410] sm:$0xff] }
 0x6d0   :  { %v8645_v41 = vadd.f32 %v8089_v30, %v2875_v32  ;;  %v6618_v30 = vld [vmem:[#allocation13 + $0x520] sm:$0xf]  ;;  %v6691_v32 = vor.u32 %v7859_v26, %v6690_v25  ;;  %v7909_v25 = vld [vmem:[#allocation13 + $0x774] sm:$0xf0]  ;;  %v7901_v26 = vld [vmem:[#allocation13 + $0x73c] sm:$0xf] }
 0x6d1   :  { %v6619_v44 = vor.u32 %v7842_v31, %v6618_v30  ;;  %v7892_v30 = vld [vmem:[#allocation13 + $0x6ec] sm:$0xf0]  ;;  %v6899_v31 = vor.u32 %v7909_v25, %v6898_v24  ;;  %v7829_v24 = vld [vmem:[#allocation13 + $0x4f4] sm:$0xf0]  ;;  %v7821_v25 = vld [vmem:[#allocation13 + $0x4bc] sm:$0xf] }
 0x6d2   :  { %v8649_v45 = vpack.c.bf16 %v8645_v41, %v8645_v41  ;;  %v7936_v0 = vld [vmem:[#allocation16 + $0x450] sm:$0xff] }
 0x6d4   :  { %3695 = vmatmul.bf16.vlgmr.msrb.gmra.mxu0 %v8649_v45  ;;  %3708 = vmatmul.bf16.vlgmr.msrb.gmra.mxu1 %v8649_v45 }
 0x6d5   :  { %3721 = vmatmul.bf16.vlgmr.msrb.gmra.mxu2 %v8649_v45  ;;  %3734 = vmatmul.bf16.vlgmr.msrb.gmra.mxu3 %v8649_v45 }
 0x6d6   :  { %3791 = vmatpush.bf16.msrb.mxu0 %v6939_v46  ;;  %3804 = vmatpush.bf16.msrb.mxu1 %v6943_v47  ;;  %v6623_v46 = vor.u32 %v7834_v36, %v6620_v37  ;;  %v6554_v47 = vld [vmem:[#allocation13 + $0x4a0] sm:$0xf]  ;;  %v6828_v36 = vld [vmem:[#allocation13 + $0x6f0] sm:$0xf0]  ;;  %v6834_v37 = vld [vmem:[#allocation13 + $0x6b8] sm:$0xf] }
 0x6d7   :  { %3817 = vmatpush.bf16.msrb.mxu2 %v6947_v34  ;;  %3830 = vmatpush.bf16.msrb.mxu3 %v6951_v49  ;;  %v6631_v34 = vor.u32 %v7835_v42, %v6628_v43  ;;  %v7818_v49 = vld [vmem:[#allocation13 + $0x4a4] sm:$0xf]  ;;  %v6836_v42 = vld [vmem:[#allocation13 + $0x6f8] sm:$0xf0] }
 0x6da   :  { %3792 = vmatpush.bf16.msrb.mxu0 %v6875_v54  ;;  %3805 = vmatpush.bf16.msrb.mxu1 %v6879_v55  ;;  %v6555_v54 = vor.u32 %v7826_v48, %v6554_v47  ;;  %v6559_v55 = vor.u32 %v7818_v49, %v6556_v50  ;;  %v7876_v47 = vld [vmem:[#allocation13 + $0x66c] sm:$0xf0]  ;;  %v6835_v48 = vor.u32 %v7893_v39, %v6834_v37  ;;  %v6764_v49 = vld [vmem:[#allocation13 + $0x670] sm:$0xf0]  ;;  %v6770_v50 = vld [vmem:[#allocation13 + $0x638] sm:$0xf] }
 0x6db   :  { %3818 = vmatpush.bf16.msrb.mxu2 %v6883_v58  ;;  %3831 = vmatpush.bf16.msrb.mxu3 %v6887_v59  ;;  %v6492_v58 = vld [vmem:[#allocation13 + $0x460] sm:$0xf0]  ;;  %v6563_v59 = vor.u32 %v7827_v8, %v6562_v22  ;;  %v7877_v22 = vld [vmem:[#allocation13 + $0x674] sm:$0xf0]  ;;  %v7869_v8 = vld [vmem:[#allocation13 + $0x63c] sm:$0xf] }
 0x6dc   :  { %v7813_v37 = vld [vmem:[#allocation13 + $0x474] sm:$0xf0]  ;;  %v7805_v39 = vld [vmem:[#allocation13 + $0x43c] sm:$0xf] }
 0x6de   :  { %3793 = vmatpush.bf16.msrb.mxu0 %v6811_v3  ;;  %3806 = vmatpush.bf16.msrb.mxu1 %v6815_v38  ;;  %v7924_v3 = vld [vmem:[#allocation13 + $0x7ec] sm:$0xf0]  ;;  %v7916_v38 = vld [vmem:[#allocation13 + $0x7b4] sm:$0xf] }
 0x6df   :  { %3819 = vmatpush.bf16.msrb.mxu2 %v6819_v7  ;;  %3832 = vmatpush.bf16.msrb.mxu3 %v6823_v10  ;;  %v6491_v7 = vor.u32 %v7810_v56, %v6490_v53  ;;  %v6495_v10 = vor.u32 %v7802_v57, %v6492_v58  ;;  %v6955_v4 = vor.u32 %v7924_v3, %v6954_v2  ;;  %v7852_v58 = vld [vmem:[#allocation13 + $0x5b4] sm:$0xf]  ;;  %v6634_v3 = vld [vmem:[#allocation13 + $0x530] sm:$0xf] }
 0x6e0   :  { %v6771_v56 = vor.u32 %v7877_v22, %v6770_v50  ;;  %v6775_v57 = vor.u32 %v7869_v8, %v6772_v51  ;;  %v7940_v50 = vld [vmem:[#allocation16 + $0x470] sm:$0xff]  ;;  %v7931_v51 = vld [vmem:[#allocation16 + $0x428] sm:$0xff] }
 0x6e1   :  { %v7948_v22 = vld [vmem:[#allocation16 + $0x4b0] sm:$0xff] }
 0x6e2   :  { %3794 = vmatpush.bf16.msrb.mxu0 %v6747_v16  ;;  %3807 = vmatpush.bf16.msrb.mxu1 %v6751_v17  ;;  %v6959_v16 = vor.u32 %v7916_v38, %v6956_v5  ;;  %v6890_v17 = vld [vmem:[#allocation13 + $0x730] sm:$0xf] }
 0x6e3   :  { %3820 = vmatpush.bf16.msrb.mxu2 %v6755_v20  ;;  %3833 = vmatpush.bf16.msrb.mxu3 %v6759_v21  ;;  %v6967_v20 = vor.u32 %v7917_v13, %v6964_v14  ;;  %v7900_v21 = vld [vmem:[#allocation13 + $0x734] sm:$0xf]  ;;  %v6891_v27 = vor.u32 %v7908_v18, %v6890_v17  ;;  %v7844_v38 = vld [vmem:[#allocation13 + $0x56c] sm:$0xf0]  ;;  %v7845_v13 = vld [vmem:[#allocation13 + $0x574] sm:$0xf0] }
 0x6e4   :  { %3747 = vmatmul.bf16.vlgmr.msra.gmra.mxu0 %v8649_v45  ;;  %3760 = vmatmul.bf16.vlgmr.msra.gmra.mxu1 %v8649_v45  ;;  %v7837_v14 = vld [vmem:[#allocation13 + $0x53c] sm:$0xf]  ;;  %v7828_v17 = vld [vmem:[#allocation13 + $0x4ec] sm:$0xf0]  ;;  %v6643_v18 = vor.u32 %v7845_v13, %v6642_v11 }
 0x6e5   :  { %3773 = vmatmul.bf16.vlgmr.msra.gmra.mxu2 %v8649_v45  ;;  %3786 = vmatmul.bf16.vlgmr.msra.gmra.mxu3 %v8649_v45  ;;  %v7956_v8 = vld [vmem:[#allocation16 + $0x4f0] sm:$0xff]  ;;  %v7965_v11 = vld [vmem:[#allocation16 + $0x538] sm:$0xff] }
 0x6e6   :  { %3795 = vmatpush.bf16.msrb.mxu0 %v6683_v28  ;;  %3808 = vmatpush.bf16.msrb.mxu1 %v6687_v29  ;;  %v6895_v28 = vor.u32 %v7900_v21, %v6892_v23  ;;  %v6826_v29 = vld [vmem:[#allocation13 + $0x6b0] sm:$0xf]  ;;  %v6572_v21 = vld [vmem:[#allocation13 + $0x4f0] sm:$0xf0]  ;;  %v6578_v23 = vld [vmem:[#allocation13 + $0x4b8] sm:$0xf] }
 0x6e7   :  { %3821 = vmatpush.bf16.msrb.mxu2 %v6691_v32  ;;  %3834 = vmatpush.bf16.msrb.mxu3 %v6695_v33  ;;  %v6903_v32 = vor.u32 %v7901_v26, %v6900_v12  ;;  %v7884_v33 = vld [vmem:[#allocation13 + $0x6b4] sm:$0xf]  ;;  %v6827_v43 = vor.u32 %v7892_v30, %v6826_v29  ;;  %v6580_v26 = vld [vmem:[#allocation13 + $0x4f8] sm:$0xf0]  ;;  %v7812_v29 = vld [vmem:[#allocation13 + $0x46c] sm:$0xf0]  ;;  %v6579_v30 = vor.u32 %v7829_v24, %v6578_v23 }
 0x6e8   :  { %v7973_v13 = vld [vmem:[#allocation16 + $0x578] sm:$0xff]  ;;  %v7979_v23 = vld [vmem:[#allocation16 + $0x5a8] sm:$0xff] }
 0x6e9   :  { %v7987_v24 = vld [vmem:[#allocation16 + $0x5e8] sm:$0xff] }
 0x6ea   :  { %3796 = vmatpush.bf16.msrb.mxu0 %v6619_v44  ;;  %3809 = vmatpush.bf16.msrb.mxu1 %v6623_v46  ;;  %v6831_v44 = vor.u32 %v7884_v33, %v6828_v36  ;;  %v6762_v46 = vld [vmem:[#allocation13 + $0x630] sm:$0xf]  ;;  %v6508_v33 = vld [vmem:[#allocation13 + $0x470] sm:$0xf0]  ;;  %v6514_v36 = vld [vmem:[#allocation13 + $0x438] sm:$0xf] }
 0x6eb   :  { %3822 = vmatpush.bf16.msrb.mxu2 %v6627_v9  ;;  %3835 = vmatpush.bf16.msrb.mxu3 %v6631_v34  ;;  %v6839_v9 = vor.u32 %v7885_v40, %v6836_v42  ;;  %v7868_v34 = vld [vmem:[#allocation13 + $0x634] sm:$0xf]  ;;  %v6763_v52 = vor.u32 %v7876_v47, %v6762_v46  ;;  %v6516_v40 = vld [vmem:[#allocation13 + $0x478] sm:$0xf0] }
 0x6ec   :  { %v6767_v53 = vor.u32 %v7868_v34, %v6764_v49  ;;  %v6519_v46 = vor.u32 %v7805_v39, %v6516_v40  ;;  %v7933_v47 = vld [vmem:[#allocation16 + $0x438] sm:$0xff]  ;;  %v7932_v49 = vld [vmem:[#allocation16 + $0x430] sm:$0xff]  ;;  %v7959_v39 = vld [vmem:[#allocation16 + $0x508] sm:$0xff] }
 0x6ed   :  { %v7957_v34 = vld [vmem:[#allocation16 + $0x4f8] sm:$0xff]  ;;  %v7967_v40 = vld [vmem:[#allocation16 + $0x548] sm:$0xff] }
 0x6ee   :  { %3797 = vmatpush.bf16.msrb.mxu0 %v6555_v54  ;;  %3810 = vmatpush.bf16.msrb.mxu1 %v6559_v55  ;;  %v6698_v54 = vld [vmem:[#allocation13 + $0x5b0] sm:$0xf] }
 0x6ef   :  { %3823 = vmatpush.bf16.msrb.mxu2 %v6563_v59  ;;  %3836 = vmatpush.bf16.msrb.mxu3 %v6567_v60  ;;  %v7860_v55 = vld [vmem:[#allocation13 + $0x5ec] sm:$0xf0]  ;;  %v6700_v59 = vld [vmem:[#allocation13 + $0x5f0] sm:$0xf0]  ;;  %v6706_v60 = vld [vmem:[#allocation13 + $0x5b8] sm:$0xf] }
 0x6f0   :  { %v6699_v1 = vor.u32 %v7860_v55, %v6698_v54  ;;  %v6703_v2 = vor.u32 %v7852_v58, %v6700_v59  ;;  %v6707_v5 = vor.u32 %v7861_v62, %v6706_v60  ;;  %v7955_v54 = vld [vmem:[#allocation16 + $0x4e8] sm:$0xff]  ;;  %v7930_v55 = vld [vmem:[#allocation16 + $0x420] sm:$0xff]  ;;  %v7929_v58 = vld [vmem:[#allocation16 + $0x418] sm:$0xff] }
 0x6f1   :  { %v7937_v59 = vld [vmem:[#allocation16 + $0x458] sm:$0xff] }
 0x6f2   :  { %3798 = vmatpush.bf16.msrb.mxu0 %v6491_v7  ;;  %3811 = vmatpush.bf16.msrb.mxu1 %v6495_v10  ;;  %v7836_v7 = vld [vmem:[#allocation13 + $0x534] sm:$0xf]  ;;  %v7945_v60 = vld [vmem:[#allocation16 + $0x498] sm:$0xff] }
 0x6f3   :  { %3824 = vmatpush.bf16.msrb.mxu2 %v6499_v15  ;;  %3837 = vmatpush.bf16.msrb.mxu3 %v6503_v35  ;;  %v6636_v10 = vld [vmem:[#allocation13 + $0x570] sm:$0xf0]  ;;  %v6644_v15 = vld [vmem:[#allocation13 + $0x578] sm:$0xf0]  ;;  %v6635_v35 = vor.u32 %v7844_v38, %v6634_v3  ;;  %v7927_v3 = vld [vmem:[#allocation16 + $0x408] sm:$0xff] }
 0x6f4   :  { %v7953_v62 = vld [vmem:[#allocation16 + $0x4d8] sm:$0xff]  ;;  %v7935_v38 = vld [vmem:[#allocation16 + $0x448] sm:$0xff] }
 0x6f5   :  { %3799 = vmatmul.bf16.vlgmr.msrb.gmra.mxu0 %v8649_v45  ;;  %3812 = vmatmul.bf16.vlgmr.msrb.gmra.mxu1 %v8649_v45 }
 0x6f6   :  { %3843 = vmatpush.bf16.msra.mxu0 %v6955_v4  ;;  %3856 = vmatpush.bf16.msra.mxu1 %v6959_v16  ;;  %v6639_v4 = vor.u32 %v7836_v7, %v6636_v10  ;;  %v6570_v16 = vld [vmem:[#allocation13 + $0x4b0] sm:$0xf]  ;;  %v7926_v7 = vld [vmem:[#allocation16 + $0x400] sm:$0xff] }
 0x6f7   :  { %3869 = vmatpush.bf16.msra.mxu2 %v6963_v19  ;;  %3882 = vmatpush.bf16.msra.mxu3 %v6967_v20  ;;  %v6647_v19 = vor.u32 %v7837_v14, %v6644_v15  ;;  %v7820_v20 = vld [vmem:[#allocation13 + $0x4b4] sm:$0xf]  ;;  %v6571_v12 = vor.u32 %v7828_v17, %v6570_v16  ;;  %v7934_v10 = vld [vmem:[#allocation16 + $0x440] sm:$0xff] }
 0x6f8   :  { %3825 = vmatmul.bf16.vlgmr.msrb.gmra.mxu2 %v8649_v45  ;;  %3838 = vmatmul.bf16.vlgmr.msrb.gmra.mxu3 %v8649_v45  ;;  %v7942_v14 = vld [vmem:[#allocation16 + $0x480] sm:$0xff]  ;;  %v7964_v16 = vld [vmem:[#allocation16 + $0x530] sm:$0xff] }
 0x6f9   :  { %v7950_v15 = vld [vmem:[#allocation16 + $0x4c0] sm:$0xff]  ;;  %v7972_v17 = vld [vmem:[#allocation16 + $0x570] sm:$0xff] }
 0x6fa   :  { %3844 = vmatpush.bf16.msra.mxu0 %v6891_v27  ;;  %3857 = vmatpush.bf16.msra.mxu1 %v6895_v28  ;;  %v6575_v27 = vor.u32 %v7820_v20, %v6572_v21  ;;  %v6506_v28 = vld [vmem:[#allocation13 + $0x430] sm:$0xf]  ;;  %v7963_v20 = vld [vmem:[#allocation16 + $0x528] sm:$0xff] }
 0x6fb   :  { %3870 = vmatpush.bf16.msra.mxu2 %v6899_v31  ;;  %3883 = vmatpush.bf16.msra.mxu3 %v6903_v32  ;;  %v6583_v31 = vor.u32 %v7821_v25, %v6580_v26  ;;  %v7804_v32 = vld [vmem:[#allocation13 + $0x434] sm:$0xf]  ;;  %v6507_v42 = vor.u32 %v7812_v29, %v6506_v28  ;;  %v7971_v21 = vld [vmem:[#allocation16 + $0x568] sm:$0xff]  ;;  %v7962_v25 = vld [vmem:[#allocation16 + $0x520] sm:$0xff] }
 0x6fc   :  { %v7970_v26 = vld [vmem:[#allocation16 + $0x560] sm:$0xff]  ;;  %v7961_v28 = vld [vmem:[#allocation16 + $0x518] sm:$0xff] }
 0x6fd   :  { %v7969_v29 = vld [vmem:[#allocation16 + $0x558] sm:$0xff] }
 0x6fe   :  { %3845 = vmatpush.bf16.msra.mxu0 %v6827_v43  ;;  %3858 = vmatpush.bf16.msra.mxu1 %v6831_v44  ;;  %v6511_v43 = vor.u32 %v7804_v32, %v6508_v33  ;;  %v6515_v44 = vor.u32 %v7813_v37, %v6514_v36  ;;  %v7960_v32 = vld [vmem:[#allocation16 + $0x510] sm:$0xff] }
 0x6ff   :  { %3871 = vmatpush.bf16.msra.mxu2 %v6835_v48  ;;  %3884 = vmatpush.bf16.msra.mxu3 %v6839_v9  ;;  %v7941_v48 = vld [vmem:[#allocation16 + $0x478] sm:$0xff]  ;;  %v7968_v33 = vld [vmem:[#allocation16 + $0x550] sm:$0xff] }
 0x700   :  { %v7949_v9 = vld [vmem:[#allocation16 + $0x4b8] sm:$0xff]  ;;  %v7976_v36 = vld [vmem:[#allocation16 + $0x590] sm:$0xff] }
 0x701   :  { %v7984_v37 = vld [vmem:[#allocation16 + $0x5d0] sm:$0xff] }
 0x702   :  { %3846 = vmatpush.bf16.msra.mxu0 %v6763_v52  ;;  %3859 = vmatpush.bf16.msra.mxu1 %v6767_v53  ;;  %v7939_v52 = vld [vmem:[#allocation16 + $0x468] sm:$0xff] }
 0x703   :  { %3872 = vmatpush.bf16.msra.mxu2 %v6771_v56  ;;  %3885 = vmatpush.bf16.msra.mxu3 %v6775_v57  ;;  %v7947_v53 = vld [vmem:[#allocation16 + $0x4a8] sm:$0xff]  ;;  %v7938_v56 = vld [vmem:[#allocation16 + $0x460] sm:$0xff] }
 0x704   :  { %v7946_v57 = vld [vmem:[#allocation16 + $0x4a0] sm:$0xff] }
 0x706   :  { %3847 = vmatpush.bf16.msra.mxu0 %v6699_v1  ;;  %3860 = vmatpush.bf16.msra.mxu1 %v6703_v2  ;;  %v7944_v1 = vld [vmem:[#allocation16 + $0x490] sm:$0xff] }
 0x707   :  { %3873 = vmatpush.bf16.msra.mxu2 %v6707_v5  ;;  %3886 = vmatpush.bf16.msra.mxu3 %v6711_v6  ;;  %v7952_v2 = vld [vmem:[#allocation16 + $0x4d0] sm:$0xff]  ;;  %v7943_v5 = vld [vmem:[#allocation16 + $0x488] sm:$0xff] }
 0x708   :  { %v7951_v6 = vld [vmem:[#allocation16 + $0x4c8] sm:$0xff] }
 0x70a   :  { %3848 = vmatpush.bf16.msra.mxu0 %v6635_v35  ;;  %3861 = vmatpush.bf16.msra.mxu1 %v6639_v4  ;;  %v7981_v35 = vld [vmem:[#allocation16 + $0x5b8] sm:$0xff] }
 0x70b   :  { %3874 = vmatpush.bf16.msra.mxu2 %v6643_v18  ;;  %3887 = vmatpush.bf16.msra.mxu3 %v6647_v19  ;;  %v7989_v4 = vld [vmem:[#allocation16 + $0x5f8] sm:$0xff]  ;;  %v7980_v18 = vld [vmem:[#allocation16 + $0x5b0] sm:$0xff] }
 0x70c   :  { %v7988_v19 = vld [vmem:[#allocation16 + $0x5f0] sm:$0xff] }
 0x70e   :  { %3849 = vmatpush.bf16.msra.mxu0 %v6571_v12  ;;  %3862 = vmatpush.bf16.msra.mxu1 %v6575_v27  ;;  %v7978_v12 = vld [vmem:[#allocation16 + $0x5a0] sm:$0xff] }
 0x70f   :  { %3875 = vmatpush.bf16.msra.mxu2 %v6579_v30  ;;  %3888 = vmatpush.bf16.msra.mxu3 %v6583_v31  ;;  %v7986_v27 = vld [vmem:[#allocation16 + $0x5e0] sm:$0xff]  ;;  %v7977_v30 = vld [vmem:[#allocation16 + $0x598] sm:$0xff] }
 0x710   :  { %v7985_v31 = vld [vmem:[#allocation16 + $0x5d8] sm:$0xff] }
 0x712   :  { %3850 = vmatpush.bf16.msra.mxu0 %v6507_v42  ;;  %3863 = vmatpush.bf16.msra.mxu1 %v6511_v43  ;;  %v7975_v42 = vld [vmem:[#allocation16 + $0x588] sm:$0xff] }
 0x713   :  { %3876 = vmatpush.bf16.msra.mxu2 %v6515_v44  ;;  %3889 = vmatpush.bf16.msra.mxu3 %v6519_v46  ;;  %v7983_v43 = vld [vmem:[#allocation16 + $0x5c8] sm:$0xff]  ;;  %v7958_v44 = vld [vmem:[#allocation16 + $0x500] sm:$0xff] }
 0x714   :  { %v7966_v46 = vld [vmem:[#allocation16 + $0x540] sm:$0xff] }
 0x715   :  { %3851 = vmatmul.bf16.vlgmr.msra.gmra.mxu0 %v8649_v45  ;;  %3864 = vmatmul.bf16.vlgmr.msra.gmra.mxu1 %v8649_v45 }
 0x716   :  { %4957 = vmatpush.bf16.msrb.mxu0 %v7933_v47  ;;  %4970 = vmatpush.bf16.msrb.mxu1 %v7941_v48  ;;  %v7974_v47 = vld [vmem:[#allocation16 + $0x580] sm:$0xff] }
 0x717   :  { %3877 = vmatmul.bf16.vlgmr.msra.gmra.mxu2 %v8649_v45  ;;  %3890 = vmatmul.bf16.vlgmr.msra.gmra.mxu3 %v8649_v45  ;;  %v7954_v45 = vld [vmem:[#allocation16 + $0x4e0] sm:$0xff] }
 0x718   :  { %4983 = vmatpush.bf16.msrb.mxu2 %v7949_v9  ;;  %4996 = vmatpush.bf16.msrb.mxu3 %v7957_v34  ;;  %v7982_v48 = vld [vmem:[#allocation16 + $0x5c0] sm:$0xff]  ;;  %v8667_v9 = vld [vmem:[#allocation14 + $0x10] sm:$0xff] }
 0x719   :  { %v3015_v34 = vperm.slane %v8667_v9, 0 }
 0x71a   :  { %4958 = vmatpush.bf16.msrb.mxu0 %v7932_v49  ;;  %4971 = vmatpush.bf16.msrb.mxu1 %v7940_v50  ;;  %v3016_v49 = vperm.slane %v8667_v9, 1 }
 0x71c   :  { %4984 = vmatpush.bf16.msrb.mxu2 %v7948_v22  ;;  %4997 = vmatpush.bf16.msrb.mxu3 %v7956_v8 }
 0x71e   :  { %4959 = vmatpush.bf16.msrb.mxu0 %v7931_v51  ;;  %4972 = vmatpush.bf16.msrb.mxu1 %v7939_v52 }
 0x720   :  { %4985 = vmatpush.bf16.msrb.mxu2 %v7947_v53  ;;  %4998 = vmatpush.bf16.msrb.mxu3 %v7955_v54  ;;  %v3017_v54 = vperm.slane %v8667_v9, 2 }
 0x722   :  { %4960 = vmatpush.bf16.msrb.mxu0 %v7930_v55  ;;  %4973 = vmatpush.bf16.msrb.mxu1 %v7938_v56  ;;  %v3018_v55 = vperm.slane %v8667_v9, 3  ;;  %v7997_v56 = vld [vmem:[#allocation16 + $0x638] sm:$0xff] }
 0x724   :  { %4986 = vmatpush.bf16.msrb.mxu2 %v7946_v57  ;;  %4999 = vmatpush.bf16.msrb.mxu3 %v7954_v45  ;;  %v8005_v57 = vld [vmem:[#allocation16 + $0x678] sm:$0xff] }
 0x726   :  { %4961 = vmatpush.bf16.msrb.mxu0 %v7929_v58  ;;  %4974 = vmatpush.bf16.msrb.mxu1 %v7937_v59 }
 0x728   :  { %4987 = vmatpush.bf16.msrb.mxu2 %v7945_v60  ;;  %5000 = vmatpush.bf16.msrb.mxu3 %v7953_v62 }
 0x72a   :  { %4962 = vmatpush.bf16.msrb.mxu0 %v7928_v63  ;;  %4975 = vmatpush.bf16.msrb.mxu1 %v7936_v0 }
 0x72c   :  { %4988 = vmatpush.bf16.msrb.mxu2 %v7944_v1  ;;  %5001 = vmatpush.bf16.msrb.mxu3 %v7952_v2  ;;  %v7996_v2 = vld [vmem:[#allocation16 + $0x630] sm:$0xff] }
 0x72e   :  { %4963 = vmatpush.bf16.msrb.mxu0 %v7927_v3  ;;  %4976 = vmatpush.bf16.msrb.mxu1 %v7935_v38  ;;  %v8004_v3 = vld [vmem:[#allocation16 + $0x670] sm:$0xff] }
 0x730   :  { %4989 = vmatpush.bf16.msrb.mxu2 %v7943_v5  ;;  %5002 = vmatpush.bf16.msrb.mxu3 %v7951_v6  ;;  %v8013_v6 = vld [vmem:[#allocation16 + $0x6b8] sm:$0xff] }
 0x732   :  { %4964 = vmatpush.bf16.msrb.mxu0 %v7926_v7  ;;  %4977 = vmatpush.bf16.msrb.mxu1 %v7934_v10  ;;  %v8021_v7 = vld [vmem:[#allocation16 + $0x6f8] sm:$0xff] }
 0x734   :  { %4990 = vmatpush.bf16.msrb.mxu2 %v7942_v14  ;;  %5003 = vmatpush.bf16.msrb.mxu3 %v7950_v15  ;;  %v8003_v14 = vld [vmem:[#allocation16 + $0x668] sm:$0xff]  ;;  %v3019_v15 = vperm.slane %v8667_v9, 4 }
 0x736   :  { %5009 = vmatpush.bf16.msra.mxu0 %v7965_v11  ;;  %5022 = vmatpush.bf16.msra.mxu1 %v7973_v13  ;;  %v7995_v13 = vld [vmem:[#allocation16 + $0x628] sm:$0xff] }
 0x738   :  { %5035 = vmatpush.bf16.msra.mxu2 %v7981_v35  ;;  %5048 = vmatpush.bf16.msra.mxu3 %v7989_v4  ;;  %v3020_v35 = vperm.slane %v8667_v9, 5 }
 0x73a   :  { %5010 = vmatpush.bf16.msra.mxu0 %v7964_v16  ;;  %5023 = vmatpush.bf16.msra.mxu1 %v7972_v17  ;;  %v8012_v17 = vld [vmem:[#allocation16 + $0x6b0] sm:$0xff] }
 0x73c   :  { %5036 = vmatpush.bf16.msra.mxu2 %v7980_v18  ;;  %5049 = vmatpush.bf16.msra.mxu3 %v7988_v19  ;;  %v8020_v18 = vld [vmem:[#allocation16 + $0x6f0] sm:$0xff] }
 0x73e   :  { %5011 = vmatpush.bf16.msra.mxu0 %v7963_v20  ;;  %5024 = vmatpush.bf16.msra.mxu1 %v7971_v21  ;;  %v7994_v21 = vld [vmem:[#allocation16 + $0x620] sm:$0xff] }
 0x740   :  { %5037 = vmatpush.bf16.msra.mxu2 %v7979_v23  ;;  %5050 = vmatpush.bf16.msra.mxu3 %v7987_v24  ;;  %v8002_v23 = vld [vmem:[#allocation16 + $0x660] sm:$0xff] }
 0x742   :  { %5012 = vmatpush.bf16.msra.mxu0 %v7962_v25  ;;  %5025 = vmatpush.bf16.msra.mxu1 %v7970_v26 }
 0x744   :  { %5038 = vmatpush.bf16.msra.mxu2 %v7978_v12  ;;  %5051 = vmatpush.bf16.msra.mxu3 %v7986_v27  ;;  %v8011_v27 = vld [vmem:[#allocation16 + $0x6a8] sm:$0xff] }
 0x746   :  { %5013 = vmatpush.bf16.msra.mxu0 %v7961_v28  ;;  %5026 = vmatpush.bf16.msra.mxu1 %v7969_v29  ;;  %v8019_v28 = vld [vmem:[#allocation16 + $0x6e8] sm:$0xff]  ;;  %v3021_v29 = vperm.slane %v8667_v9, 6 }
 0x748   :  { %5039 = vmatpush.bf16.msra.mxu2 %v7977_v30  ;;  %5052 = vmatpush.bf16.msra.mxu3 %v7985_v31  ;;  %v3022_v30 = vperm.slane %v8667_v9, 7  ;;  %v8000_v9 = vld [vmem:[#allocation16 + $0x650] sm:$0xff] }
 0x74a   :  { %5014 = vmatpush.bf16.msra.mxu0 %v7960_v32  ;;  %5027 = vmatpush.bf16.msra.mxu1 %v7968_v33  ;;  %v7993_v33 = vld [vmem:[#allocation16 + $0x618] sm:$0xff] }
 0x74c   :  { %5040 = vmatpush.bf16.msra.mxu2 %v7976_v36  ;;  %5053 = vmatpush.bf16.msra.mxu3 %v7984_v37  ;;  %v8001_v36 = vld [vmem:[#allocation16 + $0x658] sm:$0xff] }
 0x74e   :  { %5015 = vmatpush.bf16.msra.mxu0 %v7959_v39  ;;  %5028 = vmatpush.bf16.msra.mxu1 %v7967_v40  ;;  %v8010_v40 = vld [vmem:[#allocation16 + $0x6a0] sm:$0xff] }
 0x750   :  { %5041 = vmatpush.bf16.msra.mxu2 %v7975_v42  ;;  %5054 = vmatpush.bf16.msra.mxu3 %v7983_v43  ;;  %v8018_v42 = vld [vmem:[#allocation16 + $0x6e0] sm:$0xff] }
 0x751   :  { %v3696_v50 = vpop.f32.mrf.mxu0  ;;  %v3709_v22 = vpop.f32.mrf.mxu1 }
 0x752   :  { %5016 = vmatpush.bf16.msra.mxu0 %v7958_v44  ;;  %5029 = vmatpush.bf16.msra.mxu1 %v7966_v46  ;;  %v3697_v8 = vadd.f32 %v3696_v50, %v3015_v34  ;;  %v3710_v51 = vadd.f32 %v3709_v22, %v3016_v49  ;;  %v8009_v50 = vld [vmem:[#allocation16 + $0x698] sm:$0xff] }
 0x753   :  { %v8017_v22 = vld [vmem:[#allocation16 + $0x6d8] sm:$0xff] }
 0x754   :  { %5042 = vmatpush.bf16.msra.mxu2 %v7974_v47  ;;  %5055 = vmatpush.bf16.msra.mxu3 %v7982_v48  ;;  %v3895_v52 = vmax.f32 %v3697_v8, 0.0  ;;  %v3896_v53 = vmax.f32 %v3710_v51, 0.0  ;;  %v7992_v48 = vld [vmem:[#allocation16 + $0x610] sm:$0xff] }
 0x756   :  { %v4168_v45 = vpack.c.bf16 %v3895_v52, %v3895_v52  ;;  %v4169_v58 = vpack.c.bf16 %v3896_v53, %v3896_v53  ;;  %v8677_v52 = vld [vmem:[#allocation14 + $0x18] sm:$0xff]  ;;  %v7991_v53 = vld [vmem:[#allocation16 + $0x608] sm:$0xff] }
 0x758   :  { %v3722_v59 = vpop.f32.mrf.mxu2  ;;  %v3735_v60 = vpop.f32.mrf.mxu3  ;;  %4965 = vmatmul.bf16.vlgmr.msrb.gmra.mxu0 %v4168_v45  ;;  %4978 = vmatmul.bf16.vlgmr.msrb.gmra.mxu1 %v4169_v58  ;;  %v3024_v45 = vperm.slane %v8677_v52, 1  ;;  %v8008_v58 = vld [vmem:[#allocation16 + $0x690] sm:$0xff] }
 0x759   :  { %v3723_v62 = vadd.f32 %v3722_v59, %v3017_v54  ;;  %v3736_v63 = vadd.f32 %v3735_v60, %v3018_v55  ;;  %5061 = vmatpush.bf16.msrb.mxu0 %v7997_v56  ;;  %5074 = vmatpush.bf16.msrb.mxu1 %v8005_v57  ;;  %v3698_v0 = vpop.f32.mrf.mxu0  ;;  %v3711_v1 = vpop.f32.mrf.mxu1  ;;  %v7999_v54 = vld [vmem:[#allocation16 + $0x648] sm:$0xff]  ;;  %v3023_v57 = vperm.slane %v8677_v52, 0  ;;  %v8016_v59 = vld [vmem:[#allocation16 + $0x6d0] sm:$0xff]  ;;  %v7990_v60 = vld [vmem:[#allocation16 + $0x600] sm:$0xff] }
 0x75a   :  { %v8029_v1 = vld [vmem:[#allocation16 + $0x738] sm:$0xff] }
 0x75b   :  { %v3897_v38 = vmax.f32 %v3723_v62, 0.0  ;;  %v3898_v5 = vmax.f32 %v3736_v63, 0.0  ;;  %v7998_v62 = vld [vmem:[#allocation16 + $0x640] sm:$0xff] }
 0x75d   :  { %v4170_v10 = vpack.c.bf16 %v3897_v38, %v3897_v38  ;;  %v4171_v11 = vpack.c.bf16 %v3898_v5, %v3898_v5  ;;  %5062 = vmatpush.bf16.msrb.mxu0 %v7996_v2  ;;  %5075 = vmatpush.bf16.msrb.mxu1 %v8004_v3  ;;  %v8037_v2 = vld [vmem:[#allocation16 + $0x778] sm:$0xff]  ;;  %v8007_v5 = vld [vmem:[#allocation16 + $0x688] sm:$0xff] }
 0x75f   :  { %4991 = vmatmul.bf16.vlgmr.msrb.gmra.mxu2 %v4170_v10  ;;  %5004 = vmatmul.bf16.vlgmr.msrb.gmra.mxu3 %v4171_v11  ;;  %v3025_v11 = vperm.slane %v8677_v52, 2 }
 0x760   :  { %5087 = vmatpush.bf16.msrb.mxu2 %v8013_v6  ;;  %5100 = vmatpush.bf16.msrb.mxu3 %v8021_v7  ;;  %v3724_v4 = vpop.f32.mrf.mxu2  ;;  %v3737_v16 = vpop.f32.mrf.mxu3  ;;  %v8015_v6 = vld [vmem:[#allocation16 + $0x6c8] sm:$0xff] }
 0x761   :  { %5063 = vmatpush.bf16.msrb.mxu0 %v7995_v13  ;;  %5076 = vmatpush.bf16.msrb.mxu1 %v8003_v14  ;;  %v3748_v19 = vpop.f32.mrf.mxu0  ;;  %v3761_v20 = vpop.f32.mrf.mxu1  ;;  %v3026_v13 = vperm.slane %v8677_v52, 3  ;;  %v8028_v14 = vld [vmem:[#allocation16 + $0x730] sm:$0xff]  ;;  %v8006_v16 = vld [vmem:[#allocation16 + $0x680] sm:$0xff] }
 0x762   :  { %v3749_v24 = vadd.f32 %v3748_v19, %v3019_v15  ;;  %v3762_v25 = vadd.f32 %v3761_v20, %v3020_v35  ;;  %v8036_v15 = vld [vmem:[#allocation16 + $0x770] sm:$0xff]  ;;  %v8053_v19 = vld [vmem:[#allocation16 + $0x7f8] sm:$0xff] }
 0x764   :  { %v3899_v26 = vmax.f32 %v3749_v24, 0.0  ;;  %v3900_v12 = vmax.f32 %v3762_v25, 0.0  ;;  %5088 = vmatpush.bf16.msrb.mxu2 %v8012_v17  ;;  %5101 = vmatpush.bf16.msrb.mxu3 %v8020_v18  ;;  %v8014_v17 = vld [vmem:[#allocation16 + $0x6c0] sm:$0xff]  ;;  %v8045_v18 = vld [vmem:[#allocation16 + $0x7b8] sm:$0xff] }
 0x765   :  { %5064 = vmatpush.bf16.msrb.mxu0 %v7994_v21  ;;  %5077 = vmatpush.bf16.msrb.mxu1 %v8002_v23 }
 0x766   :  { %v4172_v31 = vpack.c.bf16 %v3899_v26, %v3899_v26  ;;  %v4173_v32 = vpack.c.bf16 %v3900_v12, %v3900_v12  ;;  %v8027_v12 = vld [vmem:[#allocation16 + $0x728] sm:$0xff] }
 0x768   :  { %5089 = vmatpush.bf16.msrb.mxu2 %v8011_v27  ;;  %5102 = vmatpush.bf16.msrb.mxu3 %v8019_v28  ;;  %v3774_v37 = vpop.f32.mrf.mxu2  ;;  %v3787_v39 = vpop.f32.mrf.mxu3  ;;  %v8035_v27 = vld [vmem:[#allocation16 + $0x768] sm:$0xff] }
 0x769   :  { %v3775_v43 = vadd.f32 %v3774_v37, %v3021_v29  ;;  %v3788_v44 = vadd.f32 %v3787_v39, %v3022_v30  ;;  %5017 = vmatmul.bf16.vlgmr.msra.gmra.mxu0 %v4172_v31  ;;  %5030 = vmatmul.bf16.vlgmr.msra.gmra.mxu1 %v4173_v32  ;;  %v3750_v46 = vpop.f32.mrf.mxu0  ;;  %v3763_v47 = vpop.f32.mrf.mxu1  ;;  %v8044_v30 = vld [vmem:[#allocation16 + $0x7b0] sm:$0xff]  ;;  %v8034_v37 = vld [vmem:[#allocation16 + $0x760] sm:$0xff] }
 0x76a   :  { %5065 = vmatpush.bf16.msrb.mxu0 %v7993_v33  ;;  %5078 = vmatpush.bf16.msrb.mxu1 %v8001_v36  ;;  %v8052_v31 = vld [vmem:[#allocation16 + $0x7f0] sm:$0xff]  ;;  %v8026_v36 = vld [vmem:[#allocation16 + $0x720] sm:$0xff]  ;;  %v8033_v46 = vld [vmem:[#allocation16 + $0x758] sm:$0xff] }
 0x76b   :  { %v3901_v34 = vmax.f32 %v3775_v43, 0.0  ;;  %v3902_v49 = vmax.f32 %v3788_v44, 0.0  ;;  %v8051_v43 = vld [vmem:[#allocation16 + $0x7e8] sm:$0xff]  ;;  %v8025_v44 = vld [vmem:[#allocation16 + $0x718] sm:$0xff]  ;;  %v8042_v47 = vld [vmem:[#allocation16 + $0x7a0] sm:$0xff] }
 0x76c   :  { %5090 = vmatpush.bf16.msrb.mxu2 %v8010_v40  ;;  %5103 = vmatpush.bf16.msrb.mxu3 %v8018_v42  ;;  %v8043_v42 = vld [vmem:[#allocation16 + $0x7a8] sm:$0xff] }
 0x76d   :  { %v4174_v8 = vpack.c.bf16 %v3901_v34, %v3901_v34  ;;  %v4175_v51 = vpack.c.bf16 %v3902_v49, %v3902_v49  ;;  %v8032_v34 = vld [vmem:[#allocation16 + $0x750] sm:$0xff]  ;;  %v8041_v49 = vld [vmem:[#allocation16 + $0x798] sm:$0xff] }
 0x76e   :  { %5066 = vmatpush.bf16.msrb.mxu0 %v7992_v48  ;;  %5079 = vmatpush.bf16.msrb.mxu1 %v8000_v9  ;;  %v8050_v48 = vld [vmem:[#allocation16 + $0x7e0] sm:$0xff]  ;;  %v8024_v9 = vld [vmem:[#allocation16 + $0x710] sm:$0xff] }
 0x76f   :  { %5043 = vmatmul.bf16.vlgmr.msra.gmra.mxu2 %v4174_v8  ;;  %5056 = vmatmul.bf16.vlgmr.msra.gmra.mxu3 %v4175_v51  ;;  %v8031_v8 = vld [vmem:[#allocation16 + $0x748] sm:$0xff]  ;;  %v3027_v51 = vperm.slane %v8677_v52, 4 }
 0x770   :  { %5091 = vmatpush.bf16.msrb.mxu2 %v8009_v50  ;;  %5104 = vmatpush.bf16.msrb.mxu3 %v8017_v22  ;;  %v3776_v55 = vpop.f32.mrf.mxu2  ;;  %v3789_v56 = vpop.f32.mrf.mxu3  ;;  %v8049_v50 = vld [vmem:[#allocation16 + $0x7d8] sm:$0xff]  ;;  %v8023_v22 = vld [vmem:[#allocation16 + $0x708] sm:$0xff] }
 0x771   :  { %v8048_v55 = vld [vmem:[#allocation16 + $0x7d0] sm:$0xff]  ;;  %v8022_v56 = vld [vmem:[#allocation16 + $0x700] sm:$0xff] }
 0x772   :  { %5067 = vmatpush.bf16.msrb.mxu0 %v7991_v53  ;;  %5080 = vmatpush.bf16.msrb.mxu1 %v7999_v54  ;;  %v3800_v63 = vpop.f32.mrf.mxu0  ;;  %v3813_v0 = vpop.f32.mrf.mxu1  ;;  %v3028_v53 = vperm.slane %v8677_v52, 5  ;;  %v8040_v54 = vld [vmem:[#allocation16 + $0x790] sm:$0xff] }
 0x773   :  { %v3801_v3 = vadd.f32 %v3800_v63, %v3023_v57  ;;  %v3814_v38 = vadd.f32 %v3813_v0, %v3024_v45  ;;  %v8030_v57 = vld [vmem:[#allocation16 + $0x740] sm:$0xff]  ;;  %v8047_v63 = vld [vmem:[#allocation16 + $0x7c8] sm:$0xff] }
 0x774   :  { %5092 = vmatpush.bf16.msrb.mxu2 %v8008_v58  ;;  %5105 = vmatpush.bf16.msrb.mxu3 %v8016_v59 }
 0x775   :  { %v3903_v7 = vmax.f32 %v3801_v3, 0.0  ;;  %v3904_v10 = vmax.f32 %v3814_v38, 0.0  ;;  %v3030_v3 = vperm.slane %v8677_v52, 7 }
 0x776   :  { %5068 = vmatpush.bf16.msrb.mxu0 %v7990_v60  ;;  %5081 = vmatpush.bf16.msrb.mxu1 %v7998_v62  ;;  %v8039_v62 = vld [vmem:[#allocation16 + $0x788] sm:$0xff] }
 0x777   :  { %v4176_v35 = vpack.c.bf16 %v3903_v7, %v3903_v7  ;;  %v4177_v4 = vpack.c.bf16 %v3904_v10, %v3904_v10  ;;  %v8046_v7 = vld [vmem:[#allocation16 + $0x7c0] sm:$0xff] }
 0x778   :  { %5093 = vmatpush.bf16.msrb.mxu2 %v8007_v5  ;;  %5106 = vmatpush.bf16.msrb.mxu3 %v8015_v6  ;;  %v8038_v6 = vld [vmem:[#allocation16 + $0x780] sm:$0xff] }
 0x779   :  { %5069 = vmatmul.bf16.vlgmr.msrb.gmra.mxu0 %v4176_v35  ;;  %5082 = vmatmul.bf16.vlgmr.msrb.gmra.mxu1 %v4177_v4 }
 0x77a   :  { %5113 = vmatpush.bf16.msra.mxu0 %v8029_v1  ;;  %5126 = vmatpush.bf16.msra.mxu1 %v8037_v2  ;;  %v3802_v25 = vpop.f32.mrf.mxu0  ;;  %v3815_v26 = vpop.f32.mrf.mxu1  ;;  %v3029_v2 = vperm.slane %v8677_v52, 6 }
 0x77b   :  { %v3826_v20 = vpop.f32.mrf.mxu2  ;;  %v3839_v21 = vpop.f32.mrf.mxu3 }
 0x77c   :  { %v3827_v23 = vadd.f32 %v3826_v20, %v3025_v11  ;;  %v3840_v24 = vadd.f32 %v3839_v21, %v3026_v13  ;;  %5094 = vmatpush.bf16.msrb.mxu2 %v8006_v16  ;;  %5107 = vmatpush.bf16.msrb.mxu3 %v8014_v17 }
 0x77e   :  { %5114 = vmatpush.bf16.msra.mxu0 %v8028_v14  ;;  %5127 = vmatpush.bf16.msra.mxu1 %v8036_v15  ;;  %v3905_v28 = vmax.f32 %v3827_v23, 0.0  ;;  %v3906_v29 = vmax.f32 %v3840_v24, 0.0 }
 0x780   :  { %5139 = vmatpush.bf16.msra.mxu2 %v8045_v18  ;;  %5152 = vmatpush.bf16.msra.mxu3 %v8053_v19  ;;  %v4178_v32 = vpack.c.bf16 %v3905_v28, %v3905_v28  ;;  %v4179_v33 = vpack.c.bf16 %v3906_v29, %v3906_v29 }
 0x782   :  { %5115 = vmatpush.bf16.msra.mxu0 %v8027_v12  ;;  %5128 = vmatpush.bf16.msra.mxu1 %v8035_v27 }
 0x783   :  { %5095 = vmatmul.bf16.vlgmr.msrb.gmra.mxu2 %v4178_v32  ;;  %5108 = vmatmul.bf16.vlgmr.msrb.gmra.mxu3 %v4179_v33  ;;  %v3828_v39 = vpop.f32.mrf.mxu2  ;;  %v3841_v40 = vpop.f32.mrf.mxu3  ;;  %v8090_v32 = vld [vmem:[%s8717_s12 + $0x1] ss:$0 sm:$0xff] }
 0x784   :  { %5140 = vmatpush.bf16.msra.mxu2 %v8044_v30  ;;  %5153 = vmatpush.bf16.msra.mxu3 %v8052_v31 }
 0x786   :  { %5116 = vmatpush.bf16.msra.mxu0 %v8026_v36  ;;  %5129 = vmatpush.bf16.msra.mxu1 %v8034_v37 }
 0x788   :  { %5141 = vmatpush.bf16.msra.mxu2 %v8043_v42  ;;  %5154 = vmatpush.bf16.msra.mxu3 %v8051_v43 }
 0x78a   :  { %5117 = vmatpush.bf16.msra.mxu0 %v8025_v44  ;;  %5130 = vmatpush.bf16.msra.mxu1 %v8033_v46 }
 0x78c   :  { %5142 = vmatpush.bf16.msra.mxu2 %v8042_v47  ;;  %5155 = vmatpush.bf16.msra.mxu3 %v8050_v48 }
 0x78e   :  { %5118 = vmatpush.bf16.msra.mxu0 %v8024_v9  ;;  %5131 = vmatpush.bf16.msra.mxu1 %v8032_v34 }
 0x790   :  { %5143 = vmatpush.bf16.msra.mxu2 %v8041_v49  ;;  %5156 = vmatpush.bf16.msra.mxu3 %v8049_v50 }
 0x792   :  { %5119 = vmatpush.bf16.msra.mxu0 %v8023_v22  ;;  %5132 = vmatpush.bf16.msra.mxu1 %v8031_v8  ;;  %v3852_v45 = vpop.f32.mrf.mxu0  ;;  %v3865_v58 = vpop.f32.mrf.mxu1 }
 0x793   :  { %v3853_v59 = vadd.f32 %v3852_v45, %v3027_v51  ;;  %v3866_v60 = vadd.f32 %v3865_v58, %v3028_v53 }
 0x794   :  { %5144 = vmatpush.bf16.msra.mxu2 %v8040_v54  ;;  %5157 = vmatpush.bf16.msra.mxu3 %v8048_v55 }
 0x795   :  { %v3907_v0 = vmax.f32 %v3853_v59, 0.0  ;;  %v3908_v1 = vmax.f32 %v3866_v60, 0.0 }
 0x796   :  { %5120 = vmatpush.bf16.msra.mxu0 %v8022_v56  ;;  %5133 = vmatpush.bf16.msra.mxu1 %v8030_v57 }
 0x797   :  { %v4180_v38 = vpack.c.bf16 %v3907_v0, %v3907_v0  ;;  %v4181_v5 = vpack.c.bf16 %v3908_v1, %v3908_v1 }
 0x798   :  { %5145 = vmatpush.bf16.msra.mxu2 %v8039_v62  ;;  %5158 = vmatpush.bf16.msra.mxu3 %v8047_v63 }
 0x799   :  { %5121 = vmatmul.bf16.vlgmr.msra.gmra.mxu0 %v4180_v38  ;;  %5134 = vmatmul.bf16.vlgmr.msra.gmra.mxu1 %v4181_v5 }
 0x79a   :  { %v3878_v10 = vpop.f32.mrf.mxu2  ;;  %v3891_v11 = vpop.f32.mrf.mxu3 }
 0x79b   :  { %v3879_v13 = vadd.f32 %v3878_v10, %v3029_v2  ;;  %v3892_v14 = vadd.f32 %v3891_v11, %v3030_v3  ;;  %v3854_v15 = vpop.f32.mrf.mxu0  ;;  %v3867_v35 = vpop.f32.mrf.mxu1  ;;  %v8061_v10 = vld [vmem:[#allocation17 + $0x38] sm:$0xff] }
 0x79c   :  { %5146 = vmatpush.bf16.msra.mxu2 %v8038_v6  ;;  %5159 = vmatpush.bf16.msra.mxu3 %v8046_v7  ;;  %v8060_v35 = vld [vmem:[#allocation17 + $0x30] sm:$0xff] }
 0x79d   :  { %v3909_v4 = vmax.f32 %v3879_v13, 0.0  ;;  %v3910_v16 = vmax.f32 %v3892_v14, 0.0  ;;  %5267 = vmatpush.bf16.msrb.mxu0 %v8061_v10 }
 0x79f   :  { %v4182_v17 = vpack.c.bf16 %v3909_v4, %v3909_v4  ;;  %v4183_v52 = vpack.c.bf16 %v3910_v16, %v3910_v16  ;;  %v8059_v4 = vld [vmem:[#allocation17 + $0x28] sm:$0xff]  ;;  %v8058_v16 = vld [vmem:[#allocation17 + $0x20] sm:$0xff] }
 0x7a1   :  { %5147 = vmatmul.bf16.vlgmr.msra.gmra.mxu2 %v4182_v17  ;;  %5160 = vmatmul.bf16.vlgmr.msra.gmra.mxu3 %v4183_v52  ;;  %v8057_v17 = vld [vmem:[#allocation17 + $0x18] sm:$0xff]  ;;  %v8055_v52 = vld [vmem:[#allocation17 + $0x8] sm:$0xff] }
 0x7a2   :  { %v3880_v18 = vpop.f32.mrf.mxu2  ;;  %v3893_v19 = vpop.f32.mrf.mxu3  ;;  %5268 = vmatpush.bf16.msrb.mxu0 %v8060_v35 }
 0x7a3   :  { %v8054_v18 = vld [vmem:[#allocation17] sm:$0xff] }
 0x7a6   :  { %5269 = vmatpush.bf16.msrb.mxu0 %v8059_v4 }
 0x7aa   :  { %5270 = vmatpush.bf16.msrb.mxu0 %v8058_v16 }
 0x7ae   :  { %5271 = vmatpush.bf16.msrb.mxu0 %v8057_v17 }
 0x7d5   :  { %v4966_v20 = vpop.f32.mrf.mxu0  ;;  %v4979_v21 = vpop.f32.mrf.mxu1 }
 0x7d6   :  { %v4967_v37 = vadd.f32 %v8090_v32, %v4966_v20 }
 0x7d8   :  { %v4980_v42 = vadd.f32 %v4979_v21, %v4967_v37 }
 0x7dd   :  { %v4968_v23 = vpop.f32.mrf.mxu0  ;;  %v4981_v24 = vpop.f32.mrf.mxu1 }
 0x7e2   :  { %v4992_v25 = vpop.f32.mrf.mxu2  ;;  %v5005_v26 = vpop.f32.mrf.mxu3 }
 0x7e3   :  { %v4993_v43 = vadd.f32 %v4992_v25, %v4980_v42 }
 0x7e5   :  { %v5006_v47 = vadd.f32 %v5005_v26, %v4993_v43 }
 0x7e6   :  { %v5018_v12 = vpop.f32.mrf.mxu0  ;;  %v5031_v27 = vpop.f32.mrf.mxu1 }
 0x7e7   :  { %v5019_v34 = vadd.f32 %v5018_v12, %v5006_v47 }
 0x7e9   :  { %v5032_v22 = vadd.f32 %v5031_v27, %v5019_v34 }
 0x7ea   :  { %v4994_v28 = vpop.f32.mrf.mxu2  ;;  %v5007_v29 = vpop.f32.mrf.mxu3 }
 0x7eb   :  { %v8091_v28 = vld [vmem:[%s8718_s13 + $0x1] ss:$0 sm:$0xff]  ;;  %s8402_s13 = smov [#allocation19]  }
 0x7ee   :  { %v5020_v30 = vpop.f32.mrf.mxu0  ;;  %v5033_v31 = vpop.f32.mrf.mxu1 }
 0x7f2   :  { %v5044_v33 = vpop.f32.mrf.mxu2  ;;  %v5057_v36 = vpop.f32.mrf.mxu3 }
 0x7f3   :  { %v5045_v8 = vadd.f32 %v5044_v33, %v5032_v22 }
 0x7f5   :  { %v5058_v51 = vadd.f32 %v5057_v36, %v5045_v8  ;;  %v8093_v36 = vld [vmem:[%s8721_s16] ss:$0 sm:$0xff] }
 0x7f6   :  { %v5070_v39 = vpop.f32.mrf.mxu0  ;;  %v5083_v40 = vpop.f32.mrf.mxu1 }
 0x7f7   :  { %v5071_v55 = vadd.f32 %v5070_v39, %v5058_v51 }
 0x7f9   :  { %v5084_v56 = vadd.f32 %v5083_v40, %v5071_v55 }
 0x7fa   :  { %v5046_v44 = vpop.f32.mrf.mxu2  ;;  %v5059_v46 = vpop.f32.mrf.mxu3 }
 0x7fe   :  { %v5072_v48 = vpop.f32.mrf.mxu0  ;;  %v5085_v9 = vpop.f32.mrf.mxu1 }
 0x806   :  { %v5096_v49 = vpop.f32.mrf.mxu2  ;;  %v5109_v50 = vpop.f32.mrf.mxu3 }
 0x807   :  { %v5097_v58 = vadd.f32 %v5096_v49, %v5084_v56 }
 0x809   :  { %v5110_v59 = vadd.f32 %v5109_v50, %v5097_v58 }
 0x80e   :  { %v5098_v53 = vpop.f32.mrf.mxu2  ;;  %v5111_v54 = vpop.f32.mrf.mxu3 }
 0x816   :  { %v5122_v57 = vpop.f32.mrf.mxu0  ;;  %v5135_v45 = vpop.f32.mrf.mxu1 }
 0x817   :  { %v5123_v60 = vadd.f32 %v5122_v57, %v5110_v59 }
 0x819   :  { %v5136_v0 = vadd.f32 %v5135_v45, %v5123_v60 }
 0x81e   :  { %v5124_v62 = vpop.f32.mrf.mxu0  ;;  %v5137_v63 = vpop.f32.mrf.mxu1 }
 0x824   :  { %v5148_v1 = vpop.f32.mrf.mxu2  ;;  %v5161_v2 = vpop.f32.mrf.mxu3 }
 0x825   :  { %v5149_v3 = vadd.f32 %v5148_v1, %v5136_v0 }
 0x827   :  { %v5162_v38 = vadd.f32 %v5161_v2, %v5149_v3 }
 0x829   :  { %v5165_v5 = vadd.f32 %v5162_v38, %v8645_v41  ;;  %v8056_v41 = vld [vmem:[#allocation17 + $0x10] sm:$0xff] }
 0x82a   :  { %5272 = vmatpush.bf16.msrb.mxu0 %v8056_v41 }
 0x82b   :  { %5170 = vadd.xlane.f32.xlu0 %v5165_v5 }
 0x82c   :  { %v5150_v6 = vpop.f32.mrf.mxu2  ;;  %v5163_v7 = vpop.f32.mrf.mxu3 }
 0x82e   :  { %5273 = vmatpush.bf16.msrb.mxu0 %v8055_v52 }
 0x832   :  { %5274 = vmatpush.bf16.msrb.mxu0 %v8054_v18 }
 0x89e   :  { %v5171_v11 = vpop.xlane.xlu0 %5170 }
 0x89f   :  { %v5172_v13 = vmul.f32 %v5171_v11, %v8555_v61 }
 0x8a1   :  { %v5173_v14 = vsub.f32 %v5165_v5, %v5172_v13 }
 0x8a3   :  { %v5174_v15 = vmul.f32 %v5173_v14, %v5173_v14 }
 0x8a5   :  { %5175 = vadd.xlane.f32.xlu1 %v5174_v15 }
 0x918   :  { %v5176_v19 = vpop.xlane.xlu1 %5175 }
 0x919   :  { %v5177_v20 = vmul.f32 %v5176_v19, %v8555_v61  ;;  %v8092_v61 = vld [vmem:[%s8719_s14 + $0x1] ss:$0 sm:$0xff]  ;;  %s5307_s14 = sshll.u32 %s8402_s13, 4  ;;  %s5308_s14 = int_to_ptr.vmem [resolvable:$true] %s5307_s14 }
 0x91b   :  { %v5178_v21 = vadd.f32 1e-05, %v5177_v20 }
 0x91d   :  { %8102 = vrsqrt.f32 %v5178_v21  ;;  %vm5185_vm12 = vweird.f32 %v5178_v21 }
 0x923   :  { %v8103_v23 = vpop.eup %8102 }
 0x924   :  { %v5180_v24 = vmul.f32 %v8103_v23, %v5178_v21  ;;  %vm5186_vm11 = vweird.f32 %v8103_v23 }
 0x925   :  { %vm5187_vm13 = vmor %vm5185_vm12, %vm5186_vm11 }
 0x926   :  { %v5181_v25 = vmul.f32 %v8103_v23, %v5180_v24 }
 0x928   :  { %v5182_v26 = vmul.f32 0.5, %v5181_v25 }
 0x92a   :  { %v5183_v12 = vsub.f32 1.5, %v5182_v26 }
 0x92c   :  { %v5184_v27 = vmul.f32 %v8103_v23, %v5183_v12 }
 0x92e   :  { %v5188_v29 = vsel %vm5187_vm13, %v8103_v23, %v5184_v27 }
 0x92f   :  { %v5189_v30 = vmul.f32 %v5188_v29, %v5173_v14 }
 0x931   :  { %v5193_v31 = vmul.f32 %v8091_v28, %v5189_v30 }
 0x933   :  { %v5197_v32 = vadd.f32 %v8092_v61, %v5193_v31 }
 0x935   :  { %v5214_v33 = vpack.c.bf16 %v5197_v32, %v5197_v32 }
 0x937   :  { %5275 = vmatmul.bf16.vlgmr.msrb.gmra.mxu0 %v5214_v33 }
 0x9b4   :  { %v5276_v37 = vpop.f32.mrf.mxu0 }
 0x9b5   :  { %v5277_v39 = vadd.f32 %v8093_v36, %v5276_v37 }
 0x9b7   :  { %v7515_v40 = vmul.f32 -1.442695, %v5277_v39 }
 0x9b9   :  { %8104 = vpow2.f32 %v7515_v40 }
 0x9bc   :  { %v5278_v42 = vpop.f32.mrf.mxu0 }
 0x9bf   :  { %v8105_v43 = vpop.eup %8104 }
 0x9c0   :  { %v5283_v44 = vadd.f32 1.0, %v8105_v43 }
 0x9c2   :  { %8106 = vrcp.f32 %v5283_v44  ;;  %v5295_v9 = vand.u32 2147483648, %v5283_v44  ;;  %v5293_v49 = vand.u32 2147483647, %v5283_v44  ;;  %vm5289_vm15 = vweird.f32 %v5283_v44 }
 0x9c4   :  { %v5296_v22 = vor.u32 1.1754944e-38, %v5295_v9  ;;  %vm5294_vm1 = vcmp.eq.f32.partialorder %v5293_v49, 8.507059e+37 }
 0x9c8   :  { %v8107_v46 = vpop.eup %8106 }
 0x9c9   :  { %v5285_v47 = vmul.f32 %v8107_v46, %v5283_v44  ;;  %vm5290_vm14 = vweird.f32 %v8107_v46 }
 0x9ca   :  { %vm5291_vm0 = vmor %vm5289_vm15, %vm5290_vm14 }
 0x9cb   :  { %v5286_v48 = vsub.f32 1.0, %v5285_v47 }
 0x9cd   :  { %v5287_v34 = vmul.f32 %v8107_v46, %v5286_v48 }
 0x9cf   :  { %v5288_v50 = vadd.f32 %v8107_v46, %v5287_v34 }
 0x9d1   :  { %v5292_v8 = vsel %vm5291_vm0, %v8107_v46, %v5288_v50 }
 0x9d2   :  { %v5297_v51 = vsel %vm5294_vm1, %v5296_v22, %v5292_v8 }
 0x9d3   :  { %vm5299_vm2 = vcmp.gt.f32.partialorder %v5297_v51, 0.99 }
 0x9d4   :  { %v5300_v53 = vsel %vm5299_vm2, 1.0, %v5297_v51 }
 0x9d5   :  { %5301 = vst [vmem:[#allocation19] sm:$0xff] %v5300_v53 }
 0x9d6   :  { %5312 = dma.vmem_to_hbm [thread:$0]  %s5308_s14, 128, %s5310_s11, [#allocation4]  }
 0x9d7   :  { %8384 = dma.done.wait [#allocation4], 128  }
 0x9d8   :  { %8385 = vsyncadd [#allocation4], 4294967168 }
 0x9d9   :  { %5317 = vsyncpa [#allocation3], 1 }
 0x9da   :  { %5318 = vsyncpa [#allocation6], 1 }
 0x9db   :  { %5319 = vsyncpa [#allocation9], 1 }
 0x9dc   :  { %5320 = vsyncpa [#allocation12], 1 }
 0x9dd   :  { %5321 = vsyncpa [#allocation15], 1 }
 0x9de   :  { %5322 = vsyncpa [#allocation18], 1 }
 0x9df   :  { %5323 = vsyncpa [#allocation4], 1 }

</bundles_post_ra>
